<compile_context>
chip_gen: v5e
topology: v5e:2x2
jax: 0.10.0
libtpu: 0.0.40
codegen_flags: <defaults>
</compile_context>

<pallas_src>
import numpy as np
import jax
import jax.numpy as jnp
from jax import lax
from jax.experimental import pallas as pl
from jax.experimental.pallas import tpu as pltpu

EPS = 1e-5            # nn.BatchNorm2d default
NEG_SLOPE = 0.1       # nn.LeakyReLU(0.1)
MXU_DTYPE = jnp.float32        # set to jnp.bfloat16 for higher MXU throughput
VMEM_LIMIT = 48 * 1024 * 1024  # fits v7x (64 MiB physical) with headroom
ROW_TILE = 1024                # target rows per M-tile (512-1024 ≈ HBM roofline)


# ------------------------------ kernel helpers --------------------------------

def _bn_act(y, scale, shift):
    """Apply pre-folded BN scale/shift + LeakyReLU(0.1)."""
    z = y * scale + shift
    return jnp.where(z > 0, z, NEG_SLOPE * z)


def _dot(a, b):
    return jnp.dot(a.astype(MXU_DTYPE), b.astype(MXU_DTYPE),
                   preferred_element_type=jnp.float32)


def _stats(y2d):
    """Per-channel (sum, sum-of-squares) partials for this tile: (1, 2, C)."""
    s = jnp.sum(y2d, axis=0, keepdims=True)
    ss = jnp.sum(y2d * y2d, axis=0, keepdims=True)
    return jnp.concatenate([s, ss], axis=0).reshape(1, 2, -1)


# --------------------------------- kernels -------------------------------------

def conv1x1_stats_kernel(x_ref, w1_ref, y1_ref, st_ref):
    # x_ref: (tm, C), w1_ref: (C, Cmid) -> y1_ref: (tm, Cmid), st_ref: (1, 2, Cmid)
    y = _dot(x_ref[...], w1_ref[...])
    y1_ref[...] = y
    st_ref[...] = _stats(y)


def conv3x3_stats_kernel(y1_ref, sc_ref, sh_ref, w2_ref, y2_ref, st_ref):
    # y1_ref: (1, H, W, Cmid) raw conv1 output for one image
    # sc/sh : (1, Cmid) folded BN1 scale/shift;  w2_ref: (9*Cmid, C)
    _, H, W, Cm = y1_ref.shape
    Cout = w2_ref.shape[1]
    z = _bn_act(y1_ref[0], sc_ref[...], sh_ref[...])              # (H, W, Cm)
    # zero-pad the halo entirely in VMEM (no HBM pad round trip)
    zr = jnp.zeros((1, W, Cm), jnp.float32)
    zp = jnp.concatenate([zr, z, zr], axis=0)                     # (H+2, W, Cm)
    zc = jnp.zeros((H + 2, 1, Cm), jnp.float32)
    zp = jnp.concatenate([zc, zp, zc], axis=1)                    # (H+2, W+2, Cm)
    # im2col tile -> one big-K matmul (K = 9*Cmid) instead of 9 small ones
    cols = jnp.concatenate(
        [zp[dy:dy + H, dx:dx + W, :] for dy in range(3) for dx in range(3)],
        axis=-1)                                                  # (H, W, 9*Cm)
    y2 = _dot(cols.reshape(H * W, 9 * Cm), w2_ref[...])           # (H*W, Cout)
    y2_ref[...] = y2.reshape(1, H, W, Cout)
    st_ref[...] = _stats(y2)


def bn_res_kernel(y_ref, sc_ref, sh_ref, x_ref, o_ref):
    # final repeat, use_residual=True
    o_ref[...] = x_ref[...] + _bn_act(y_ref[...], sc_ref[...], sh_ref[...])


def bn_kernel(y_ref, sc_ref, sh_ref, o_ref):
    # final repeat, use_residual=False (no zero-tensor DMA)
    o_ref[...] = _bn_act(y_ref[...], sc_ref[...], sh_ref[...])


def bn_res_conv1x1_stats_kernel(y_ref, sc_ref, sh_ref, x_ref, w1_ref,
                                xo_ref, y1_ref, st_ref):
    # fused: BN2+LReLU + residual add + NEXT repeat's 1x1 conv + its BN stats
    xn = x_ref[...] + _bn_act(y_ref[...], sc_ref[...], sh_ref[...])
    xo_ref[...] = xn
    y = _dot(xn, w1_ref[...])
    y1_ref[...] = y
    st_ref[...] = _stats(y)


def bn_conv1x1_stats_kernel(y_ref, sc_ref, sh_ref, w1_ref,
                            xo_ref, y1_ref, st_ref):
    # fused variant without residual
    xn = _bn_act(y_ref[...], sc_ref[...], sh_ref[...])
    xo_ref[...] = xn
    y = _dot(xn, w1_ref[...])
    y1_ref[...] = y
    st_ref[...] = _stats(y)


# ----------------------------- pallas_call wrappers -----------------------------

def _cp():
    return pltpu.CompilerParams(dimension_semantics=("parallel",),
                                vmem_limit_bytes=VMEM_LIMIT)


def _pick_row_tile(M, target=ROW_TILE):
    """Largest divisor of M that is a multiple of 8 and <= target (exact tiles so
    the BN partial sums never see padded rows)."""
    for cand in range(min(target, M), 7, -1):
        if M % cand == 0 and cand % 8 == 0:
            return cand
    return M


def conv1x1_stats(x2d, w1, tm):
    M, C = x2d.shape
    Cm = w1.shape[1]
    gm = M // tm
    return pl.pallas_call(
        conv1x1_stats_kernel,
        out_shape=(jax.ShapeDtypeStruct((M, Cm), jnp.float32),
                   jax.ShapeDtypeStruct((gm, 2, Cm), jnp.float32)),
        grid_spec=pltpu.PrefetchScalarGridSpec(
            num_scalar_prefetch=0, grid=(gm,),
            in_specs=[pl.BlockSpec((tm, C), lambda i: (i, 0)),
                      pl.BlockSpec((C, Cm), lambda i: (0, 0))],
            out_specs=(pl.BlockSpec((tm, Cm), lambda i: (i, 0)),
                       pl.BlockSpec((1, 2, Cm), lambda i: (i, 0, 0)))),
        compiler_params=_cp(),
        cost_estimate=pl.CostEstimate(
            flops=2 * M * C * Cm, transcendentals=0,
            bytes_accessed=4 * (M * C + C * Cm + M * Cm + gm * 2 * Cm)),
    )(x2d, w1)


def conv3x3_stats(y1_nhwc, sc1, sh1, w2_2d):
    N, H, W, Cm = y1_nhwc.shape
    C = w2_2d.shape[1]
    return pl.pallas_call(
        conv3x3_stats_kernel,
        out_shape=(jax.ShapeDtypeStruct((N, H, W, C), jnp.float32),
                   jax.ShapeDtypeStruct((N, 2, C), jnp.float32)),
        grid_spec=pltpu.PrefetchScalarGridSpec(
            num_scalar_prefetch=0, grid=(N,),
            in_specs=[pl.BlockSpec((1, H, W, Cm), lambda n: (n, 0, 0, 0)),
                      pl.BlockSpec((1, Cm), lambda n: (0, 0)),
                      pl.BlockSpec((1, Cm), lambda n: (0, 0)),
                      pl.BlockSpec((9 * Cm, C), lambda n: (0, 0))],
            out_specs=(pl.BlockSpec((1, H, W, C), lambda n: (n, 0, 0, 0)),
                       pl.BlockSpec((1, 2, C), lambda n: (n, 0, 0)))),
        compiler_params=_cp(),
        cost_estimate=pl.CostEstimate(
            flops=2 * N * H * W * 9 * Cm * C, transcendentals=0,
            bytes_accessed=4 * (N * H * W * (Cm + C) + 9 * Cm * C + N * 2 * C)),
    )(y1_nhwc, sc1, sh1, w2_2d)


def bn_apply(y2d, sc, sh, res2d, tm):
    M, C = y2d.shape
    gm = M // tm
    in_specs = [pl.BlockSpec((tm, C), lambda i: (i, 0)),
                pl.BlockSpec((1, C), lambda i: (0, 0)),
                pl.BlockSpec((1, C), lambda i: (0, 0))]
    args = [y2d, sc, sh]
    if res2d is not None:
        in_specs.append(pl.BlockSpec((tm, C), lambda i: (i, 0)))
        args.append(res2d)
        kernel = bn_res_kernel
        nbytes = 4 * 3 * M * C
    else:
        kernel = bn_kernel
        nbytes = 4 * 2 * M * C
    return pl.pallas_call(
        kernel,
        out_shape=jax.ShapeDtypeStruct((M, C), jnp.float32),
        grid_spec=pltpu.PrefetchScalarGridSpec(
            num_scalar_prefetch=0, grid=(gm,),
            in_specs=in_specs,
            out_specs=pl.BlockSpec((tm, C), lambda i: (i, 0))),
        compiler_params=_cp(),
        cost_estimate=pl.CostEstimate(flops=4 * M * C, transcendentals=0,
                                      bytes_accessed=nbytes),
    )(*args)


def bn_conv1x1_stats(y2d, sc, sh, res2d, w1_next, tm):
    M, C = y2d.shape
    Cm = w1_next.shape[1]
    gm = M // tm
    in_specs = [pl.BlockSpec((tm, C), lambda i: (i, 0)),
                pl.BlockSpec((1, C), lambda i: (0, 0)),
                pl.BlockSpec((1, C), lambda i: (0, 0))]
    args = [y2d, sc, sh]
    if res2d is not None:
        in_specs.append(pl.BlockSpec((tm, C), lambda i: (i, 0)))
        args.append(res2d)
        kernel = bn_res_conv1x1_stats_kernel
        act_reads = 2
    else:
        kernel = bn_conv1x1_stats_kernel
        act_reads = 1
    in_specs.append(pl.BlockSpec((C, Cm), lambda i: (0, 0)))
    args.append(w1_next)
    return pl.pallas_call(
        kernel,
        out_shape=(jax.ShapeDtypeStruct((M, C), jnp.float32),
                   jax.ShapeDtypeStruct((M, Cm), jnp.float32),
                   jax.ShapeDtypeStruct((gm, 2, Cm), jnp.float32)),
        grid_spec=pltpu.PrefetchScalarGridSpec(
            num_scalar_prefetch=0, grid=(gm,),
            in_specs=in_specs,
            out_specs=(pl.BlockSpec((tm, C), lambda i: (i, 0)),
                       pl.BlockSpec((tm, Cm), lambda i: (i, 0)),
                       pl.BlockSpec((1, 2, Cm), lambda i: (i, 0, 0)))),
        compiler_params=_cp(),
        cost_estimate=pl.CostEstimate(
            flops=2 * M * C * Cm + 4 * M * C, transcendentals=0,
            bytes_accessed=4 * (M * C * (act_reads + 1) + M * Cm
                                + C * Cm + gm * 2 * Cm)),
    )(*args)


# ------------------------------- module forward ---------------------------------

def _finalize_bn(stats_partial, gamma, beta, count):
    """Reduce per-tile (sum, sumsq) partials and fold BN into per-channel scale/shift."""
    s = jnp.sum(stats_partial, axis=0)                  # (2, C)
    mean = s[0] / count
    var = jnp.maximum(s[1] / count - mean * mean, 0.0)  # biased batch variance
    scale = gamma.reshape(-1) * lax.rsqrt(var + EPS)
    shift = beta.reshape(-1) - mean * scale
    return scale.reshape(1, -1), shift.reshape(1, -1)


def residual_block_forward(x_nchw, params, use_residual=True, row_tile=ROW_TILE):
    """JAX/Pallas equivalent of ResidualBlock.forward. x_nchw: (N, C, H, W) f32."""
    N, C, H, W = x_nchw.shape
    if not params:
        return x_nchw.astype(jnp.float32)
    M = N * H * W
    tm = _pick_row_tile(M, row_tile)
    x = jnp.transpose(x_nchw, (0, 2, 3, 1)).astype(jnp.float32)   # NHWC
    x2d = x.reshape(M, C)                                          # free reshape
    R = len(params)

    # conv1x1 of the first repeat (later repeats get it fused into the BN2 pass)
    y1_raw, st1 = conv1x1_stats(x2d, params[0][0], tm)

    for r, (w1, g1, b1, w2, g2, b2) in enumerate(params):
        Cmid = w1.shape[1]
        sc1, sh1 = _finalize_bn(st1, g1, b1, M)
        y2_raw, st2 = conv3x3_stats(y1_raw.reshape(N, H, W, Cmid), sc1, sh1,
                                    w2.reshape(9 * Cmid, C))
        sc2, sh2 = _finalize_bn(st2, g2, b2, M)
        res = x2d if use_residual else None
        y2_2d = y2_raw.reshape(M, C)
        if r + 1 < R:
            # fused: BN2 + LReLU (+ residual) + next repeat's conv1x1 + its stats
            x2d, y1_raw, st1 = bn_conv1x1_stats(y2_2d, sc2, sh2, res,
                                                params[r + 1][0], tm)
        else:
            x2d = bn_apply(y2_2d, sc2, sh2, res, tm)

    return jnp.transpose(x2d.reshape(N, H, W, C), (0, 3, 1, 2))    # back to NCHW


# ----------------------------- deterministic params ------------------------------

def init_params(key, channels, num_repeats):
    params = []
    Cmid = channels // 2
    for _ in range(num_repeats):
        key, k1, k2, k3, k4, k5, k6 = jax.random.split(key, 7)
        w1 = jax.random.normal(k1, (channels, Cmid), jnp.float32) / np.sqrt(channels)
        g1 = 1.0 + 0.1 * jax.random.normal(k2, (1, Cmid), jnp.float32)
        b1 = 0.1 * jax.random.normal(k3, (1, Cmid), jnp.float32)
        w2 = jax.random.normal(k4, (9, Cmid, channels), jnp.float32) / np.sqrt(9 * Cmid)
        g2 = 1.0 + 0.1 * jax.random.normal(k5, (1, channels), jnp.float32)
        b2 = 0.1 * jax.random.normal(k6, (1, channels), jnp.float32)
        params.append((w1, g1, b1, w2, g2, b2))
    return params


# -------------------------------- pure-JAX reference ------------------------------

def _ref_bn_leaky(y, gamma, beta):
    mean = jnp.mean(y, axis=(0, 1, 2), keepdims=True)
    var = jnp.mean(jnp.square(y - mean), axis=(0, 1, 2), keepdims=True)
    z = (y - mean) * lax.rsqrt(var + EPS) * gamma.reshape(1, 1, 1, -1) \
        + beta.reshape(1, 1, 1, -1)
    return jnp.where(z > 0, z, NEG_SLOPE * z)


def reference_forward(x_nchw, params, use_residual=True):
    x = jnp.transpose(x_nchw, (0, 2, 3, 1)).astype(jnp.float32)
    for (w1, g1, b1, w2, g2, b2) in params:
        y = jnp.einsum('nhwc,cd->nhwd', x, w1, precision=lax.Precision.HIGHEST)
        y = _ref_bn_leaky(y, g1, b1)
        w2_hwio = w2.reshape(3, 3, w2.shape[1], w2.shape[2])
        y = lax.conv_general_dilated(y, w2_hwio, window_strides=(1, 1),
                                     padding=((1, 1), (1, 1)),
                                     dimension_numbers=('NHWC', 'HWIO', 'NHWC'),
                                     precision=lax.Precision.HIGHEST)
        y = _ref_bn_leaky(y, g2, b2)
        x = x + y if use_residual else y
    return jnp.transpose(x, (0, 3, 1, 2))


# --------------------------------------- main --------------------------------------

if __name__ == "__main__":
    key = jax.random.PRNGKey(0)
    kx, kp = jax.random.split(key)

    N, C, H, W = 2, 16, 16, 16      # channels must be even (C // 2 path)
    num_repeats = 2

    x = jax.random.normal(kx, (N, C, H, W), jnp.float32)
    params = init_params(kp, C, num_repeats)

    fwd = jax.jit(residual_block_forward, static_argnums=(2, 3))

    # row_tile=128 so the tiny demo exercises the multi-tile grid + cross-tile BN
    # reduction path; production default is ROW_TILE=1024.
    out = jax.block_until_ready(fwd(x, params, True, 128))
    assert out.shape == (N, C, H, W) and out.dtype == jnp.float32
    ref = jax.block_until_ready(reference_forward(x, params, True))
    np.testing.assert_allclose(np.asarray(out), np.asarray(ref), atol=2e-3, rtol=2e-3)

    # also exercise the use_residual=False kernels (no zero-tensor residual DMA)
    out_nr = jax.block_until_ready(fwd(x, params, False, 128))
    ref_nr = jax.block_until_ready(reference_forward(x, params, False))
    np.testing.assert_allclose(np.asarray(out_nr), np.asarray(ref_nr),
                               atol=2e-3, rtol=2e-3)

    print("KERNEL_OK")
</pallas_src>

<mosaic_0001>
module attributes {stable_mosaic.version = 11 : i64} {
  func.func @conv1x1_stats_kernel(%arg0: i32, %arg1: memref<128x16xf32, #tpu.memory_space<vmem>>, %arg2: memref<16x8xf32, #tpu.memory_space<vmem>>, %arg3: memref<128x8xf32, #tpu.memory_space<vmem>>, %arg4: memref<1x2x8xf32, #tpu.memory_space<vmem>>) attributes {dimension_semantics = [#tpu.dimension_semantics<parallel>], iteration_bounds = array<i64: 4>, scalar_prefetch = 0 : i64, scratch_operands = 0 : i64, tpu.core_type = #tpu.core_type<tc>, window_params = [{transform_indices = @transform_0, window_bounds = array<i64: 128, 16>}, {pipeline_mode = #tpu.pipeline_mode<synchronous>, transform_indices = @transform_1, window_bounds = array<i64: 16, 8>}, {transform_indices = @transform_2, window_bounds = array<i64: 128, 8>}, {transform_indices = @transform_3, window_bounds = array<i64: 1, 2, 8>}]} {
    %c0 = arith.constant 0 : index
    %c0_0 = arith.constant 0 : index
    %0 = vector.load %arg1[%c0, %c0_0] : memref<128x16xf32, #tpu.memory_space<vmem>>, vector<128x16xf32>
    %c0_1 = arith.constant 0 : index
    %c0_2 = arith.constant 0 : index
    %1 = vector.load %arg2[%c0_1, %c0_2] : memref<16x8xf32, #tpu.memory_space<vmem>>, vector<16x8xf32>
    %cst = arith.constant dense<0.000000e+00> : vector<128x8xf32>
    %2 = tpu.matmul %0, %1, %cst {dimension_numbers = #tpu.dot_dimension_numbers<[1], [0], [0], [1], [0, 0, 1, 1], [], []>} : vector<128x16xf32>, vector<16x8xf32>, vector<128x8xf32> -> vector<128x8xf32>
    %c0_3 = arith.constant 0 : index
    %c0_4 = arith.constant 0 : index
    %3 = vector.load %arg3[%c0_3, %c0_4] : memref<128x8xf32, #tpu.memory_space<vmem>>, vector<128x8xf32>
    tpu.vector_store %arg3[%c0_3, %c0_4], %2 {strides = array<i32>} : memref<128x8xf32, #tpu.memory_space<vmem>>, vector<128x8xf32>,
    %cst_5 = arith.constant dense<0.000000e+00> : vector<8xf32>
    %4 = vector.multi_reduction <add>, %2, %cst_5 [0] : vector<128x8xf32> to vector<8xf32>
    %5 = vector.shape_cast %4 : vector<8xf32> to vector<1x8xf32>
    %6 = arith.mulf %2, %2 : vector<128x8xf32>
    %cst_6 = arith.constant dense<0.000000e+00> : vector<8xf32>
    %7 = vector.multi_reduction <add>, %6, %cst_6 [0] : vector<128x8xf32> to vector<8xf32>
    %8 = vector.shape_cast %7 : vector<8xf32> to vector<1x8xf32>
    %9 = tpu.concatenate %5, %8 in 0 : vector<1x8xf32>, vector<1x8xf32> -> vector<2x8xf32>
    %10 = vector.shape_cast %9 : vector<2x8xf32> to vector<1x2x8xf32>
    %c0_7 = arith.constant 0 : index
    %c0_8 = arith.constant 0 : index
    %c0_9 = arith.constant 0 : index
    %11 = vector.load %arg4[%c0_7, %c0_8, %c0_9] : memref<1x2x8xf32, #tpu.memory_space<vmem>>, vector<1x2x8xf32>
    tpu.vector_store %arg4[%c0_7, %c0_8, %c0_9], %10 {strides = array<i32>} : memref<1x2x8xf32, #tpu.memory_space<vmem>>, vector<1x2x8xf32>,
    return
  }
  func.func @transform_0(%arg0: i32) -> (i32, i32) {
    %c0_i32 = arith.constant 0 : i32
    %c0_i32_0 = arith.constant 0 : i32
    return %arg0, %c0_i32 : i32, i32
  }
  func.func @transform_1(%arg0: i32) -> (i32, i32) {
    %c0_i32 = arith.constant 0 : i32
    %c0_i32_0 = arith.constant 0 : i32
    %c0_i32_1 = arith.constant 0 : i32
    return %c0_i32, %c0_i32_0 : i32, i32
  }
  func.func @transform_2(%arg0: i32) -> (i32, i32) {
    %c0_i32 = arith.constant 0 : i32
    %c0_i32_0 = arith.constant 0 : i32
    return %arg0, %c0_i32 : i32, i32
  }
  func.func @transform_3(%arg0: i32) -> (i32, i32, i32) {
    %c0_i32 = arith.constant 0 : i32
    %c0_i32_0 = arith.constant 0 : i32
    %c0_i32_1 = arith.constant 0 : i32
    return %arg0, %c0_i32, %c0_i32_0 : i32, i32, i32
  }
}

module attributes {stable_mosaic.version = 11 : i64} {
  func.func @conv3x3_stats_kernel(%arg0: i32, %arg1: memref<1x16x16x8xf32, #tpu.memory_space<vmem>>, %arg2: memref<1x8xf32, #tpu.memory_space<vmem>>, %arg3: memref<1x8xf32, #tpu.memory_space<vmem>>, %arg4: memref<72x16xf32, #tpu.memory_space<vmem>>, %arg5: memref<1x16x16x16xf32, #tpu.memory_space<vmem>>, %arg6: memref<1x2x16xf32, #tpu.memory_space<vmem>>) attributes {dimension_semantics = [#tpu.dimension_semantics<parallel>], iteration_bounds = array<i64: 2>, scalar_prefetch = 0 : i64, scratch_operands = 0 : i64, tpu.core_type = #tpu.core_type<tc>, window_params = [{transform_indices = @transform_0, window_bounds = array<i64: 1, 16, 16, 8>}, {pipeline_mode = #tpu.pipeline_mode<synchronous>, transform_indices = @transform_1, window_bounds = array<i64: 1, 8>}, {pipeline_mode = #tpu.pipeline_mode<synchronous>, transform_indices = @transform_2, window_bounds = array<i64: 1, 8>}, {pipeline_mode = #tpu.pipeline_mode<synchronous>, transform_indices = @transform_3, window_bounds = array<i64: 72, 16>}, {transform_indices = @transform_4, window_bounds = array<i64: 1, 16, 16, 16>}, {transform_indices = @transform_5, window_bounds = array<i64: 1, 2, 16>}]} {
    %c0 = arith.constant 0 : index
    %c0_0 = arith.constant 0 : index
    %c0_1 = arith.constant 0 : index
    %c0_2 = arith.constant 0 : index
    %0 = vector.load %arg1[%c0, %c0_0, %c0_1, %c0_2] : memref<1x16x16x8xf32, #tpu.memory_space<vmem>>, vector<1x16x16x8xf32>
    %1 = vector.shape_cast %0 : vector<1x16x16x8xf32> to vector<16x16x8xf32>
    %c0_3 = arith.constant 0 : index
    %c0_4 = arith.constant 0 : index
    %2 = vector.load %arg2[%c0_3, %c0_4] : memref<1x8xf32, #tpu.memory_space<vmem>>, vector<1x8xf32>
    %c0_5 = arith.constant 0 : index
    %c0_6 = arith.constant 0 : index
    %3 = vector.load %arg3[%c0_5, %c0_6] : memref<1x8xf32, #tpu.memory_space<vmem>>, vector<1x8xf32>
    %4 = vector.shape_cast %2 : vector<1x8xf32> to vector<1x1x8xf32>
    %5 = vector.broadcast %4 : vector<1x1x8xf32> to vector<16x16x8xf32>
    %6 = arith.mulf %1, %5 : vector<16x16x8xf32>
    %7 = vector.shape_cast %3 : vector<1x8xf32> to vector<1x1x8xf32>
    %8 = vector.broadcast %7 : vector<1x1x8xf32> to vector<16x16x8xf32>
    %9 = arith.addf %6, %8 : vector<16x16x8xf32>
    %cst = arith.constant 0.000000e+00 : f32
    %10 = vector.broadcast %cst : f32 to vector<16x16x8xf32>
    %11 = arith.cmpf ogt, %9, %10 : vector<16x16x8xf32>
    %cst_7 = arith.constant 1.000000e-01 : f32
    %12 = vector.broadcast %cst_7 : f32 to vector<16x16x8xf32>
    %13 = arith.mulf %12, %9 : vector<16x16x8xf32>
    %14 = arith.select %11, %9, %13 : vector<16x16x8xi1>, vector<16x16x8xf32>
    %cst_8 = arith.constant 0.000000e+00 : f32
    %15 = vector.broadcast %cst_8 : f32 to vector<1x16x8xf32>
    %16 = tpu.concatenate %15, %14, %15 in 0 : vector<1x16x8xf32>, vector<16x16x8xf32>, vector<1x16x8xf32> -> vector<18x16x8xf32>
    %cst_9 = arith.constant 0.000000e+00 : f32
    %17 = vector.broadcast %cst_9 : f32 to vector<18x1x8xf32>
    %18 = tpu.concatenate %17, %16, %17 in 1 : vector<18x1x8xf32>, vector<18x16x8xf32>, vector<18x1x8xf32> -> vector<18x18x8xf32>
    %19 = vector.extract_strided_slice %18 {offsets = [0, 0, 0], sizes = [16, 16, 8], strides = [1, 1, 1]} : vector<18x18x8xf32> to vector<16x16x8xf32>
    %20 = vector.extract_strided_slice %18 {offsets = [0, 1, 0], sizes = [16, 16, 8], strides = [1, 1, 1]} : vector<18x18x8xf32> to vector<16x16x8xf32>
    %21 = vector.extract_strided_slice %18 {offsets = [0, 2, 0], sizes = [16, 16, 8], strides = [1, 1, 1]} : vector<18x18x8xf32> to vector<16x16x8xf32>
    %22 = vector.extract_strided_slice %18 {offsets = [1, 0, 0], sizes = [16, 16, 8], strides = [1, 1, 1]} : vector<18x18x8xf32> to vector<16x16x8xf32>
    %23 = vector.extract_strided_slice %18 {offsets = [1, 1, 0], sizes = [16, 16, 8], strides = [1, 1, 1]} : vector<18x18x8xf32> to vector<16x16x8xf32>
    %24 = vector.extract_strided_slice %18 {offsets = [1, 2, 0], sizes = [16, 16, 8], strides = [1, 1, 1]} : vector<18x18x8xf32> to vector<16x16x8xf32>
    %25 = vector.extract_strided_slice %18 {offsets = [2, 0, 0], sizes = [16, 16, 8], strides = [1, 1, 1]} : vector<18x18x8xf32> to vector<16x16x8xf32>
    %26 = vector.extract_strided_slice %18 {offsets = [2, 1, 0], sizes = [16, 16, 8], strides = [1, 1, 1]} : vector<18x18x8xf32> to vector<16x16x8xf32>
    %27 = vector.extract_strided_slice %18 {offsets = [2, 2, 0], sizes = [16, 16, 8], strides = [1, 1, 1]} : vector<18x18x8xf32> to vector<16x16x8xf32>
    %28 = tpu.concatenate %19, %20, %21, %22, %23, %24, %25, %26, %27 in 2 : vector<16x16x8xf32>, vector<16x16x8xf32>, vector<16x16x8xf32>, vector<16x16x8xf32>, vector<16x16x8xf32>, vector<16x16x8xf32>, vector<16x16x8xf32>, vector<16x16x8xf32>, vector<16x16x8xf32> -> vector<16x16x72xf32>
    %29 = vector.shape_cast %28 : vector<16x16x72xf32> to vector<256x72xf32>
    %c0_10 = arith.constant 0 : index
    %c0_11 = arith.constant 0 : index
    %30 = vector.load %arg4[%c0_10, %c0_11] : memref<72x16xf32, #tpu.memory_space<vmem>>, vector<72x16xf32>
    %cst_12 = arith.constant dense<0.000000e+00> : vector<256x16xf32>
    %31 = tpu.matmul %29, %30, %cst_12 {dimension_numbers = #tpu.dot_dimension_numbers<[1], [0], [0], [1], [0, 0, 1, 1], [], []>} : vector<256x72xf32>, vector<72x16xf32>, vector<256x16xf32> -> vector<256x16xf32>
    %32 = vector.shape_cast %31 : vector<256x16xf32> to vector<1x16x16x16xf32>
    %c0_13 = arith.constant 0 : index
    %c0_14 = arith.constant 0 : index
    %c0_15 = arith.constant 0 : index
    %c0_16 = arith.constant 0 : index
    %33 = vector.load %arg5[%c0_13, %c0_14, %c0_15, %c0_16] : memref<1x16x16x16xf32, #tpu.memory_space<vmem>>, vector<1x16x16x16xf32>
    tpu.vector_store %arg5[%c0_13, %c0_14, %c0_15, %c0_16], %32 {strides = array<i32>} : memref<1x16x16x16xf32, #tpu.memory_space<vmem>>, vector<1x16x16x16xf32>,
    %cst_17 = arith.constant dense<0.000000e+00> : vector<16xf32>
    %34 = vector.multi_reduction <add>, %31, %cst_17 [0] : vector<256x16xf32> to vector<16xf32>
    %35 = vector.shape_cast %34 : vector<16xf32> to vector<1x16xf32>
    %36 = arith.mulf %31, %31 : vector<256x16xf32>
    %cst_18 = arith.constant dense<0.000000e+00> : vector<16xf32>
    %37 = vector.multi_reduction <add>, %36, %cst_18 [0] : vector<256x16xf32> to vector<16xf32>
    %38 = vector.shape_cast %37 : vector<16xf32> to vector<1x16xf32>
    %39 = tpu.concatenate %35, %38 in 0 : vector<1x16xf32>, vector<1x16xf32> -> vector<2x16xf32>
    %40 = vector.shape_cast %39 : vector<2x16xf32> to vector<1x2x16xf32>
    %c0_19 = arith.constant 0 : index
    %c0_20 = arith.constant 0 : index
    %c0_21 = arith.constant 0 : index
    %41 = vector.load %arg6[%c0_19, %c0_20, %c0_21] : memref<1x2x16xf32, #tpu.memory_space<vmem>>, vector<1x2x16xf32>
    tpu.vector_store %arg6[%c0_19, %c0_20, %c0_21], %40 {strides = array<i32>} : memref<1x2x16xf32, #tpu.memory_space<vmem>>, vector<1x2x16xf32>,
    return
  }
  func.func @transform_0(%arg0: i32) -> (i32, i32, i32, i32) {
    %c0_i32 = arith.constant 0 : i32
    %c0_i32_0 = arith.constant 0 : i32
    %c0_i32_1 = arith.constant 0 : i32
    %c0_i32_2 = arith.constant 0 : i32
    return %arg0, %c0_i32, %c0_i32_0, %c0_i32_1 : i32, i32, i32, i32
  }
  func.func @transform_1(%arg0: i32) -> (i32, i32) {
    %c0_i32 = arith.constant 0 : i32
    %c0_i32_0 = arith.constant 0 : i32
    %c0_i32_1 = arith.constant 0 : i32
    return %c0_i32, %c0_i32_0 : i32, i32
  }
  func.func @transform_2(%arg0: i32) -> (i32, i32) {
    %c0_i32 = arith.constant 0 : i32
    %c0_i32_0 = arith.constant 0 : i32
    %c0_i32_1 = arith.constant 0 : i32
    return %c0_i32, %c0_i32_0 : i32, i32
  }
  func.func @transform_3(%arg0: i32) -> (i32, i32) {
    %c0_i32 = arith.constant 0 : i32
    %c0_i32_0 = arith.constant 0 : i32
    %c0_i32_1 = arith.constant 0 : i32
    return %c0_i32, %c0_i32_0 : i32, i32
  }
  func.func @transform_4(%arg0: i32) -> (i32, i32, i32, i32) {
    %c0_i32 = arith.constant 0 : i32
    %c0_i32_0 = arith.constant 0 : i32
    %c0_i32_1 = arith.constant 0 : i32
    %c0_i32_2 = arith.constant 0 : i32
    return %arg0, %c0_i32, %c0_i32_0, %c0_i32_1 : i32, i32, i32, i32
  }
  func.func @transform_5(%arg0: i32) -> (i32, i32, i32) {
    %c0_i32 = arith.constant 0 : i32
    %c0_i32_0 = arith.constant 0 : i32
    %c0_i32_1 = arith.constant 0 : i32
    return %arg0, %c0_i32, %c0_i32_0 : i32, i32, i32
  }
}

module attributes {stable_mosaic.version = 11 : i64} {
  func.func @bn_res_conv1x1_stats_kernel(%arg0: i32, %arg1: memref<128x16xf32, #tpu.memory_space<vmem>>, %arg2: memref<1x16xf32, #tpu.memory_space<vmem>>, %arg3: memref<1x16xf32, #tpu.memory_space<vmem>>, %arg4: memref<128x16xf32, #tpu.memory_space<vmem>>, %arg5: memref<16x8xf32, #tpu.memory_space<vmem>>, %arg6: memref<128x16xf32, #tpu.memory_space<vmem>>, %arg7: memref<128x8xf32, #tpu.memory_space<vmem>>, %arg8: memref<1x2x8xf32, #tpu.memory_space<vmem>>) attributes {dimension_semantics = [#tpu.dimension_semantics<parallel>], iteration_bounds = array<i64: 4>, scalar_prefetch = 0 : i64, scratch_operands = 0 : i64, tpu.core_type = #tpu.core_type<tc>, window_params = [{transform_indices = @transform_0, window_bounds = array<i64: 128, 16>}, {pipeline_mode = #tpu.pipeline_mode<synchronous>, transform_indices = @transform_1, window_bounds = array<i64: 1, 16>}, {pipeline_mode = #tpu.pipeline_mode<synchronous>, transform_indices = @transform_2, window_bounds = array<i64: 1, 16>}, {transform_indices = @transform_3, window_bounds = array<i64: 128, 16>}, {pipeline_mode = #tpu.pipeline_mode<synchronous>, transform_indices = @transform_4, window_bounds = array<i64: 16, 8>}, {transform_indices = @transform_5, window_bounds = array<i64: 128, 16>}, {transform_indices = @transform_6, window_bounds = array<i64: 128, 8>}, {transform_indices = @transform_7, window_bounds = array<i64: 1, 2, 8>}]} {
    %c0 = arith.constant 0 : index
    %c0_0 = arith.constant 0 : index
    %0 = vector.load %arg4[%c0, %c0_0] : memref<128x16xf32, #tpu.memory_space<vmem>>, vector<128x16xf32>
    %c0_1 = arith.constant 0 : index
    %c0_2 = arith.constant 0 : index
    %1 = vector.load %arg1[%c0_1, %c0_2] : memref<128x16xf32, #tpu.memory_space<vmem>>, vector<128x16xf32>
    %c0_3 = arith.constant 0 : index
    %c0_4 = arith.constant 0 : index
    %2 = vector.load %arg2[%c0_3, %c0_4] : memref<1x16xf32, #tpu.memory_space<vmem>>, vector<1x16xf32>
    %c0_5 = arith.constant 0 : index
    %c0_6 = arith.constant 0 : index
    %3 = vector.load %arg3[%c0_5, %c0_6] : memref<1x16xf32, #tpu.memory_space<vmem>>, vector<1x16xf32>
    %4 = vector.broadcast %2 : vector<1x16xf32> to vector<128x16xf32>
    %5 = arith.mulf %1, %4 : vector<128x16xf32>
    %6 = vector.broadcast %3 : vector<1x16xf32> to vector<128x16xf32>
    %7 = arith.addf %5, %6 : vector<128x16xf32>
    %cst = arith.constant 0.000000e+00 : f32
    %8 = vector.broadcast %cst : f32 to vector<128x16xf32>
    %9 = arith.cmpf ogt, %7, %8 : vector<128x16xf32>
    %cst_7 = arith.constant 1.000000e-01 : f32
    %10 = vector.broadcast %cst_7 : f32 to vector<128x16xf32>
    %11 = arith.mulf %10, %7 : vector<128x16xf32>
    %12 = arith.select %9, %7, %11 : vector<128x16xi1>, vector<128x16xf32>
    %13 = arith.addf %0, %12 : vector<128x16xf32>
    %c0_8 = arith.constant 0 : index
    %c0_9 = arith.constant 0 : index
    %14 = vector.load %arg6[%c0_8, %c0_9] : memref<128x16xf32, #tpu.memory_space<vmem>>, vector<128x16xf32>
    tpu.vector_store %arg6[%c0_8, %c0_9], %13 {strides = array<i32>} : memref<128x16xf32, #tpu.memory_space<vmem>>, vector<128x16xf32>,
    %c0_10 = arith.constant 0 : index
    %c0_11 = arith.constant 0 : index
    %15 = vector.load %arg5[%c0_10, %c0_11] : memref<16x8xf32, #tpu.memory_space<vmem>>, vector<16x8xf32>
    %cst_12 = arith.constant dense<0.000000e+00> : vector<128x8xf32>
    %16 = tpu.matmul %13, %15, %cst_12 {dimension_numbers = #tpu.dot_dimension_numbers<[1], [0], [0], [1], [0, 0, 1, 1], [], []>} : vector<128x16xf32>, vector<16x8xf32>, vector<128x8xf32> -> vector<128x8xf32>
    %c0_13 = arith.constant 0 : index
    %c0_14 = arith.constant 0 : index
    %17 = vector.load %arg7[%c0_13, %c0_14] : memref<128x8xf32, #tpu.memory_space<vmem>>, vector<128x8xf32>
    tpu.vector_store %arg7[%c0_13, %c0_14], %16 {strides = array<i32>} : memref<128x8xf32, #tpu.memory_space<vmem>>, vector<128x8xf32>,
    %cst_15 = arith.constant dense<0.000000e+00> : vector<8xf32>
    %18 = vector.multi_reduction <add>, %16, %cst_15 [0] : vector<128x8xf32> to vector<8xf32>
    %19 = vector.shape_cast %18 : vector<8xf32> to vector<1x8xf32>
    %20 = arith.mulf %16, %16 : vector<128x8xf32>
    %cst_16 = arith.constant dense<0.000000e+00> : vector<8xf32>
    %21 = vector.multi_reduction <add>, %20, %cst_16 [0] : vector<128x8xf32> to vector<8xf32>
    %22 = vector.shape_cast %21 : vector<8xf32> to vector<1x8xf32>
    %23 = tpu.concatenate %19, %22 in 0 : vector<1x8xf32>, vector<1x8xf32> -> vector<2x8xf32>
    %24 = vector.shape_cast %23 : vector<2x8xf32> to vector<1x2x8xf32>
    %c0_17 = arith.constant 0 : index
    %c0_18 = arith.constant 0 : index
    %c0_19 = arith.constant 0 : index
    %25 = vector.load %arg8[%c0_17, %c0_18, %c0_19] : memref<1x2x8xf32, #tpu.memory_space<vmem>>, vector<1x2x8xf32>
    tpu.vector_store %arg8[%c0_17, %c0_18, %c0_19], %24 {strides = array<i32>} : memref<1x2x8xf32, #tpu.memory_space<vmem>>, vector<1x2x8xf32>,
    return
  }
  func.func @transform_0(%arg0: i32) -> (i32, i32) {
    %c0_i32 = arith.constant 0 : i32
    %c0_i32_0 = arith.constant 0 : i32
    return %arg0, %c0_i32 : i32, i32
  }
  func.func @transform_1(%arg0: i32) -> (i32, i32) {
    %c0_i32 = arith.constant 0 : i32
    %c0_i32_0 = arith.constant 0 : i32
    %c0_i32_1 = arith.constant 0 : i32
    return %c0_i32, %c0_i32_0 : i32, i32
  }
  func.func @transform_2(%arg0: i32) -> (i32, i32) {
    %c0_i32 = arith.constant 0 : i32
    %c0_i32_0 = arith.constant 0 : i32
    %c0_i32_1 = arith.constant 0 : i32
    return %c0_i32, %c0_i32_0 : i32, i32
  }
  func.func @transform_3(%arg0: i32) -> (i32, i32) {
    %c0_i32 = arith.constant 0 : i32
    %c0_i32_0 = arith.constant 0 : i32
    return %arg0, %c0_i32 : i32, i32
  }
  func.func @transform_4(%arg0: i32) -> (i32, i32) {
    %c0_i32 = arith.constant 0 : i32
    %c0_i32_0 = arith.constant 0 : i32
    %c0_i32_1 = arith.constant 0 : i32
    return %c0_i32, %c0_i32_0 : i32, i32
  }
  func.func @transform_5(%arg0: i32) -> (i32, i32) {
    %c0_i32 = arith.constant 0 : i32
    %c0_i32_0 = arith.constant 0 : i32
    return %arg0, %c0_i32 : i32, i32
  }
  func.func @transform_6(%arg0: i32) -> (i32, i32) {
    %c0_i32 = arith.constant 0 : i32
    %c0_i32_0 = arith.constant 0 : i32
    return %arg0, %c0_i32 : i32, i32
  }
  func.func @transform_7(%arg0: i32) -> (i32, i32, i32) {
    %c0_i32 = arith.constant 0 : i32
    %c0_i32_0 = arith.constant 0 : i32
    %c0_i32_1 = arith.constant 0 : i32
    return %arg0, %c0_i32, %c0_i32_0 : i32, i32, i32
  }
}

module attributes {stable_mosaic.version = 11 : i64} {
  func.func @bn_res_kernel(%arg0: i32, %arg1: memref<128x16xf32, #tpu.memory_space<vmem>>, %arg2: memref<1x16xf32, #tpu.memory_space<vmem>>, %arg3: memref<1x16xf32, #tpu.memory_space<vmem>>, %arg4: memref<128x16xf32, #tpu.memory_space<vmem>>, %arg5: memref<128x16xf32, #tpu.memory_space<vmem>>) attributes {dimension_semantics = [#tpu.dimension_semantics<parallel>], iteration_bounds = array<i64: 4>, scalar_prefetch = 0 : i64, scratch_operands = 0 : i64, tpu.core_type = #tpu.core_type<tc>, window_params = [{transform_indices = @transform_0, window_bounds = array<i64: 128, 16>}, {pipeline_mode = #tpu.pipeline_mode<synchronous>, transform_indices = @transform_1, window_bounds = array<i64: 1, 16>}, {pipeline_mode = #tpu.pipeline_mode<synchronous>, transform_indices = @transform_2, window_bounds = array<i64: 1, 16>}, {transform_indices = @transform_3, window_bounds = array<i64: 128, 16>}, {transform_indices = @transform_4, window_bounds = array<i64: 128, 16>}]} {
    %c0 = arith.constant 0 : index
    %c0_0 = arith.constant 0 : index
    %0 = vector.load %arg4[%c0, %c0_0] : memref<128x16xf32, #tpu.memory_space<vmem>>, vector<128x16xf32>
    %c0_1 = arith.constant 0 : index
    %c0_2 = arith.constant 0 : index
    %1 = vector.load %arg1[%c0_1, %c0_2] : memref<128x16xf32, #tpu.memory_space<vmem>>, vector<128x16xf32>
    %c0_3 = arith.constant 0 : index
    %c0_4 = arith.constant 0 : index
    %2 = vector.load %arg2[%c0_3, %c0_4] : memref<1x16xf32, #tpu.memory_space<vmem>>, vector<1x16xf32>
    %c0_5 = arith.constant 0 : index
    %c0_6 = arith.constant 0 : index
    %3 = vector.load %arg3[%c0_5, %c0_6] : memref<1x16xf32, #tpu.memory_space<vmem>>, vector<1x16xf32>
    %4 = vector.broadcast %2 : vector<1x16xf32> to vector<128x16xf32>
    %5 = arith.mulf %1, %4 : vector<128x16xf32>
    %6 = vector.broadcast %3 : vector<1x16xf32> to vector<128x16xf32>
    %7 = arith.addf %5, %6 : vector<128x16xf32>
    %cst = arith.constant 0.000000e+00 : f32
    %8 = vector.broadcast %cst : f32 to vector<128x16xf32>
    %9 = arith.cmpf ogt, %7, %8 : vector<128x16xf32>
    %cst_7 = arith.constant 1.000000e-01 : f32
    %10 = vector.broadcast %cst_7 : f32 to vector<128x16xf32>
    %11 = arith.mulf %10, %7 : vector<128x16xf32>
    %12 = arith.select %9, %7, %11 : vector<128x16xi1>, vector<128x16xf32>
    %13 = arith.addf %0, %12 : vector<128x16xf32>
    %c0_8 = arith.constant 0 : index
    %c0_9 = arith.constant 0 : index
    %14 = vector.load %arg5[%c0_8, %c0_9] : memref<128x16xf32, #tpu.memory_space<vmem>>, vector<128x16xf32>
    tpu.vector_store %arg5[%c0_8, %c0_9], %13 {strides = array<i32>} : memref<128x16xf32, #tpu.memory_space<vmem>>, vector<128x16xf32>,
    return
  }
  func.func @transform_0(%arg0: i32) -> (i32, i32) {
    %c0_i32 = arith.constant 0 : i32
    %c0_i32_0 = arith.constant 0 : i32
    return %arg0, %c0_i32 : i32, i32
  }
  func.func @transform_1(%arg0: i32) -> (i32, i32) {
    %c0_i32 = arith.constant 0 : i32
    %c0_i32_0 = arith.constant 0 : i32
    %c0_i32_1 = arith.constant 0 : i32
    return %c0_i32, %c0_i32_0 : i32, i32
  }
  func.func @transform_2(%arg0: i32) -> (i32, i32) {
    %c0_i32 = arith.constant 0 : i32
    %c0_i32_0 = arith.constant 0 : i32
    %c0_i32_1 = arith.constant 0 : i32
    return %c0_i32, %c0_i32_0 : i32, i32
  }
  func.func @transform_3(%arg0: i32) -> (i32, i32) {
    %c0_i32 = arith.constant 0 : i32
    %c0_i32_0 = arith.constant 0 : i32
    return %arg0, %c0_i32 : i32, i32
  }
  func.func @transform_4(%arg0: i32) -> (i32, i32) {
    %c0_i32 = arith.constant 0 : i32
    %c0_i32_0 = arith.constant 0 : i32
    return %arg0, %c0_i32 : i32, i32
  }
}

</mosaic_0001>

<bundles_post_ra>
// kernel: residual_block_forward.5
= control target key start
LH: loop header
LB: loop body
LE: loop exit
PB: predicated region body
PF: predicated region fallthrough
CT: control target
= control target key end

     0   :  { %s585_s12 = smov 0   ;;  %s729_s0 = inlined_call_operand.vmem [shape: f32[512,16], index: 0, kind: input, shape index: {}]   ;;  %s730_s1 = inlined_call_operand.vmem [shape: f32[16,8], index: 1, kind: input, shape index: {}]   ;;  %s731_s2 = inlined_call_operand.vmem [shape: f32[512,8], index: 2, kind: output, shape index: {0}]   ;;  %s732_s3 = inlined_call_operand.vmem [shape: f32[4,2,8], index: 3, kind: output, shape index: {1}]  }
   0x1 LB: > { %s591_s13 = sadd.s32 4294967295, %s563_s12   ;;  %p519_p0 = scmp.ge.s32.totalorder %s563_s12, 1  ;;  %s563_s12 = sphi %s585_s12, %s14_s12  }
   0x2   : > { %p141_p1 = scmp.lt.s32.totalorder %s563_s12, 5 }
   0x4   : > { %p142_p2 = pnand %p519_p0, %p141_p1 }
   0x5   : > { %s520_s18 = sshll.u32 (!%p142_p2), %s591_s13, 4  ;;  %p181_p4 = scmp.lt.s32.totalorder (!%p142_p2), %s591_s13, 3 }
   0x6   : > { %145 = sbr.rel (%p142_p2) target bundleno = 209 (0xd1), region = 28  ;;  %p170_p3 = scmp.lt.s32.totalorder (!%p142_p2), %s520_s18, 63 }
   0xb   : > { %v202_v0 = vld [vmem:[%s730_s1 + $0x8] sm:$0xff]  ;;  %v201_v1 = vld [vmem:[%s730_s1] sm:$0xff]  ;;  %s734_s18 = smov (!%p170_p3, %s520_s18), 63  ;;  %vm203_vm0 = vcmask 130048   ;;  %vm317_vm1 = vcmask 64512   ;;  %s736_s13 = smov (!%p181_p4, %s591_s13), 3 }
   0xc   : > { %266 = vmatpush.msra.mxu0 %v202_v0  ;;  %543 = vmatpush.msra.mxu1 %v202_v0  ;;  %s521_s19 = sshll.u32 %s734_s18, 3  ;;  %s524_s26 = sshll.u32 %s736_s13, 1  ;;  %vm424_vm2 = vcmask 1040384   ;;  %vm426_vm3 = vcmask 58368  }
   0xd   : > { %544 = vmatpush.msra.mxu2 %v202_v0  ;;  %545 = vmatpush.msra.mxu3 %v202_v0  ;;  %s173_s22 = scalar_lea.vmem %s729_s0, %s521_s19  ;;  %s631_s25 = scalar_lea.vmem %s731_s2, %s521_s19 }
   0xe   : > { %267 = vmatpush.msra.mxu0 %v201_v1  ;;  %546 = vmatpush.msra.mxu1 %v201_v1  ;;  %v185_v2 = vld [vmem:[%s173_s22] sm:$0xff]  ;;  %v186_v6 = vld [vmem:[%s173_s22 + $0x8] sm:$0xff]  ;;  %v187_v10 = vld [vmem:[%s173_s22 + $0x10] sm:$0xff]  ;;  %s184_s29 = scalar_lea.vmem %s732_s3, %s524_s26 }
   0xf   : > { %547 = vmatpush.msra.mxu2 %v201_v1  ;;  %548 = vmatpush.msra.mxu3 %v201_v1  ;;  %v189_v3 = vld [vmem:[%s173_s22 + $0x20] sm:$0xff]  ;;  %v190_v7 = vld [vmem:[%s173_s22 + $0x28] sm:$0xff]  ;;  %v191_v11 = vld [vmem:[%s173_s22 + $0x30] sm:$0xff] }
  0x10   : > { %525 = vmatmul.msk.f32.vlgmr.msra.gmra.mxu0 %vm203_vm0, %v185_v2  ;;  %529 = vmatmul.msk.f32.vlgmr.msra.gmra.mxu1 %vm203_vm0, %v189_v3  ;;  %v193_v4 = vld [vmem:[%s173_s22 + $0x40] sm:$0xff]  ;;  %v194_v8 = vld [vmem:[%s173_s22 + $0x48] sm:$0xff]  ;;  %v195_v12 = vld [vmem:[%s173_s22 + $0x50] sm:$0xff] }
  0x11   : > { %533 = vmatmul.msk.f32.vlgmr.msra.gmra.mxu2 %vm203_vm0, %v193_v4  ;;  %v197_v5 = vld [vmem:[%s173_s22 + $0x60] sm:$0xff]  ;;  %v198_v9 = vld [vmem:[%s173_s22 + $0x68] sm:$0xff]  ;;  %v199_v13 = vld [vmem:[%s173_s22 + $0x70] sm:$0xff] }
  0x12   : > { %537 = vmatmul.msk.f32.vlgmr.msra.gmra.mxu3 %vm203_vm0, %v197_v5  ;;  %v188_v14 = vld [vmem:[%s173_s22 + $0x18] sm:$0xff] }
  0x13   : > { %v192_v15 = vld [vmem:[%s173_s22 + $0x38] sm:$0xff] }
  0x14   : > { %v196_v16 = vld [vmem:[%s173_s22 + $0x58] sm:$0xff] }
  0x15   : > { %v200_v17 = vld [vmem:[%s173_s22 + $0x78] sm:$0xff] }
  0x18   : > { %526 = vmatmul.msk.f32.gmra.mxu0 %vm203_vm0, %v186_v6  ;;  %530 = vmatmul.msk.f32.gmra.mxu1 %vm203_vm0, %v190_v7 }
  0x19   : > { %534 = vmatmul.msk.f32.gmra.mxu2 %vm203_vm0, %v194_v8 }
  0x1a   : > { %538 = vmatmul.msk.f32.gmra.mxu3 %vm203_vm0, %v198_v9 }
  0x20   : > { %527 = vmatmul.msk.f32.gmra.mxu0 %vm203_vm0, %v187_v10  ;;  %531 = vmatmul.msk.f32.gmra.mxu1 %vm203_vm0, %v191_v11 }
  0x21   : > { %535 = vmatmul.msk.f32.gmra.mxu2 %vm203_vm0, %v195_v12 }
  0x22   : > { %539 = vmatmul.msk.f32.gmra.mxu3 %vm203_vm0, %v199_v13 }
  0x28   : > { %528 = vmatmul.msk.f32.gmra.mxu0 %vm203_vm0, %v188_v14  ;;  %532 = vmatmul.msk.f32.gmra.mxu1 %vm203_vm0, %v192_v15 }
  0x29   : > { %536 = vmatmul.msk.f32.gmra.mxu2 %vm203_vm0, %v196_v16 }
  0x2a   : > { %540 = vmatmul.msk.f32.gmra.mxu3 %vm203_vm0, %v200_v17 }
  0x8d   : > { %v269_v18 = vpop.f32.mrf.mxu0  ;;  %v281_v19 = vpop.f32.mrf.mxu1 }
  0x8e   : > { %318 = vst.msk [vmem:[%s631_s25] sm:$0xff] %vm317_vm1, %v269_v18  ;;  %v371_v29 = vmul.f32 %v269_v18, %v269_v18  ;;  %v334_v32 = vsel %vm317_vm1, %v269_v18, 0.0  ;;  %v375_v43 = vmul.f32 %v281_v19, %v281_v19  ;;  %v341_v49 = vsel %vm317_vm1, %v281_v19, 0.0 }
  0x8f   : > { %322 = vst.msk [vmem:[%s631_s25 + $0x20] sm:$0xff] %vm317_vm1, %v281_v19 }
  0x90   : > { %v387_v36 = vsel %vm317_vm1, %v371_v29, 0.0  ;;  %v394_v54 = vsel %vm317_vm1, %v375_v43, 0.0 }
  0x94   : > { %v637_v20 = vpop.f32.mrf.mxu2 }
  0x95   : > { %v272_v21 = vpop.f32.mrf.mxu0  ;;  %v284_v22 = vpop.f32.mrf.mxu1  ;;  %326 = vst.msk [vmem:[%s631_s25 + $0x40] sm:$0xff] %vm317_vm1, %v637_v20  ;;  %v379_v2 = vmul.f32 %v637_v20, %v637_v20  ;;  %v349_v8 = vsel %vm317_vm1, %v637_v20, 0.0 }
  0x96   : > { %319 = vst.msk [vmem:[%s631_s25 + $0x8] sm:$0xff] %vm317_vm1, %v272_v21  ;;  %v644_v23 = vpop.f32.mrf.mxu3  ;;  %v372_v27 = vmul.f32 %v272_v21, %v272_v21  ;;  %v335_v30 = vsel %vm317_vm1, %v272_v21, 0.0  ;;  %v376_v50 = vmul.f32 %v284_v22, %v284_v22  ;;  %v343_v55 = vsel %vm317_vm1, %v284_v22, 0.0 }
  0x97   : > { %323 = vst.msk [vmem:[%s631_s25 + $0x28] sm:$0xff] %vm317_vm1, %v284_v22  ;;  %v336_v35 = vadd.f32 %v335_v30, %v334_v32  ;;  %v402_v12 = vsel %vm317_vm1, %v379_v2, 0.0  ;;  %v357_v30 = vsel %vm317_vm1, %v644_v23, 0.0 }
  0x98   : > { %330 = vst.msk [vmem:[%s631_s25 + $0x60] sm:$0xff] %vm317_vm1, %v644_v23  ;;  %v388_v33 = vsel %vm317_vm1, %v372_v27, 0.0  ;;  %v396_v60 = vsel %vm317_vm1, %v376_v50, 0.0 }
  0x99   : > { %v389_v39 = vadd.f32 %v388_v33, %v387_v36 }
  0x9c   : > { %v651_v24 = vpop.f32.mrf.mxu2 }
  0x9d   : > { %v275_v25 = vpop.f32.mrf.mxu0  ;;  %v287_v26 = vpop.f32.mrf.mxu1  ;;  %327 = vst.msk [vmem:[%s631_s25 + $0x48] sm:$0xff] %vm317_vm1, %v651_v24  ;;  %v380_v9 = vmul.f32 %v651_v24, %v651_v24  ;;  %v351_v13 = vsel %vm317_vm1, %v651_v24, 0.0 }
  0x9e   : > { %320 = vst.msk [vmem:[%s631_s25 + $0x10] sm:$0xff] %vm317_vm1, %v275_v25  ;;  %v658_v28 = vpop.f32.mrf.mxu3  ;;  %v373_v31 = vmul.f32 %v275_v25, %v275_v25  ;;  %v337_v34 = vsel %vm317_vm1, %v275_v25, 0.0  ;;  %v377_v56 = vmul.f32 %v287_v26, %v287_v26  ;;  %v345_v61 = vsel %vm317_vm1, %v287_v26, 0.0 }
  0x9f   : > { %324 = vst.msk [vmem:[%s631_s25 + $0x30] sm:$0xff] %vm317_vm1, %v287_v26  ;;  %v338_v40 = vadd.f32 %v337_v34, %v336_v35  ;;  %v404_v18 = vsel %vm317_vm1, %v380_v9, 0.0  ;;  %v383_v25 = vmul.f32 %v644_v23, %v644_v23  ;;  %v359_v35 = vsel %vm317_vm1, %v658_v28, 0.0 }
  0xa0   : > { %331 = vst.msk [vmem:[%s631_s25 + $0x68] sm:$0xff] %vm317_vm1, %v658_v28  ;;  %v390_v37 = vsel %vm317_vm1, %v373_v31, 0.0  ;;  %v398_v3 = vsel %vm317_vm1, %v377_v56, 0.0  ;;  %v384_v31 = vmul.f32 %v658_v28, %v658_v28 }
  0xa1   : > { %v391_v47 = vadd.f32 %v390_v37, %v389_v39  ;;  %v410_v34 = vsel %vm317_vm1, %v383_v25, 0.0 }
  0xa4   : > { %v299_v38 = vpop.f32.mrf.mxu2 }
  0xa5   : > { %v278_v41 = vpop.f32.mrf.mxu0  ;;  %v290_v42 = vpop.f32.mrf.mxu1  ;;  %328 = vst.msk [vmem:[%s631_s25 + $0x50] sm:$0xff] %vm317_vm1, %v299_v38  ;;  %v381_v14 = vmul.f32 %v299_v38, %v299_v38  ;;  %v353_v19 = vsel %vm317_vm1, %v299_v38, 0.0 }
  0xa6   : > { %321 = vst.msk [vmem:[%s631_s25 + $0x18] sm:$0xff] %vm317_vm1, %v278_v41  ;;  %v339_v44 = vsel %vm317_vm1, %v278_v41, 0.0  ;;  %v374_v45 = vmul.f32 %v278_v41, %v278_v41  ;;  %v311_v46 = vpop.f32.mrf.mxu3  ;;  %v378_v57 = vmul.f32 %v290_v42, %v290_v42  ;;  %v347_v62 = vsel %vm317_vm1, %v290_v42, 0.0 }
  0xa7   : > { %v340_v48 = vadd.f32 %v339_v44, %v338_v40  ;;  %325 = vst.msk [vmem:[%s631_s25 + $0x38] sm:$0xff] %vm317_vm1, %v290_v42  ;;  %v406_v26 = vsel %vm317_vm1, %v381_v14, 0.0  ;;  %v385_v36 = vmul.f32 %v311_v46, %v311_v46  ;;  %v412_v40 = vsel %vm317_vm1, %v384_v31, 0.0 }
  0xa8   : > { %v392_v51 = vsel %vm317_vm1, %v374_v45, 0.0  ;;  %332 = vst.msk [vmem:[%s631_s25 + $0x70] sm:$0xff] %vm317_vm1, %v311_v46  ;;  %v400_v4 = vsel %vm317_vm1, %v378_v57, 0.0  ;;  %v361_v23 = vsel %vm317_vm1, %v311_v46, 0.0 }
  0xa9   : > { %v342_v52 = vadd.f32 %v341_v49, %v340_v48  ;;  %v393_v53 = vadd.f32 %v392_v51, %v391_v47  ;;  %v414_v44 = vsel %vm317_vm1, %v385_v36, 0.0 }
  0xab   : > { %v395_v58 = vadd.f32 %v394_v54, %v393_v53  ;;  %v344_v59 = vadd.f32 %v343_v55, %v342_v52 }
  0xac   : > { %v302_v63 = vpop.f32.mrf.mxu2 }
  0xad   : > { %v346_v0 = vadd.f32 %v345_v61, %v344_v59  ;;  %v397_v1 = vadd.f32 %v396_v60, %v395_v58  ;;  %329 = vst.msk [vmem:[%s631_s25 + $0x58] sm:$0xff] %vm317_vm1, %v302_v63  ;;  %v382_v15 = vmul.f32 %v302_v63, %v302_v63  ;;  %v355_v20 = vsel %vm317_vm1, %v302_v63, 0.0 }
  0xae   : > { %v314_v5 = vpop.f32.mrf.mxu3 }
  0xaf   : > { %v399_v6 = vadd.f32 %v398_v3, %v397_v1  ;;  %v348_v7 = vadd.f32 %v347_v62, %v346_v0  ;;  %333 = vst.msk [vmem:[%s631_s25 + $0x78] sm:$0xff] %vm317_vm1, %v314_v5  ;;  %v408_v27 = vsel %vm317_vm1, %v382_v15, 0.0  ;;  %v386_v37 = vmul.f32 %v314_v5, %v314_v5 }
  0xb0   : > { %v363_v41 = vsel %vm317_vm1, %v314_v5, 0.0 }
  0xb1   : > { %v350_v10 = vadd.f32 %v349_v8, %v348_v7  ;;  %v401_v11 = vadd.f32 %v400_v4, %v399_v6  ;;  %v416_v45 = vsel %vm317_vm1, %v386_v37, 0.0 }
  0xb3   : > { %v403_v16 = vadd.f32 %v402_v12, %v401_v11  ;;  %v352_v17 = vadd.f32 %v351_v13, %v350_v10 }
  0xb5   : > { %v354_v21 = vadd.f32 %v353_v19, %v352_v17  ;;  %v405_v22 = vadd.f32 %v404_v18, %v403_v16 }
  0xb7   : > { %v407_v24 = vadd.f32 %v406_v26, %v405_v22  ;;  %v356_v29 = vadd.f32 %v355_v20, %v354_v21 }
  0xb9   : > { %v358_v32 = vadd.f32 %v357_v30, %v356_v29  ;;  %v409_v33 = vadd.f32 %v408_v27, %v407_v24 }
  0xbb   : > { %v411_v38 = vadd.f32 %v410_v34, %v409_v33  ;;  %v360_v39 = vadd.f32 %v359_v35, %v358_v32 }
  0xbd   : > { %v362_v42 = vadd.f32 %v361_v23, %v360_v39  ;;  %v413_v43 = vadd.f32 %v412_v40, %v411_v38 }
  0xbf   : > { %v415_v47 = vadd.f32 %v414_v44, %v413_v43  ;;  %v364_v28 = vadd.f32 %v363_v41, %v362_v42 }
  0xc1   : > { %v365_v48 = vrot.slane %v364_v28, 4  ;;  %v417_v49 = vadd.f32 %v416_v45, %v415_v47 }
  0xc3   : > { %v366_v50 = vadd.f32 %v365_v48, %v364_v28  ;;  %v418_v51 = vrot.slane %v417_v49, 4 }
  0xc5   : > { %v367_v52 = vrot.slane %v366_v50, 2  ;;  %v419_v53 = vadd.f32 %v418_v51, %v417_v49 }
  0xc7   : > { %v368_v54 = vadd.f32 %v367_v52, %v366_v50  ;;  %v420_v46 = vrot.slane %v419_v53, 2 }
  0xc9   : > { %v369_v55 = vrot.slane %v368_v54, 1  ;;  %v421_v56 = vadd.f32 %v420_v46, %v419_v53 }
  0xcb   : > { %v422_v57 = vrot.slane %v421_v56, 1  ;;  %v370_v58 = vadd.f32 %v369_v55, %v368_v54 }
  0xcd   : > { %v423_v59 = vadd.f32 %v422_v57, %v421_v56 }
  0xcf   : > { %v425_v60 = vsel %vm424_vm2, %v370_v58, %v423_v59 }
  0xd0   : > { %427 = vst.msk [vmem:[%s184_s29] sm:$0x3] %vm426_vm3, %v425_v60 }
  0xd1 PF: > { %s14_s12 = sadd.s32 1, %s563_s12  }
  0xd2   : > { %p11_p5 = scmp.ge.s32.totalorder %s14_s12, 6  }
  0xd4   :  { %13 = sbr.rel (!%p11_p5) target bundleno = 1 (0x1), region = 70 }

// kernel: residual_block_forward.9
= control target key start
LH: loop header
LB: loop body
LE: loop exit
PB: predicated region body
PF: predicated region fallthrough
CT: control target
= control target key end

     0   :  { %s500_s15 = smov 0   ;;  %s637_s0 = inlined_call_operand.vmem [shape: f32[512,16], index: 0, kind: input, shape index: {}]   ;;  %s638_s1 = inlined_call_operand.vmem [shape: f32[1,16], index: 1, kind: input, shape index: {}]   ;;  %s639_s2 = inlined_call_operand.vmem [shape: f32[1,16], index: 2, kind: input, shape index: {}]   ;;  %s640_s3 = inlined_call_operand.vmem [shape: f32[512,16], index: 3, kind: input, shape index: {}]   ;;  %s641_s4 = inlined_call_operand.vmem [shape: f32[512,16], index: 4, kind: output, shape index: {}]  }
   0x1 LB: > { %s444_s16 = sadd.s32 4294967295, %s473_s15   ;;  %p448_p0 = scmp.ge.s32.totalorder %s473_s15, 1  ;;  %s473_s15 = sphi %s500_s15, %s14_s15  }
   0x2   : > { %p174_p1 = scmp.lt.s32.totalorder %s473_s15, 5 }
   0x4   : > { %p175_p2 = pnand %p448_p0, %p174_p1 }
   0x5   : > { %s449_s17 = sshll.u32 (!%p175_p2), %s444_s16, 4 }
   0x6   : > { %178 = sbr.rel (%p175_p2) target bundleno = 46 (0x2e), region = 36  ;;  %p206_p3 = scmp.lt.s32.totalorder (!%p175_p2), %s449_s17, 63 }
   0xb   : > { %s643_s17 = smov (!%p206_p3, %s449_s17), 63  ;;  %v511_v0 = vld [vmem:[%s638_s1] ss:$0 sm:$0xff]  ;;  %vm359_vm0 = vcmask 130048  }
   0xc   : > { %s513_s20 = sshll.u32 %s643_s17, 3  ;;  %v524_v1 = vld [vmem:[%s639_s2] ss:$0 sm:$0xff] }
   0xd   : > { %s519_s23 = scalar_lea.vmem %s637_s0, %s513_s20  ;;  %s534_s28 = scalar_lea.vmem %s640_s3, %s513_s20 }
   0xe   : > { %v239_v2 = vld [vmem:[%s519_s23] sm:$0xff]  ;;  %v240_v4 = vld [vmem:[%s519_s23 + $0x8] sm:$0xff]  ;;  %v241_v5 = vld [vmem:[%s519_s23 + $0x10] sm:$0xff]  ;;  %s557_s5 = scalar_lea.vmem %s641_s4, %s513_s20 }
   0xf   : > { %v260_v3 = vmul.f32 %v511_v0, %v239_v2  ;;  %v261_v6 = vmul.f32 %v511_v0, %v240_v4  ;;  %v262_v7 = vmul.f32 %v511_v0, %v241_v5  ;;  %v242_v8 = vld [vmem:[%s519_s23 + $0x18] sm:$0xff]  ;;  %v243_v11 = vld [vmem:[%s519_s23 + $0x20] sm:$0xff]  ;;  %v244_v12 = vld [vmem:[%s519_s23 + $0x28] sm:$0xff] }
  0x10   : > { %v263_v10 = vmul.f32 %v511_v0, %v242_v8  ;;  %v264_v15 = vmul.f32 %v511_v0, %v243_v11  ;;  %v265_v16 = vmul.f32 %v511_v0, %v244_v12  ;;  %v245_v17 = vld [vmem:[%s519_s23 + $0x30] sm:$0xff]  ;;  %v223_v18 = vld [vmem:[%s534_s28] sm:$0xff]  ;;  %v224_v20 = vld [vmem:[%s534_s28 + $0x8] sm:$0xff] }
  0x11   : > { %v279_v9 = vadd.f32 %v524_v1, %v260_v3  ;;  %v280_v13 = vadd.f32 %v524_v1, %v261_v6  ;;  %v281_v14 = vadd.f32 %v524_v1, %v262_v7  ;;  %v225_v21 = vld [vmem:[%s534_s28 + $0x10] sm:$0xff]  ;;  %v266_v23 = vmul.f32 %v511_v0, %v245_v17  ;;  %v226_v27 = vld [vmem:[%s534_s28 + $0x18] sm:$0xff]  ;;  %v227_v33 = vld [vmem:[%s534_s28 + $0x20] sm:$0xff] }
  0x12   : > { %v282_v22 = vadd.f32 %v524_v1, %v263_v10  ;;  %v283_v29 = vadd.f32 %v524_v1, %v264_v15  ;;  %v284_v34 = vadd.f32 %v524_v1, %v265_v16  ;;  %v246_v35 = vld [vmem:[%s519_s23 + $0x38] sm:$0xff]  ;;  %v247_v36 = vld [vmem:[%s519_s23 + $0x40] sm:$0xff]  ;;  %v248_v37 = vld [vmem:[%s519_s23 + $0x48] sm:$0xff] }
  0x13   : > { %vm295_vm1 = vcmp.gt.f32.partialorder %v279_v9, 0.0  ;;  %v311_v19 = vmul.f32 0.1, %v279_v9  ;;  %vm296_vm2 = vcmp.gt.f32.partialorder %v280_v13, 0.0  ;;  %v312_v24 = vmul.f32 0.1, %v280_v13 }
  0x14   : > { %vm297_vm3 = vcmp.gt.f32.partialorder %v281_v14, 0.0  ;;  %v313_v25 = vmul.f32 0.1, %v281_v14  ;;  %vm298_vm4 = vcmp.gt.f32.partialorder %v282_v22, 0.0  ;;  %v314_v28 = vmul.f32 0.1, %v282_v22 }
  0x15   : > { %v327_v26 = vsel %vm295_vm1, %v279_v9, %v311_v19  ;;  %v328_v31 = vsel %vm296_vm2, %v280_v13, %v312_v24  ;;  %vm299_vm5 = vcmp.gt.f32.partialorder %v283_v29, 0.0  ;;  %v228_v41 = vld [vmem:[%s534_s28 + $0x28] sm:$0xff]  ;;  %v249_v42 = vld [vmem:[%s519_s23 + $0x50] sm:$0xff]  ;;  %v250_v43 = vld [vmem:[%s519_s23 + $0x58] sm:$0xff]  ;;  %v315_v45 = vmul.f32 0.1, %v283_v29 }
  0x16   : > { %v343_v30 = vadd.f32 %v327_v26, %v223_v18  ;;  %v329_v32 = vsel %vm297_vm3, %v281_v14, %v313_v25  ;;  %v344_v38 = vadd.f32 %v328_v31, %v224_v20  ;;  %v330_v40 = vsel %vm298_vm4, %v282_v22, %v314_v28  ;;  %v251_v55 = vld [vmem:[%s519_s23 + $0x60] sm:$0xff]  ;;  %v252_v56 = vld [vmem:[%s519_s23 + $0x68] sm:$0xff]  ;;  %v229_v59 = vld [vmem:[%s534_s28 + $0x30] sm:$0xff] }
  0x17   : > { %v345_v39 = vadd.f32 %v329_v32, %v225_v21  ;;  %v346_v44 = vadd.f32 %v330_v40, %v226_v27  ;;  %vm300_vm6 = vcmp.gt.f32.partialorder %v284_v34, 0.0  ;;  %v316_v46 = vmul.f32 0.1, %v284_v34  ;;  %v230_v4 = vld [vmem:[%s534_s28 + $0x38] sm:$0xff]  ;;  %v231_v5 = vld [vmem:[%s534_s28 + $0x40] sm:$0xff]  ;;  %v232_v6 = vld [vmem:[%s534_s28 + $0x48] sm:$0xff] }
  0x18   : > { %360 = vst.msk [vmem:[%s557_s5] sm:$0xff] %vm359_vm0, %v343_v30  ;;  %v285_v47 = vadd.f32 %v524_v1, %v266_v23  ;;  %v267_v48 = vmul.f32 %v511_v0, %v246_v35  ;;  %v268_v49 = vmul.f32 %v511_v0, %v247_v36  ;;  %v269_v50 = vmul.f32 %v511_v0, %v248_v37  ;;  %v233_v12 = vld [vmem:[%s534_s28 + $0x50] sm:$0xff]  ;;  %v234_v13 = vld [vmem:[%s534_s28 + $0x58] sm:$0xff]  ;;  %v235_v31 = vld [vmem:[%s534_s28 + $0x60] sm:$0xff] }
  0x19   : > { %361 = vst.msk [vmem:[%s557_s5 + $0x8] sm:$0xff] %vm359_vm0, %v344_v38  ;;  %v331_v51 = vsel %vm299_vm5, %v283_v29, %v315_v45  ;;  %v332_v52 = vsel %vm300_vm6, %v284_v34, %v316_v46  ;;  %v270_v53 = vmul.f32 %v511_v0, %v249_v42  ;;  %v271_v54 = vmul.f32 %v511_v0, %v250_v43  ;;  %v253_v23 = vld [vmem:[%s519_s23 + $0x70] sm:$0xff]  ;;  %v254_v24 = vld [vmem:[%s519_s23 + $0x78] sm:$0xff]  ;;  %v236_v38 = vld [vmem:[%s534_s28 + $0x68] sm:$0xff] }
  0x1a   : > { %362 = vst.msk [vmem:[%s557_s5 + $0x10] sm:$0xff] %vm359_vm0, %v345_v39  ;;  %v347_v57 = vadd.f32 %v331_v51, %v227_v33  ;;  %v348_v58 = vadd.f32 %v332_v52, %v228_v41  ;;  %vm301_vm7 = vcmp.gt.f32.partialorder %v285_v47, 0.0  ;;  %v317_v60 = vmul.f32 0.1, %v285_v47  ;;  %v237_v42 = vld [vmem:[%s534_s28 + $0x70] sm:$0xff]  ;;  %v238_v45 = vld [vmem:[%s534_s28 + $0x78] sm:$0xff] }
  0x1b   : > { %363 = vst.msk [vmem:[%s557_s5 + $0x18] sm:$0xff] %vm359_vm0, %v346_v44  ;;  %v286_v61 = vadd.f32 %v524_v1, %v267_v48  ;;  %v287_v62 = vadd.f32 %v524_v1, %v268_v49  ;;  %v288_v63 = vadd.f32 %v524_v1, %v269_v50  ;;  %v289_v2 = vadd.f32 %v524_v1, %v270_v53 }
  0x1c   : > { %364 = vst.msk [vmem:[%s557_s5 + $0x20] sm:$0xff] %vm359_vm0, %v347_v57  ;;  %v333_v3 = vsel %vm301_vm7, %v285_v47, %v317_v60  ;;  %v290_v7 = vadd.f32 %v524_v1, %v271_v54  ;;  %v272_v8 = vmul.f32 %v511_v0, %v251_v55  ;;  %v273_v9 = vmul.f32 %v511_v0, %v252_v56 }
  0x1d   : > { %365 = vst.msk [vmem:[%s557_s5 + $0x28] sm:$0xff] %vm359_vm0, %v348_v58  ;;  %v349_v10 = vadd.f32 %v333_v3, %v229_v59  ;;  %vm302_vm8 = vcmp.gt.f32.partialorder %v286_v61, 0.0  ;;  %v318_v11 = vmul.f32 0.1, %v286_v61  ;;  %vm303_vm9 = vcmp.gt.f32.partialorder %v287_v62, 0.0 }
  0x1e   : > { %v319_v14 = vmul.f32 0.1, %v287_v62  ;;  %vm304_vm10 = vcmp.gt.f32.partialorder %v288_v63, 0.0  ;;  %v320_v15 = vmul.f32 0.1, %v288_v63  ;;  %vm305_vm11 = vcmp.gt.f32.partialorder %v289_v2, 0.0 }
  0x1f   : > { %366 = vst.msk [vmem:[%s557_s5 + $0x30] sm:$0xff] %vm359_vm0, %v349_v10  ;;  %v334_v16 = vsel %vm302_vm8, %v286_v61, %v318_v11  ;;  %v321_v17 = vmul.f32 0.1, %v289_v2  ;;  %vm306_vm12 = vcmp.gt.f32.partialorder %v290_v7, 0.0  ;;  %v322_v18 = vmul.f32 0.1, %v290_v7 }
  0x20   : > { %v350_v19 = vadd.f32 %v334_v16, %v230_v4  ;;  %v335_v20 = vsel %vm303_vm9, %v287_v62, %v319_v14  ;;  %v336_v21 = vsel %vm304_vm10, %v288_v63, %v320_v15  ;;  %v291_v22 = vadd.f32 %v524_v1, %v272_v8 }
  0x21   : > { %v351_v25 = vadd.f32 %v335_v20, %v231_v5  ;;  %v352_v26 = vadd.f32 %v336_v21, %v232_v6  ;;  %v337_v27 = vsel %vm305_vm11, %v289_v2, %v321_v17  ;;  %v338_v28 = vsel %vm306_vm12, %v290_v7, %v322_v18 }
  0x22   : > { %367 = vst.msk [vmem:[%s557_s5 + $0x38] sm:$0xff] %vm359_vm0, %v350_v19  ;;  %v353_v29 = vadd.f32 %v337_v27, %v233_v12  ;;  %v354_v30 = vadd.f32 %v338_v28, %v234_v13  ;;  %vm307_vm13 = vcmp.gt.f32.partialorder %v291_v22, 0.0  ;;  %v323_v32 = vmul.f32 0.1, %v291_v22 }
  0x23   : > { %368 = vst.msk [vmem:[%s557_s5 + $0x40] sm:$0xff] %vm359_vm0, %v351_v25  ;;  %v292_v33 = vadd.f32 %v524_v1, %v273_v9  ;;  %v274_v34 = vmul.f32 %v511_v0, %v253_v23  ;;  %v275_v35 = vmul.f32 %v511_v0, %v254_v24 }
  0x24   : > { %369 = vst.msk [vmem:[%s557_s5 + $0x48] sm:$0xff] %vm359_vm0, %v352_v26  ;;  %v339_v36 = vsel %vm307_vm13, %v291_v22, %v323_v32 }
  0x25   : > { %370 = vst.msk [vmem:[%s557_s5 + $0x50] sm:$0xff] %vm359_vm0, %v353_v29  ;;  %v355_v37 = vadd.f32 %v339_v36, %v235_v31  ;;  %vm308_vm14 = vcmp.gt.f32.partialorder %v292_v33, 0.0  ;;  %v324_v39 = vmul.f32 0.1, %v292_v33  ;;  %v293_v40 = vadd.f32 %v524_v1, %v274_v34 }
  0x26   : > { %371 = vst.msk [vmem:[%s557_s5 + $0x58] sm:$0xff] %vm359_vm0, %v354_v30  ;;  %v294_v41 = vadd.f32 %v524_v1, %v275_v35 }
  0x27   : > { %372 = vst.msk [vmem:[%s557_s5 + $0x60] sm:$0xff] %vm359_vm0, %v355_v37  ;;  %v340_v0 = vsel %vm308_vm14, %v292_v33, %v324_v39  ;;  %vm309_vm15 = vcmp.gt.f32.partialorder %v293_v40, 0.0  ;;  %v325_v43 = vmul.f32 0.1, %v293_v40 }
  0x28   : > { %v356_v44 = vadd.f32 %v340_v0, %v236_v38  ;;  %vm310_vm1 = vcmp.gt.f32.partialorder %v294_v41, 0.0  ;;  %v326_v46 = vmul.f32 0.1, %v294_v41 }
  0x29   : > { %v341_v47 = vsel %vm309_vm15, %v293_v40, %v325_v43 }
  0x2a   : > { %373 = vst.msk [vmem:[%s557_s5 + $0x68] sm:$0xff] %vm359_vm0, %v356_v44  ;;  %v357_v48 = vadd.f32 %v341_v47, %v237_v42  ;;  %v342_v49 = vsel %vm310_vm1, %v294_v41, %v326_v46 }
  0x2b   : > { %v358_v50 = vadd.f32 %v342_v49, %v238_v45 }
  0x2c   : > { %374 = vst.msk [vmem:[%s557_s5 + $0x70] sm:$0xff] %vm359_vm0, %v357_v48 }
  0x2d   : > { %375 = vst.msk [vmem:[%s557_s5 + $0x78] sm:$0xff] %vm359_vm0, %v358_v50 }
  0x2e PF: > { %s14_s15 = sadd.s32 1, %s473_s15  }
  0x2f   : > { %p11_p4 = scmp.ge.s32.totalorder %s14_s15, 6  }
  0x31   :  { %13 = sbr.rel (!%p11_p4) target bundleno = 1 (0x1), region = 69 }

// kernel: residual_block_forward.7
= control target key start
LH: loop header
LB: loop body
LE: loop exit
PB: predicated region body
PF: predicated region fallthrough
CT: control target
= control target key end

     0   :  { %s936_s24 = smov 0   ;;  %s1191_s0 = inlined_call_operand.vmem [shape: f32[512,16], index: 0, kind: input, shape index: {}]   ;;  %s1192_s1 = inlined_call_operand.vmem [shape: f32[1,16], index: 1, kind: input, shape index: {}]   ;;  %s1193_s2 = inlined_call_operand.vmem [shape: f32[1,16], index: 2, kind: input, shape index: {}]   ;;  %s1194_s3 = inlined_call_operand.vmem [shape: f32[512,16], index: 3, kind: input, shape index: {}]   ;;  %s1195_s4 = inlined_call_operand.vmem [shape: f32[16,8], index: 4, kind: input, shape index: {}]   ;;  %s1196_s5 = inlined_call_operand.vmem [shape: f32[512,16], index: 5, kind: output, shape index: {0}]   ;;  %s1197_s6 = inlined_call_operand.vmem [shape: f32[512,8], index: 6, kind: output, shape index: {1}]   ;;  %s1198_s7 = inlined_call_operand.vmem [shape: f32[4,2,8], index: 7, kind: output, shape index: {2}]  }
   0x1 LB: > { %s942_s25 = sadd.s32 4294967295, %s894_s24   ;;  %p844_p0 = scmp.ge.s32.totalorder %s894_s24, 1  ;;  %s894_s24 = sphi %s936_s24, %s18_s24  }
   0x2   : > { %p254_p1 = scmp.lt.s32.totalorder %s894_s24, 5 }
   0x4   : > { %p255_p2 = pnand %p844_p0, %p254_p1 }
   0x5   : > { %s845_s30 = sshll.u32 (!%p255_p2), %s942_s25, 4  ;;  %p324_p4 = scmp.lt.s32.totalorder (!%p255_p2), %s942_s25, 3 }
   0x6   : > { %258 = sbr.rel (%p255_p2) target bundleno = 217 (0xd9), region = 40  ;;  %p301_p3 = scmp.lt.s32.totalorder (!%p255_p2), %s845_s30, 63 }
   0xb   : > { %v482_v0 = vld [vmem:[%s1195_s4 + $0x8] sm:$0xff]  ;;  %v481_v1 = vld [vmem:[%s1195_s4] sm:$0xff]  ;;  %s1200_s30 = smov (!%p301_p3, %s845_s30), 63  ;;  %vm464_vm0 = vcmask 130048   ;;  %s1202_s25 = smov (!%p324_p4, %s942_s25), 3 }
   0xc   : > { %545 = vmatpush.msra.mxu0 %v482_v0  ;;  %872 = vmatpush.msra.mxu1 %v482_v0  ;;  %v956_v2 = vld [vmem:[%s1192_s1] ss:$0 sm:$0xff]  ;;  %s958_s10 = sshll.u32 %s1200_s30, 3  ;;  %s853_s27 = sshll.u32 %s1202_s25, 1 }
   0xd   : > { %873 = vmatpush.msra.mxu2 %v482_v0  ;;  %874 = vmatpush.msra.mxu3 %v482_v0  ;;  %s964_s13 = scalar_lea.vmem %s1191_s0, %s958_s10  ;;  %v969_v3 = vld [vmem:[%s1193_s2] ss:$0 sm:$0xff]  ;;  %s979_s18 = scalar_lea.vmem %s1194_s3, %s958_s10 }
   0xe   : > { %546 = vmatpush.msra.mxu0 %v481_v1  ;;  %875 = vmatpush.msra.mxu1 %v481_v1  ;;  %v344_v4 = vld [vmem:[%s964_s13] sm:$0xff]  ;;  %v345_v6 = vld [vmem:[%s964_s13 + $0x8] sm:$0xff]  ;;  %v346_v13 = vld [vmem:[%s964_s13 + $0x10] sm:$0xff]  ;;  %s1002_s21 = scalar_lea.vmem %s1196_s5, %s958_s10  ;;  %s1105_s26 = scalar_lea.vmem %s1197_s6, %s958_s10 }
   0xf   : > { %876 = vmatpush.msra.mxu2 %v481_v1  ;;  %877 = vmatpush.msra.mxu3 %v481_v1  ;;  %v365_v5 = vmul.f32 %v956_v2, %v344_v4  ;;  %v348_v7 = vld [vmem:[%s964_s13 + $0x20] sm:$0xff]  ;;  %v366_v8 = vmul.f32 %v956_v2, %v345_v6  ;;  %v349_v14 = vld [vmem:[%s964_s13 + $0x28] sm:$0xff]  ;;  %v367_v17 = vmul.f32 %v956_v2, %v346_v13  ;;  %v347_v37 = vld [vmem:[%s964_s13 + $0x18] sm:$0xff]  ;;  %s327_s30 = scalar_lea.vmem %s1198_s7, %s853_s27 }
  0x10   : > { %v369_v9 = vmul.f32 %v956_v2, %v348_v7  ;;  %v352_v10 = vld [vmem:[%s964_s13 + $0x40] sm:$0xff]  ;;  %v370_v18 = vmul.f32 %v956_v2, %v349_v14  ;;  %v353_v19 = vld [vmem:[%s964_s13 + $0x48] sm:$0xff]  ;;  %v330_v41 = vld [vmem:[%s979_s18 + $0x10] sm:$0xff]  ;;  %v368_v49 = vmul.f32 %v956_v2, %v347_v37 }
  0x11   : > { %v384_v11 = vadd.f32 %v969_v3, %v365_v5  ;;  %v373_v12 = vmul.f32 %v956_v2, %v352_v10  ;;  %v385_v15 = vadd.f32 %v969_v3, %v366_v8  ;;  %v328_v20 = vld [vmem:[%s979_s18] sm:$0xff]  ;;  %v329_v22 = vld [vmem:[%s979_s18 + $0x8] sm:$0xff]  ;;  %v374_v25 = vmul.f32 %v956_v2, %v353_v19  ;;  %v350_v43 = vld [vmem:[%s964_s13 + $0x30] sm:$0xff] }
  0x12   : > { %v388_v16 = vadd.f32 %v969_v3, %v369_v9  ;;  %v332_v23 = vld [vmem:[%s979_s18 + $0x20] sm:$0xff]  ;;  %v386_v31 = vadd.f32 %v969_v3, %v367_v17  ;;  %v389_v35 = vadd.f32 %v969_v3, %v370_v18  ;;  %v333_v42 = vld [vmem:[%s979_s18 + $0x28] sm:$0xff]  ;;  %v354_v50 = vld [vmem:[%s964_s13 + $0x50] sm:$0xff]  ;;  %v371_v53 = vmul.f32 %v956_v2, %v350_v43 }
  0x13   : > { %vm400_vm1 = vcmp.gt.f32.partialorder %v384_v11, 0.0  ;;  %v416_v21 = vmul.f32 0.1, %v384_v11  ;;  %v392_v24 = vadd.f32 %v969_v3, %v373_v12  ;;  %vm401_vm2 = vcmp.gt.f32.partialorder %v385_v15, 0.0  ;;  %v336_v29 = vld [vmem:[%s979_s18 + $0x40] sm:$0xff]  ;;  %v357_v54 = vld [vmem:[%s964_s13 + $0x68] sm:$0xff] }
  0x14   : > { %v417_v26 = vmul.f32 0.1, %v385_v15  ;;  %vm404_vm3 = vcmp.gt.f32.partialorder %v388_v16, 0.0  ;;  %v420_v27 = vmul.f32 0.1, %v388_v16  ;;  %v356_v36 = vld [vmem:[%s964_s13 + $0x60] sm:$0xff]  ;;  %v393_v47 = vadd.f32 %v969_v3, %v374_v25 }
  0x15   : > { %v432_v28 = vsel %vm400_vm1, %v384_v11, %v416_v21  ;;  %vm408_vm4 = vcmp.gt.f32.partialorder %v392_v24, 0.0  ;;  %v424_v30 = vmul.f32 0.1, %v392_v24  ;;  %vm402_vm5 = vcmp.gt.f32.partialorder %v386_v31, 0.0  ;;  %v351_v55 = vld [vmem:[%s964_s13 + $0x38] sm:$0xff]  ;;  %v337_v59 = vld [vmem:[%s979_s18 + $0x48] sm:$0xff] }
  0x16   : > { %v448_v32 = vadd.f32 %v432_v28, %v328_v20  ;;  %v433_v33 = vsel %vm401_vm2, %v385_v15, %v417_v26  ;;  %v436_v34 = vsel %vm404_vm3, %v388_v16, %v420_v27  ;;  %v418_v45 = vmul.f32 0.1, %v386_v31  ;;  %v355_v56 = vld [vmem:[%s964_s13 + $0x58] sm:$0xff]  ;;  %v340_v4 = vld [vmem:[%s979_s18 + $0x60] sm:$0xff]  ;;  %v334_v12 = vld [vmem:[%s979_s18 + $0x30] sm:$0xff] }
  0x17   : > { %v449_v38 = vadd.f32 %v433_v33, %v329_v22  ;;  %v452_v39 = vadd.f32 %v436_v34, %v332_v23  ;;  %v440_v40 = vsel %vm408_vm4, %v392_v24, %v424_v30  ;;  %vm405_vm6 = vcmp.gt.f32.partialorder %v389_v35, 0.0  ;;  %v331_v10 = vld [vmem:[%s979_s18 + $0x18] sm:$0xff]  ;;  %v358_v21 = vld [vmem:[%s964_s13 + $0x70] sm:$0xff]  ;;  %v341_v27 = vld [vmem:[%s979_s18 + $0x68] sm:$0xff] }
  0x18   : > { %465 = vst.msk [vmem:[%s1002_s21] sm:$0xff] %vm464_vm0, %v448_v32  ;;  %854 = vmatmul.msk.f32.vlgmr.msra.gmra.mxu0 %vm464_vm0, %v448_v32  ;;  %v456_v44 = vadd.f32 %v440_v40, %v336_v29  ;;  %v421_v46 = vmul.f32 0.1, %v389_v35  ;;  %v377_v48 = vmul.f32 %v956_v2, %v356_v36  ;;  %v434_v51 = vsel %vm402_vm5, %v386_v31, %v418_v45  ;;  %v359_v22 = vld [vmem:[%s964_s13 + $0x78] sm:$0xff]  ;;  %v338_v25 = vld [vmem:[%s979_s18 + $0x50] sm:$0xff] }
  0x19   : > { %466 = vst.msk [vmem:[%s1002_s21 + $0x8] sm:$0xff] %vm464_vm0, %v449_v38  ;;  %858 = vmatmul.msk.f32.vlgmr.msra.gmra.mxu1 %vm464_vm0, %v452_v39  ;;  %v1032_v57 = vadd.f32 %v434_v51, %v330_v41  ;;  %vm409_vm7 = vcmp.gt.f32.partialorder %v393_v47, 0.0  ;;  %v425_v60 = vmul.f32 0.1, %v393_v47  ;;  %v387_v62 = vadd.f32 %v969_v3, %v368_v49  ;;  %v335_v32 = vld [vmem:[%s979_s18 + $0x38] sm:$0xff] }
  0x1a   : > { %469 = vst.msk [vmem:[%s1002_s21 + $0x20] sm:$0xff] %vm464_vm0, %v452_v39  ;;  %862 = vmatmul.msk.f32.vlgmr.msra.gmra.mxu2 %vm464_vm0, %v456_v44  ;;  %v437_v52 = vsel %vm405_vm6, %v389_v35, %v421_v46  ;;  %v396_v61 = vadd.f32 %v969_v3, %v377_v48  ;;  %v390_v63 = vadd.f32 %v969_v3, %v371_v53  ;;  %v339_v39 = vld [vmem:[%s979_s18 + $0x58] sm:$0xff]  ;;  %vm596_vm2 = vcmask 64512  }
  0x1b   : > { %473 = vst.msk [vmem:[%s1002_s21 + $0x40] sm:$0xff] %vm464_vm0, %v456_v44  ;;  %v453_v58 = vadd.f32 %v437_v52, %v333_v42  ;;  %v375_v0 = vmul.f32 %v956_v2, %v354_v50  ;;  %v441_v1 = vsel %vm409_vm7, %v393_v47, %v425_v60  ;;  %v378_v5 = vmul.f32 %v956_v2, %v357_v54  ;;  %v342_v44 = vld [vmem:[%s979_s18 + $0x70] sm:$0xff]  ;;  %v343_v47 = vld [vmem:[%s979_s18 + $0x78] sm:$0xff] }
  0x1c   : > { %467 = vst.msk [vmem:[%s1002_s21 + $0x10] sm:$0xff] %vm464_vm0, %v1032_v57  ;;  %v372_v6 = vmul.f32 %v956_v2, %v351_v55  ;;  %v376_v7 = vmul.f32 %v956_v2, %v355_v56  ;;  %v457_v8 = vadd.f32 %v441_v1, %v337_v59  ;;  %vm412_vm8 = vcmp.gt.f32.partialorder %v396_v61, 0.0 }
  0x1d   : > { %470 = vst.msk [vmem:[%s1002_s21 + $0x28] sm:$0xff] %vm464_vm0, %v453_v58  ;;  %v428_v9 = vmul.f32 0.1, %v396_v61  ;;  %vm403_vm9 = vcmp.gt.f32.partialorder %v387_v62, 0.0  ;;  %v419_v11 = vmul.f32 0.1, %v387_v62  ;;  %v394_v14 = vadd.f32 %v969_v3, %v375_v0 }
  0x1e   : > { %vm406_vm10 = vcmp.gt.f32.partialorder %v390_v63, 0.0  ;;  %v422_v13 = vmul.f32 0.1, %v390_v63  ;;  %474 = vst.msk [vmem:[%s1002_s21 + $0x48] sm:$0xff] %vm464_vm0, %v457_v8  ;;  %v397_v16 = vadd.f32 %v969_v3, %v378_v5  ;;  %v391_v17 = vadd.f32 %v969_v3, %v372_v6 }
  0x1f   : > { %v444_v15 = vsel %vm412_vm8, %v396_v61, %v428_v9  ;;  %v435_v19 = vsel %vm403_vm9, %v387_v62, %v419_v11  ;;  %vm410_vm11 = vcmp.gt.f32.partialorder %v394_v14, 0.0  ;;  %v426_v26 = vmul.f32 0.1, %v394_v14 }
  0x20   : > { %855 = vmatmul.msk.f32.gmra.mxu0 %vm464_vm0, %v449_v38  ;;  %v460_v18 = vadd.f32 %v444_v15, %v340_v4  ;;  %v438_v20 = vsel %vm406_vm10, %v390_v63, %v422_v13  ;;  %v451_v23 = vadd.f32 %v435_v19, %v331_v10  ;;  %vm413_vm12 = vcmp.gt.f32.partialorder %v397_v16, 0.0 }
  0x21   : > { %859 = vmatmul.msk.f32.gmra.mxu1 %vm464_vm0, %v453_v58  ;;  %v454_v24 = vadd.f32 %v438_v20, %v334_v12  ;;  %v429_v28 = vmul.f32 0.1, %v397_v16  ;;  %vm407_vm13 = vcmp.gt.f32.partialorder %v391_v17, 0.0  ;;  %v423_v29 = vmul.f32 0.1, %v391_v17 }
  0x22   : > { %863 = vmatmul.msk.f32.gmra.mxu2 %vm464_vm0, %v457_v8  ;;  %477 = vst.msk [vmem:[%s1002_s21 + $0x60] sm:$0xff] %vm464_vm0, %v460_v18  ;;  %866 = vmatmul.msk.f32.vlgmr.msra.gmra.mxu3 %vm464_vm0, %v460_v18  ;;  %v395_v30 = vadd.f32 %v969_v3, %v376_v7  ;;  %v442_v31 = vsel %vm410_vm11, %v394_v14, %v426_v26  ;;  %vm705_vm3 = vcmask 58368  }
  0x23   : > { %468 = vst.msk [vmem:[%s1002_s21 + $0x18] sm:$0xff] %vm464_vm0, %v451_v23  ;;  %v379_v33 = vmul.f32 %v956_v2, %v358_v21  ;;  %v380_v34 = vmul.f32 %v956_v2, %v359_v22  ;;  %v458_v35 = vadd.f32 %v442_v31, %v338_v25  ;;  %v445_v36 = vsel %vm413_vm12, %v397_v16, %v429_v28 }
  0x24   : > { %471 = vst.msk [vmem:[%s1002_s21 + $0x30] sm:$0xff] %vm464_vm0, %v454_v24  ;;  %v439_v37 = vsel %vm407_vm13, %v391_v17, %v423_v29  ;;  %vm411_vm14 = vcmp.gt.f32.partialorder %v395_v30, 0.0  ;;  %v461_v38 = vadd.f32 %v445_v36, %v341_v27  ;;  %v427_v40 = vmul.f32 0.1, %v395_v30 }
  0x25   : > { %v398_v41 = vadd.f32 %v969_v3, %v379_v33  ;;  %475 = vst.msk [vmem:[%s1002_s21 + $0x50] sm:$0xff] %vm464_vm0, %v458_v35  ;;  %v455_v42 = vadd.f32 %v439_v37, %v335_v32  ;;  %v399_v43 = vadd.f32 %v969_v3, %v380_v34 }
  0x26   : > { %478 = vst.msk [vmem:[%s1002_s21 + $0x68] sm:$0xff] %vm464_vm0, %v461_v38  ;;  %v443_v2 = vsel %vm411_vm14, %v395_v30, %v427_v40 }
  0x27   : > { %vm414_vm15 = vcmp.gt.f32.partialorder %v398_v41, 0.0  ;;  %v430_v45 = vmul.f32 0.1, %v398_v41  ;;  %472 = vst.msk [vmem:[%s1002_s21 + $0x38] sm:$0xff] %vm464_vm0, %v455_v42  ;;  %v459_v46 = vadd.f32 %v443_v2, %v339_v39  ;;  %vm415_vm1 = vcmp.gt.f32.partialorder %v399_v43, 0.0 }
  0x28   : > { %856 = vmatmul.msk.f32.gmra.mxu0 %vm464_vm0, %v1032_v57  ;;  %v431_v3 = vmul.f32 0.1, %v399_v43 }
  0x29   : > { %860 = vmatmul.msk.f32.gmra.mxu1 %vm464_vm0, %v454_v24  ;;  %v446_v48 = vsel %vm414_vm15, %v398_v41, %v430_v45  ;;  %476 = vst.msk [vmem:[%s1002_s21 + $0x58] sm:$0xff] %vm464_vm0, %v459_v46 }
  0x2a   : > { %864 = vmatmul.msk.f32.gmra.mxu2 %vm464_vm0, %v458_v35  ;;  %867 = vmatmul.msk.f32.gmra.mxu3 %vm464_vm0, %v461_v38  ;;  %v462_v49 = vadd.f32 %v446_v48, %v342_v44  ;;  %v447_v50 = vsel %vm415_vm1, %v399_v43, %v431_v3 }
  0x2b   : > { %v463_v51 = vadd.f32 %v447_v50, %v343_v47 }
  0x2c   : > { %479 = vst.msk [vmem:[%s1002_s21 + $0x70] sm:$0xff] %vm464_vm0, %v462_v49 }
  0x2d   : > { %480 = vst.msk [vmem:[%s1002_s21 + $0x78] sm:$0xff] %vm464_vm0, %v463_v51 }
  0x30   : > { %857 = vmatmul.msk.f32.gmra.mxu0 %vm464_vm0, %v451_v23 }
  0x31   : > { %861 = vmatmul.msk.f32.gmra.mxu1 %vm464_vm0, %v455_v42 }
  0x32   : > { %865 = vmatmul.msk.f32.gmra.mxu2 %vm464_vm0, %v459_v46  ;;  %868 = vmatmul.msk.f32.gmra.mxu3 %vm464_vm0, %v462_v49 }
  0x3a   : > { %869 = vmatmul.msk.f32.gmra.mxu3 %vm464_vm0, %v463_v51  ;;  %vm703_vm0 = vcmask 1040384  }
  0x95   : > { %v548_v52 = vpop.f32.mrf.mxu0 }
  0x96   : > { %597 = vst.msk [vmem:[%s1105_s26] sm:$0xff] %vm596_vm2, %v548_v52  ;;  %v560_v53 = vpop.f32.mrf.mxu1  ;;  %v650_v62 = vmul.f32 %v548_v52, %v548_v52  ;;  %v613_v1 = vsel %vm596_vm2, %v548_v52, 0.0 }
  0x97   : > { %601 = vst.msk [vmem:[%s1105_s26 + $0x20] sm:$0xff] %vm596_vm2, %v560_v53  ;;  %v654_v13 = vmul.f32 %v560_v53, %v560_v53  ;;  %v620_v20 = vsel %vm596_vm2, %v560_v53, 0.0 }
  0x98   : > { %v666_v7 = vsel %vm596_vm2, %v650_v62, 0.0 }
  0x99   : > { %v673_v25 = vsel %vm596_vm2, %v654_v13, 0.0 }
  0x9d   : > { %v551_v54 = vpop.f32.mrf.mxu0  ;;  %v1111_v55 = vpop.f32.mrf.mxu2 }
  0x9e   : > { %598 = vst.msk [vmem:[%s1105_s26 + $0x8] sm:$0xff] %vm596_vm2, %v551_v54  ;;  %v563_v56 = vpop.f32.mrf.mxu1  ;;  %v651_v59 = vmul.f32 %v551_v54, %v551_v54  ;;  %v614_v63 = vsel %vm596_vm2, %v551_v54, 0.0  ;;  %v658_v37 = vmul.f32 %v1111_v55, %v1111_v55  ;;  %v628_v43 = vsel %vm596_vm2, %v1111_v55, 0.0 }
  0x9f   : > { %602 = vst.msk [vmem:[%s1105_s26 + $0x28] sm:$0xff] %vm596_vm2, %v563_v56  ;;  %v615_v6 = vadd.f32 %v614_v63, %v613_v1  ;;  %v655_v21 = vmul.f32 %v563_v56, %v563_v56  ;;  %v622_v26 = vsel %vm596_vm2, %v563_v56, 0.0 }
  0xa0   : > { %605 = vst.msk [vmem:[%s1105_s26 + $0x40] sm:$0xff] %vm596_vm2, %v1111_v55  ;;  %v667_v4 = vsel %vm596_vm2, %v651_v59, 0.0  ;;  %v681_v46 = vsel %vm596_vm2, %v658_v37, 0.0 }
  0xa1   : > { %v668_v9 = vadd.f32 %v667_v4, %v666_v7  ;;  %v675_v31 = vsel %vm596_vm2, %v655_v21, 0.0 }
  0xa5   : > { %v554_v57 = vpop.f32.mrf.mxu0  ;;  %v575_v58 = vpop.f32.mrf.mxu2 }
  0xa6   : > { %599 = vst.msk [vmem:[%s1105_s26 + $0x10] sm:$0xff] %vm596_vm2, %v554_v57  ;;  %v566_v60 = vpop.f32.mrf.mxu1  ;;  %v1122_v61 = vpop.f32.mrf.mxu3  ;;  %v652_v0 = vmul.f32 %v554_v57, %v554_v57  ;;  %v616_v5 = vsel %vm596_vm2, %v554_v57, 0.0  ;;  %v659_v2 = vmul.f32 %v575_v58, %v575_v58  ;;  %v630_v47 = vsel %vm596_vm2, %v575_v58, 0.0 }
  0xa7   : > { %603 = vst.msk [vmem:[%s1105_s26 + $0x30] sm:$0xff] %vm596_vm2, %v566_v60  ;;  %v617_v10 = vadd.f32 %v616_v5, %v615_v6  ;;  %v656_v27 = vmul.f32 %v566_v60, %v566_v60  ;;  %v624_v32 = vsel %vm596_vm2, %v566_v60, 0.0  ;;  %v662_v56 = vmul.f32 %v1122_v61, %v1122_v61 }
  0xa8   : > { %606 = vst.msk [vmem:[%s1105_s26 + $0x48] sm:$0xff] %vm596_vm2, %v575_v58  ;;  %v669_v8 = vsel %vm596_vm2, %v652_v0, 0.0  ;;  %v683_v51 = vsel %vm596_vm2, %v659_v2, 0.0  ;;  %v636_v63 = vsel %vm596_vm2, %v1122_v61, 0.0 }
  0xa9   : > { %609 = vst.msk [vmem:[%s1105_s26 + $0x60] sm:$0xff] %vm596_vm2, %v1122_v61  ;;  %v670_v18 = vadd.f32 %v669_v8, %v668_v9  ;;  %v677_v38 = vsel %vm596_vm2, %v656_v27, 0.0  ;;  %v689_v5 = vsel %vm596_vm2, %v662_v56, 0.0 }
  0xad   : > { %v557_v11 = vpop.f32.mrf.mxu0  ;;  %v578_v12 = vpop.f32.mrf.mxu2 }
  0xae   : > { %600 = vst.msk [vmem:[%s1105_s26 + $0x18] sm:$0xff] %vm596_vm2, %v557_v11  ;;  %v618_v14 = vsel %vm596_vm2, %v557_v11, 0.0  ;;  %v653_v15 = vmul.f32 %v557_v11, %v557_v11  ;;  %v569_v16 = vpop.f32.mrf.mxu1  ;;  %v587_v17 = vpop.f32.mrf.mxu3  ;;  %v660_v3 = vmul.f32 %v578_v12, %v578_v12  ;;  %v632_v52 = vsel %vm596_vm2, %v578_v12, 0.0 }
  0xaf   : > { %v619_v19 = vadd.f32 %v618_v14, %v617_v10  ;;  %604 = vst.msk [vmem:[%s1105_s26 + $0x38] sm:$0xff] %vm596_vm2, %v569_v16  ;;  %v657_v28 = vmul.f32 %v569_v16, %v569_v16  ;;  %v626_v33 = vsel %vm596_vm2, %v569_v16, 0.0  ;;  %v663_v0 = vmul.f32 %v587_v17, %v587_v17 }
  0xb0   : > { %v671_v22 = vsel %vm596_vm2, %v653_v15, 0.0  ;;  %607 = vst.msk [vmem:[%s1105_s26 + $0x50] sm:$0xff] %vm596_vm2, %v578_v12  ;;  %v685_v57 = vsel %vm596_vm2, %v660_v3, 0.0  ;;  %v638_v6 = vsel %vm596_vm2, %v587_v17, 0.0 }
  0xb1   : > { %v621_v23 = vadd.f32 %v620_v20, %v619_v19  ;;  %v672_v24 = vadd.f32 %v671_v22, %v670_v18  ;;  %610 = vst.msk [vmem:[%s1105_s26 + $0x68] sm:$0xff] %vm596_vm2, %v587_v17  ;;  %v679_v39 = vsel %vm596_vm2, %v657_v28, 0.0  ;;  %v691_v11 = vsel %vm596_vm2, %v663_v0, 0.0 }
  0xb3   : > { %v674_v29 = vadd.f32 %v673_v25, %v672_v24  ;;  %v623_v30 = vadd.f32 %v622_v26, %v621_v23 }
  0xb5   : > { %v625_v34 = vadd.f32 %v624_v32, %v623_v30  ;;  %v676_v35 = vadd.f32 %v675_v31, %v674_v29  ;;  %v581_v36 = vpop.f32.mrf.mxu2 }
  0xb6   : > { %608 = vst.msk [vmem:[%s1105_s26 + $0x58] sm:$0xff] %vm596_vm2, %v581_v36  ;;  %v590_v40 = vpop.f32.mrf.mxu3  ;;  %v661_v48 = vmul.f32 %v581_v36, %v581_v36  ;;  %v634_v53 = vsel %vm596_vm2, %v581_v36, 0.0 }
  0xb7   : > { %v678_v41 = vadd.f32 %v677_v38, %v676_v35  ;;  %v627_v42 = vadd.f32 %v626_v33, %v625_v34  ;;  %611 = vst.msk [vmem:[%s1105_s26 + $0x70] sm:$0xff] %vm596_vm2, %v590_v40  ;;  %v664_v7 = vmul.f32 %v590_v40, %v590_v40  ;;  %v640_v12 = vsel %vm596_vm2, %v590_v40, 0.0 }
  0xb8   : > { %v687_v58 = vsel %vm596_vm2, %v661_v48, 0.0 }
  0xb9   : > { %v629_v44 = vadd.f32 %v628_v43, %v627_v42  ;;  %v680_v45 = vadd.f32 %v679_v39, %v678_v41  ;;  %v693_v15 = vsel %vm596_vm2, %v664_v7, 0.0 }
  0xbb   : > { %v682_v49 = vadd.f32 %v681_v46, %v680_v45  ;;  %v631_v50 = vadd.f32 %v630_v47, %v629_v44 }
  0xbd   : > { %v633_v54 = vadd.f32 %v632_v52, %v631_v50  ;;  %v684_v55 = vadd.f32 %v683_v51, %v682_v49 }
  0xbe   : > { %v593_v59 = vpop.f32.mrf.mxu3 }
  0xbf   : > { %v686_v60 = vadd.f32 %v685_v57, %v684_v55  ;;  %v635_v62 = vadd.f32 %v634_v53, %v633_v54  ;;  %612 = vst.msk [vmem:[%s1105_s26 + $0x78] sm:$0xff] %vm596_vm2, %v593_v59  ;;  %v665_v8 = vmul.f32 %v593_v59, %v593_v59  ;;  %v642_v13 = vsel %vm596_vm2, %v593_v59, 0.0 }
  0xc1   : > { %v637_v1 = vadd.f32 %v636_v63, %v635_v62  ;;  %v688_v4 = vadd.f32 %v687_v58, %v686_v60  ;;  %v695_v16 = vsel %vm596_vm2, %v665_v8, 0.0 }
  0xc3   : > { %v690_v9 = vadd.f32 %v689_v5, %v688_v4  ;;  %v639_v10 = vadd.f32 %v638_v6, %v637_v1 }
  0xc5   : > { %v641_v61 = vadd.f32 %v640_v12, %v639_v10  ;;  %v692_v14 = vadd.f32 %v691_v11, %v690_v9 }
  0xc7   : > { %v694_v18 = vadd.f32 %v693_v15, %v692_v14  ;;  %v643_v17 = vadd.f32 %v642_v13, %v641_v61 }
  0xc9   : > { %v644_v19 = vrot.slane %v643_v17, 4  ;;  %v696_v20 = vadd.f32 %v695_v16, %v694_v18 }
  0xcb   : > { %v645_v21 = vadd.f32 %v644_v19, %v643_v17  ;;  %v697_v22 = vrot.slane %v696_v20, 4 }
  0xcd   : > { %v646_v23 = vrot.slane %v645_v21, 2  ;;  %v698_v24 = vadd.f32 %v697_v22, %v696_v20 }
  0xcf   : > { %v647_v25 = vadd.f32 %v646_v23, %v645_v21  ;;  %v699_v26 = vrot.slane %v698_v24, 2 }
  0xd1   : > { %v648_v27 = vrot.slane %v647_v25, 1  ;;  %v700_v28 = vadd.f32 %v699_v26, %v698_v24 }
  0xd3   : > { %v701_v29 = vrot.slane %v700_v28, 1  ;;  %v649_v30 = vadd.f32 %v648_v27, %v647_v25 }
  0xd5   : > { %v702_v31 = vadd.f32 %v701_v29, %v700_v28 }
  0xd7   : > { %v704_v32 = vsel %vm703_vm0, %v649_v30, %v702_v31 }
  0xd8   : > { %706 = vst.msk [vmem:[%s327_s30] sm:$0x3] %vm705_vm3, %v704_v32 }
  0xd9 PF: > { %s18_s24 = sadd.s32 1, %s894_s24  }
  0xda   : > { %p15_p5 = scmp.ge.s32.totalorder %s18_s24, 6  }
  0xdc   :  { %17 = sbr.rel (!%p15_p5) target bundleno = 1 (0x1), region = 97 }

// kernel: residual_block_forward.6
= control target key start
LH: loop header
LB: loop body
LE: loop exit
PB: predicated region body
PF: predicated region fallthrough
CT: control target
= control target key end

     0   :  { %s2502_s18 = smov 0   ;;  %s4663_s0 = inlined_call_operand.vmem [shape: f32[2,16,16,8], index: 0, kind: input, shape index: {}]   ;;  %s4664_s1 = inlined_call_operand.vmem [shape: f32[1,8], index: 1, kind: input, shape index: {}]   ;;  %s4665_s2 = inlined_call_operand.vmem [shape: f32[1,8], index: 2, kind: input, shape index: {}]   ;;  %s4666_s3 = inlined_call_operand.vmem [shape: f32[72,16], index: 3, kind: input, shape index: {}]   ;;  %s4667_s4 = inlined_call_operand.vmem [shape: f32[2,16,16,16], index: 4, kind: output, shape index: {0}]   ;;  %s4668_s5 = inlined_call_operand.vmem [shape: f32[2,2,16], index: 5, kind: output, shape index: {1}]  }
   0x1 LB: > { %s2351_s19 = sadd.s32 4294967295, %s2461_s18   ;;  %p2355_p0 = scmp.ge.s32.totalorder %s2461_s18, 1  ;;  %s2461_s18 = sphi %s2502_s18, %s16_s18  }
   0x2   : > { %p190_p1 = scmp.lt.s32.totalorder %s2461_s18, 3 }
   0x4   : > { %p191_p2 = pnand %p2355_p0, %p190_p1 }
   0x6   : > { %194 = sbr.rel (%p191_p2) target bundleno = 971 (0x3cb), region = 36 }
   0xb   : > { %vm469_vm0 = vcmask 1040384   ;;  %p222_p3 = scmp.lt.s32.totalorder %s2351_s19, 1  ;;  %v2463_v0 = vmov 0.0   ;;  %vm635_vm1 = vcmask 1046528   ;;  %v2526_v5 = vld [vmem:[%s4664_s1] ss:$0 sm:$0xff] }
   0xc   : > { %v2510_v1 = vrot.slane %v2463_v0, 7  ;;  %v2541_v8 = vld [vmem:[%s4665_s2] ss:$0 sm:$0xff]  ;;  %s2464_s28 = smov 8   ;;  %s2465_s29 = smov 16  }
   0xd   : > { %s5198_s19 = smov (!%p222_p3, %s2351_s19), 1  ;;  %s2466_s30 = smov 24  }
   0xe   : > { %4811 = vst [vmem:[#allocation2_spill] sm:$0xff] %v2510_v1  ;;  %v2516_v2 = vsel %vm469_vm0, 0.0, %v2510_v1  ;;  %v2520_v3 = vsel %vm469_vm0, %v2510_v1, 0.0  ;;  %v637_v4 = vrot.slane %v2510_v1, 1  ;;  %s2395_s22 = sshll.u32 %s5198_s19, 8  ;;  %s2467_s10 = smov 32  }
   0xf   : > { %4812 = vst [vmem:[#allocation3_spill] sm:$0xff] %v2516_v2  ;;  %v636_v6 = vrot.slane %v2516_v2, 1  ;;  %v639_v7 = vrot.slane %v2520_v3, 1  ;;  %s2536_s25 = scalar_lea.vmem %s4663_s0, %s2395_s22  ;;  %s2468_s11 = smov 40  }
  0x10   : > { %v238_v11 = vld [vmem:[%s2536_s25 + $0x10] sm:$0xff]  ;;  %v239_v12 = vld [vmem:[%s2536_s25 + $0x18] sm:$0xff]  ;;  %v236_v13 = vld [vmem:[%s2536_s25] sm:$0xff]  ;;  %s2469_s12 = smov 48   ;;  %s2470_s13 = smov 56  }
  0x11   : > { %v2544_v9 = vsel %vm635_vm1, %v636_v6, %v637_v4  ;;  %v2547_v10 = vsel %vm635_vm1, %v637_v4, %v639_v7  ;;  %v275_v15 = vmul.f32 %v2526_v5, %v238_v11  ;;  %v276_v16 = vmul.f32 %v2526_v5, %v239_v12  ;;  %v237_v17 = vld [vmem:[%s2536_s25 + $0x8] sm:$0xff]  ;;  %v240_v19 = vld [vmem:[%s2536_s25 + $0x20] sm:$0xff]  ;;  %v242_v24 = vld [vmem:[%s2536_s25 + $0x30] sm:$0xff]  ;;  %s2471_s14 = smov 64   ;;  %s4357_s16 = scalar_lea.vmem %s4667_s4, %s2395_s22 }
  0x12   : > { %4813 = vst [vmem:[#allocation4_spill] sm:$0xff] %v2544_v9  ;;  %v2441_v14 = vpack.i.bf16 %v2547_v10, %v2544_v9  ;;  %v273_v18 = vmul.f32 %v2526_v5, %v236_v13  ;;  %v241_v20 = vld [vmem:[%s2536_s25 + $0x28] sm:$0xff]  ;;  %v274_v21 = vmul.f32 %v2526_v5, %v237_v17  ;;  %v277_v22 = vmul.f32 %v2526_v5, %v240_v19  ;;  %v243_v25 = vld [vmem:[%s2536_s25 + $0x38] sm:$0xff]  ;;  %v244_v11 = vld [vmem:[%s2536_s25 + $0x40] sm:$0xff]  ;;  %s2360_s22 = sshll.u32 %s5198_s19, 1 }
  0x13   : > { %4814 = vst [vmem:[#allocation5_spill] sm:$0xff] %v2547_v10  ;;  %v278_v23 = vmul.f32 %v2526_v5, %v241_v20  ;;  %v310_v26 = vadd.f32 %v2541_v8, %v275_v15  ;;  %v311_v27 = vadd.f32 %v2541_v8, %v276_v16  ;;  %v279_v29 = vmul.f32 %v2526_v5, %v242_v24  ;;  %v245_v15 = vld [vmem:[%s2536_s25 + $0x48] sm:$0xff]  ;;  %v246_v16 = vld [vmem:[%s2536_s25 + $0x50] sm:$0xff]  ;;  %v247_v24 = vld [vmem:[%s2536_s25 + $0x58] sm:$0xff] }
  0x14   : > { %2442 = vrot.lane.b32.xlu0 %v2441_v14, %s2464_s28  ;;  %v308_v28 = vadd.f32 %v2541_v8, %v273_v18  ;;  %v309_v30 = vadd.f32 %v2541_v8, %v274_v21  ;;  %v312_v31 = vadd.f32 %v2541_v8, %v277_v22  ;;  %v280_v33 = vmul.f32 %v2526_v5, %v243_v25 }
  0x15   : > { %v313_v32 = vadd.f32 %v2541_v8, %v278_v23  ;;  %vm342_vm2 = vcmp.gt.f32.partialorder %v310_v26, 0.0  ;;  %vm343_vm3 = vcmp.gt.f32.partialorder %v311_v27, 0.0  ;;  %v374_v34 = vmul.f32 0.1, %v310_v26 }
  0x16   : > { %v375_v35 = vmul.f32 0.1, %v311_v27  ;;  %vm340_vm4 = vcmp.gt.f32.partialorder %v308_v28, 0.0  ;;  %vm341_vm5 = vcmp.gt.f32.partialorder %v309_v30, 0.0  ;;  %v372_v36 = vmul.f32 0.1, %v308_v28 }
  0x17   : > { %v373_v37 = vmul.f32 0.1, %v309_v30  ;;  %v406_v38 = vsel %vm342_vm2, %v310_v26, %v374_v34  ;;  %vm344_vm6 = vcmp.gt.f32.partialorder %v312_v31, 0.0  ;;  %vm345_vm7 = vcmp.gt.f32.partialorder %v313_v32, 0.0 }
  0x18   : > { %v407_v39 = vsel %vm343_vm3, %v311_v27, %v375_v35  ;;  %v475_v40 = vrot.slane %v406_v38, 7  ;;  %v404_v42 = vsel %vm340_vm4, %v308_v28, %v372_v36  ;;  %v376_v46 = vmul.f32 0.1, %v312_v31 }
  0x19   : > { %v476_v41 = vrot.slane %v407_v39, 7  ;;  %v405_v43 = vsel %vm341_vm5, %v309_v30, %v373_v37  ;;  %v472_v44 = vrot.slane %v404_v42, 7  ;;  %v377_v47 = vmul.f32 0.1, %v313_v32  ;;  %v249_v30 = vld [vmem:[%s2536_s25 + $0x68] sm:$0xff] }
  0x1a   : > { %v473_v45 = vrot.slane %v405_v43, 7  ;;  %v2581_v50 = vsel %vm469_vm0, 0.0, %v475_v40  ;;  %v314_v51 = vadd.f32 %v2541_v8, %v279_v29  ;;  %v408_v59 = vsel %vm344_vm6, %v312_v31, %v376_v46  ;;  %v248_v29 = vld [vmem:[%s2536_s25 + $0x60] sm:$0xff] }
  0x1b   : > { %v2575_v48 = vsel %vm469_vm0, %v475_v40, %v476_v41  ;;  %v2578_v49 = vsel %vm469_vm0, %v476_v41, 0.0  ;;  %v2595_v58 = vsel %vm469_vm0, 0.0, %v472_v44  ;;  %v409_v62 = vsel %vm345_vm7, %v313_v32, %v377_v47 }
  0x1c   : > { %4815 = vst [vmem:[#allocation6_spill] sm:$0xff] %v2575_v48  ;;  %v647_v52 = vrot.slane %v2575_v48, 1  ;;  %v649_v53 = vrot.slane %v2578_v49, 1  ;;  %v2587_v54 = vsel %vm469_vm0, %v472_v44, %v473_v45  ;;  %v2590_v55 = vsel %vm469_vm0, %v473_v45, 0.0 }
  0x1d   : > { %4816 = vst [vmem:[#allocation7_spill] sm:$0xff] %v2587_v54  ;;  %v642_v56 = vrot.slane %v2587_v54, 1  ;;  %v644_v57 = vrot.slane %v2590_v55, 1  ;;  %v641_v61 = vrot.slane %v2595_v58, 1  ;;  %v478_v63 = vrot.slane %v408_v59, 7 }
  0x1e   : > { %4817 = vst [vmem:[#allocation8_spill] sm:$0xff] %v2595_v58  ;;  %v2599_v60 = vsel %vm635_vm1, %v647_v52, %v649_v53  ;;  %v479_v4 = vrot.slane %v409_v62, 7  ;;  %v646_v6 = vrot.slane %v2581_v50, 1  ;;  %v315_v7 = vadd.f32 %v2541_v8, %v280_v33 }
  0x1f   : > { %4818 = vst [vmem:[#allocation9_spill] sm:$0xff] %v2599_v60  ;;  %726 = vrot.lane.b32.xlu2 %v2599_v60, %s2464_s28  ;;  %v2606_v0 = vsel %vm635_vm1, %v642_v56, %v644_v57  ;;  %v2614_v12 = vsel %vm635_vm1, %v641_v61, %v642_v56  ;;  %v2617_v13 = vsel %vm469_vm0, 0.0, %v478_v63  ;;  %vm346_vm8 = vcmp.gt.f32.partialorder %v314_v51, 0.0 }
  0x20   : > { %4819 = vst [vmem:[#allocation10_spill] sm:$0xff] %v2606_v0  ;;  %722 = vrot.lane.b32.xlu1 %v2606_v0, %s2464_s28  ;;  %v378_v14 = vmul.f32 0.1, %v314_v51  ;;  %720 = vrot.lane.b32.xlu0 %v2614_v12, %s2464_s28  ;;  %v2624_v17 = vsel %vm469_vm0, %v478_v63, %v479_v4  ;;  %v651_v18 = vrot.slane %v2617_v13, 1  ;;  %v2628_v19 = vsel %vm635_vm1, %v646_v6, %v647_v52 }
  0x21   : > { %4820 = vst [vmem:[#allocation11_spill] sm:$0xff] %v2614_v12  ;;  %v2631_v20 = vsel %vm469_vm0, %v479_v4, 0.0  ;;  %v652_v21 = vrot.slane %v2624_v17, 1  ;;  %vm347_vm9 = vcmp.gt.f32.partialorder %v315_v7, 0.0  ;;  %v379_v23 = vmul.f32 0.1, %v315_v7 }
  0x22   : > { %4821 = vst [vmem:[#allocation12_spill] sm:$0xff] %v2617_v13  ;;  %v654_v22 = vrot.slane %v2631_v20, 1  ;;  %v410_v25 = vsel %vm346_vm8, %v314_v51, %v378_v14  ;;  %v281_v26 = vmul.f32 %v2526_v5, %v244_v11  ;;  %v282_v27 = vmul.f32 %v2526_v5, %v245_v15 }
  0x23   : > { %4822 = vst [vmem:[#allocation13_spill] sm:$0xff] %v2624_v17  ;;  %v283_v28 = vmul.f32 %v2526_v5, %v246_v16  ;;  %v2642_v31 = vsel %vm635_vm1, %v651_v18, %v652_v21  ;;  %v411_v33 = vsel %vm347_vm9, %v315_v7, %v379_v23  ;;  %v481_v34 = vrot.slane %v410_v25, 7 }
  0x24   : > { %4823 = vst [vmem:[#allocation14_spill] sm:$0xff] %v2628_v19  ;;  %v2645_v32 = vsel %vm635_vm1, %v652_v21, %v654_v22  ;;  %v482_v35 = vrot.slane %v411_v33, 7  ;;  %v316_v36 = vadd.f32 %v2541_v8, %v281_v26  ;;  %v317_v37 = vadd.f32 %v2541_v8, %v282_v27 }
  0x25   : > { %4824 = vst [vmem:[#allocation15_spill] sm:$0xff] %v2642_v31  ;;  %v284_v38 = vmul.f32 %v2526_v5, %v247_v24  ;;  %v2651_v39 = vsel %vm469_vm0, 0.0, %v481_v34  ;;  %v318_v40 = vadd.f32 %v2541_v8, %v283_v28  ;;  %v285_v41 = vmul.f32 %v2526_v5, %v248_v29  ;;  %v250_v29 = vld [vmem:[%s2536_s25 + $0x70] sm:$0xff] }
  0x26   : > { %4825 = vst [vmem:[#allocation16_spill] sm:$0xff] %v2645_v32  ;;  %v286_v42 = vmul.f32 %v2526_v5, %v249_v30  ;;  %v2659_v43 = vsel %vm469_vm0, %v481_v34, %v482_v35  ;;  %v2662_v44 = vsel %vm469_vm0, %v482_v35, 0.0  ;;  %v656_v45 = vrot.slane %v2651_v39, 1  ;;  %v251_v30 = vld [vmem:[%s2536_s25 + $0x78] sm:$0xff] }
  0x27   : > { %728 = vrot.lane.b32.xlu2 %v2642_v31, %s2464_s28  ;;  %4826 = vst [vmem:[#allocation17_spill] sm:$0xff] %v2659_v43  ;;  %vm348_vm10 = vcmp.gt.f32.partialorder %v316_v36, 0.0  ;;  %v657_v46 = vrot.slane %v2659_v43, 1  ;;  %v659_v47 = vrot.slane %v2662_v44, 1  ;;  %vm349_vm11 = vcmp.gt.f32.partialorder %v317_v37, 0.0 }
  0x28   : > { %724 = vrot.lane.b32.xlu1 %v2628_v19, %s2464_s28  ;;  %v380_v51 = vmul.f32 0.1, %v316_v36  ;;  %730 = vrot.lane.b32.xlu0 %v2645_v32, %s2464_s28  ;;  %v381_v52 = vmul.f32 0.1, %v317_v37  ;;  %v319_v53 = vadd.f32 %v2541_v8, %v284_v38  ;;  %vm350_vm12 = vcmp.gt.f32.partialorder %v318_v40, 0.0 }
  0x29   : > { %v382_v56 = vmul.f32 0.1, %v318_v40  ;;  %v2673_v57 = vsel %vm635_vm1, %v657_v46, %v659_v47  ;;  %v2676_v59 = vsel %vm635_vm1, %v656_v45, %v657_v46  ;;  %v320_v62 = vadd.f32 %v2541_v8, %v285_v41  ;;  %v253_v45 = vld [vmem:[%s2536_s25 + $0x88] sm:$0xff] }
  0x2a   : > { %4827 = vst [vmem:[#allocation18_spill] sm:$0xff] %v2673_v57  ;;  %v412_v61 = vsel %vm348_vm10, %v316_v36, %v380_v51  ;;  %v413_v63 = vsel %vm349_vm11, %v317_v37, %v381_v52  ;;  %vm351_vm13 = vcmp.gt.f32.partialorder %v319_v53, 0.0  ;;  %v383_v6 = vmul.f32 0.1, %v319_v53 }
  0x2b   : > { %4828 = vst [vmem:[#allocation19_spill] sm:$0xff] %v2676_v59  ;;  %v484_v4 = vrot.slane %v412_v61, 7  ;;  %v485_v7 = vrot.slane %v413_v63, 7  ;;  %v414_v11 = vsel %vm350_vm12, %v318_v40, %v382_v56  ;;  %v321_v14 = vadd.f32 %v2541_v8, %v286_v42  ;;  %v252_v42 = vld [vmem:[%s2536_s25 + $0x80] sm:$0xff] }
  0x2c   : > { %vm352_vm14 = vcmp.gt.f32.partialorder %v320_v62, 0.0  ;;  %v415_v16 = vsel %vm351_vm13, %v319_v53, %v383_v6  ;;  %v487_v18 = vrot.slane %v414_v11, 7  ;;  %v384_v21 = vmul.f32 0.1, %v320_v62  ;;  %v254_v53 = vld [vmem:[%s2536_s25 + $0x90] sm:$0xff] }
  0x2d   : > { %v2681_v15 = vsel %vm469_vm0, 0.0, %v484_v4  ;;  %v2684_v22 = vsel %vm469_vm0, %v484_v4, %v485_v7  ;;  %v488_v24 = vrot.slane %v415_v16, 7  ;;  %v2688_v25 = vsel %vm469_vm0, %v485_v7, 0.0 }
  0x2e   : > { %4829 = vst [vmem:[#allocation20_spill] sm:$0xff] %v2681_v15  ;;  %v661_v23 = vrot.slane %v2681_v15, 1  ;;  %v662_v26 = vrot.slane %v2684_v22, 1  ;;  %v2694_v27 = vsel %vm469_vm0, 0.0, %v487_v18  ;;  %v664_v28 = vrot.slane %v2688_v25, 1 }
  0x2f   : > { %4830 = vst [vmem:[#allocation21_spill] sm:$0xff] %v2684_v22  ;;  %734 = vrot.lane.b32.xlu2 %v2673_v57, %s2464_s28  ;;  %vm353_vm15 = vcmp.gt.f32.partialorder %v321_v14, 0.0  ;;  %v2702_v33 = vsel %vm469_vm0, %v487_v18, %v488_v24  ;;  %v666_v34 = vrot.slane %v2694_v27, 1  ;;  %v2706_v35 = vsel %vm469_vm0, %v488_v24, 0.0 }
  0x30   : > { %4831 = vst [vmem:[#allocation22_spill] sm:$0xff] %v2694_v27  ;;  %732 = vrot.lane.b32.xlu1 %v2676_v59, %s2464_s28  ;;  %v385_v36 = vmul.f32 0.1, %v321_v14  ;;  %v2709_v37 = vsel %vm635_vm1, %v661_v23, %v662_v26  ;;  %v667_v38 = vrot.slane %v2702_v33, 1  ;;  %v2713_v40 = vsel %vm635_vm1, %v662_v26, %v664_v28 }
  0x31   : > { %4832 = vst [vmem:[#allocation23_spill] sm:$0xff] %v2709_v37  ;;  %v669_v41 = vrot.slane %v2706_v35, 1  ;;  %736 = vrot.lane.b32.xlu0 %v2709_v37, %s2464_s28  ;;  %v416_v46 = vsel %vm352_vm14, %v320_v62, %v384_v21  ;;  %v287_v51 = vmul.f32 %v2526_v5, %v250_v29  ;;  %v288_v52 = vmul.f32 %v2526_v5, %v251_v30  ;;  %v255_v21 = vld [vmem:[%s2536_s25 + $0x98] sm:$0xff] }
  0x32   : > { %4833 = vst [vmem:[#allocation24_spill] sm:$0xff] %v2713_v40  ;;  %v417_v47 = vsel %vm353_vm15, %v321_v14, %v385_v36  ;;  %v2726_v56 = vsel %vm635_vm1, %v666_v34, %v667_v38  ;;  %v490_v63 = vrot.slane %v416_v46, 7  ;;  %v289_v7 = vmul.f32 %v2526_v5, %v252_v42 }
  0x33   : > { %4834 = vst [vmem:[#allocation25_spill] sm:$0xff] %v2726_v56  ;;  %v2729_v61 = vsel %vm635_vm1, %v667_v38, %v669_v41  ;;  %v491_v4 = vrot.slane %v417_v47, 7  ;;  %v322_v6 = vadd.f32 %v2541_v8, %v287_v51  ;;  %v323_v62 = vadd.f32 %v2541_v8, %v288_v52 }
  0x34   : > { %4835 = vst [vmem:[#allocation26_spill] sm:$0xff] %v2729_v61  ;;  %v290_v11 = vmul.f32 %v2526_v5, %v253_v45  ;;  %v2742_v18 = vsel %vm469_vm0, 0.0, %v490_v63  ;;  %v291_v23 = vmul.f32 %v2526_v5, %v254_v53  ;;  %v324_v34 = vadd.f32 %v2541_v8, %v289_v7  ;;  %v256_v45 = vld [vmem:[%s2536_s25 + $0xa0] sm:$0xff] }
  0x35   : > { %v2736_v14 = vsel %vm469_vm0, %v490_v63, %v491_v4  ;;  %v2739_v16 = vsel %vm469_vm0, %v491_v4, 0.0  ;;  %v671_v28 = vrot.slane %v2742_v18, 1  ;;  %vm354_vm2 = vcmp.gt.f32.partialorder %v322_v6, 0.0 }
  0x36   : > { %4836 = vst [vmem:[#allocation27_spill] sm:$0xff] %v2736_v14  ;;  %v672_v24 = vrot.slane %v2736_v14, 1  ;;  %v674_v26 = vrot.slane %v2739_v16, 1  ;;  %vm355_vm3 = vcmp.gt.f32.partialorder %v323_v62, 0.0  ;;  %v386_v29 = vmul.f32 0.1, %v322_v6 }
  0x37   : > { %740 = vrot.lane.b32.xlu2 %v2726_v56, %s2464_s28  ;;  %v387_v30 = vmul.f32 0.1, %v323_v62  ;;  %v325_v41 = vadd.f32 %v2541_v8, %v290_v11  ;;  %v292_v42 = vmul.f32 %v2526_v5, %v255_v21  ;;  %vm356_vm4 = vcmp.gt.f32.partialorder %v324_v34, 0.0 }
  0x38   : > { %738 = vrot.lane.b32.xlu1 %v2713_v40, %s2464_s28  ;;  %v2755_v36 = vsel %vm635_vm1, %v672_v24, %v674_v26  ;;  %v2758_v38 = vsel %vm635_vm1, %v671_v28, %v672_v24  ;;  %v418_v46 = vsel %vm354_vm2, %v322_v6, %v386_v29  ;;  %v388_v51 = vmul.f32 0.1, %v324_v34 }
  0x39   : > { %4837 = vst [vmem:[#allocation28_spill] sm:$0xff] %v2755_v36  ;;  %v419_v47 = vsel %vm355_vm3, %v323_v62, %v387_v30  ;;  %742 = vrot.lane.b32.xlu0 %v2729_v61, %s2464_s28  ;;  %v493_v52 = vrot.slane %v418_v46, 7  ;;  %vm357_vm5 = vcmp.gt.f32.partialorder %v325_v41, 0.0  ;;  %v389_v63 = vmul.f32 0.1, %v325_v41  ;;  %v258_v46 = vld [vmem:[%s2536_s25 + $0xb0] sm:$0xff] }
  0x3a   : > { %4838 = vst [vmem:[#allocation29_spill] sm:$0xff] %v2758_v38  ;;  %v494_v53 = vrot.slane %v419_v47, 7  ;;  %v420_v4 = vsel %vm356_vm4, %v324_v34, %v388_v51  ;;  %v326_v7 = vadd.f32 %v2541_v8, %v291_v23  ;;  %v327_v11 = vadd.f32 %v2541_v8, %v292_v42 }
  0x3b   : > { %v293_v21 = vmul.f32 %v2526_v5, %v256_v45  ;;  %v2772_v62 = vsel %vm469_vm0, 0.0, %v493_v52  ;;  %v421_v24 = vsel %vm357_vm5, %v325_v41, %v389_v63  ;;  %v496_v26 = vrot.slane %v420_v4, 7  ;;  %v257_v45 = vld [vmem:[%s2536_s25 + $0xa8] sm:$0xff] }
  0x3c   : > { %v2769_v6 = vsel %vm469_vm0, %v493_v52, %v494_v53  ;;  %4839 = vst [vmem:[#allocation30_spill] sm:$0xff] %v2772_v62  ;;  %v676_v28 = vrot.slane %v2772_v62, 1  ;;  %v497_v30 = vrot.slane %v421_v24, 7  ;;  %v2777_v23 = vsel %vm469_vm0, %v494_v53, 0.0  ;;  %v259_v53 = vld [vmem:[%s2536_s25 + $0xb8] sm:$0xff] }
  0x3d   : > { %v677_v29 = vrot.slane %v2769_v6, 1  ;;  %v2780_v34 = vsel %vm469_vm0, 0.0, %v496_v26  ;;  %v679_v42 = vrot.slane %v2777_v23, 1  ;;  %vm358_vm6 = vcmp.gt.f32.partialorder %v326_v7, 0.0 }
  0x3e   : > { %4840 = vst [vmem:[#allocation31_spill] sm:$0xff] %v2780_v34  ;;  %v2791_v47 = vsel %vm469_vm0, %v496_v26, %v497_v30  ;;  %v681_v51 = vrot.slane %v2780_v34, 1  ;;  %v2795_v52 = vsel %vm469_vm0, %v497_v30, 0.0  ;;  %vm359_vm7 = vcmp.gt.f32.partialorder %v327_v11, 0.0 }
  0x3f   : > { %746 = vrot.lane.b32.xlu2 %v2755_v36, %s2464_s28  ;;  %v2788_v41 = vsel %vm635_vm1, %v676_v28, %v677_v29  ;;  %4842 = vst [vmem:[#allocation33_spill] sm:$0xff] %v2791_v47  ;;  %v682_v63 = vrot.slane %v2791_v47, 1  ;;  %v684_v4 = vrot.slane %v2795_v52, 1  ;;  %v390_v24 = vmul.f32 0.1, %v326_v7 }
  0x40   : > { %4841 = vst [vmem:[#allocation32_spill] sm:$0xff] %v2788_v41  ;;  %744 = vrot.lane.b32.xlu1 %v2758_v38, %s2464_s28  ;;  %v391_v28 = vmul.f32 0.1, %v327_v11  ;;  %v294_v26 = vmul.f32 %v2526_v5, %v257_v45  ;;  %v328_v10 = vadd.f32 %v2541_v8, %v293_v21  ;;  %v295_v9 = vmul.f32 %v2526_v5, %v258_v46  ;;  %v260_v21 = vld [vmem:[%s2536_s25 + $0xc0] sm:$0xff] }
  0x41   : > { %748 = vrot.lane.b32.xlu0 %v2788_v41, %s2464_s28  ;;  %v2808_v30 = vsel %vm635_vm1, %v681_v51, %v682_v63  ;;  %v2811_v38 = vsel %vm635_vm1, %v677_v29, %v679_v42  ;;  %v422_v36 = vsel %vm358_vm6, %v326_v7, %v390_v24  ;;  %v296_v61 = vmul.f32 %v2526_v5, %v259_v53 }
  0x42   : > { %4843 = vst [vmem:[#allocation34_spill] sm:$0xff] %v2808_v30  ;;  %v423_v40 = vsel %vm359_vm7, %v327_v11, %v391_v28  ;;  %v499_v56 = vrot.slane %v422_v36, 7  ;;  %v329_v45 = vadd.f32 %v2541_v8, %v294_v26  ;;  %vm360_vm8 = vcmp.gt.f32.partialorder %v328_v10, 0.0  ;;  %v261_v28 = vld [vmem:[%s2536_s25 + $0xc8] sm:$0xff]  ;;  %v262_v26 = vld [vmem:[%s2536_s25 + $0xd0] sm:$0xff] }
  0x43   : > { %4844 = vst [vmem:[#allocation35_spill] sm:$0xff] %v2811_v38  ;;  %v500_v46 = vrot.slane %v423_v40, 7  ;;  %v392_v37 = vmul.f32 0.1, %v328_v10  ;;  %v330_v41 = vadd.f32 %v2541_v8, %v295_v9  ;;  %v331_v51 = vadd.f32 %v2541_v8, %v296_v61 }
  0x44   : > { %v2820_v59 = vsel %vm635_vm1, %v682_v63, %v684_v4  ;;  %v2823_v29 = vsel %vm469_vm0, 0.0, %v499_v56  ;;  %vm361_vm9 = vcmp.gt.f32.partialorder %v329_v45, 0.0  ;;  %v393_v7 = vmul.f32 0.1, %v329_v45 }
  0x45   : > { %4845 = vst [vmem:[#allocation36_spill] sm:$0xff] %v2820_v59  ;;  %v2826_v36 = vsel %vm469_vm0, %v499_v56, %v500_v46  ;;  %v2829_v11 = vsel %vm469_vm0, %v500_v46, 0.0  ;;  %v424_v40 = vsel %vm360_vm8, %v328_v10, %v392_v37  ;;  %v297_v9 = vmul.f32 %v2526_v5, %v260_v21 }
  0x46   : > { %4846 = vst [vmem:[#allocation37_spill] sm:$0xff] %v2826_v36  ;;  %v687_v61 = vrot.slane %v2826_v36, 1  ;;  %v689_v42 = vrot.slane %v2829_v11, 1  ;;  %v425_v53 = vsel %vm361_vm9, %v329_v45, %v393_v7  ;;  %v502_v63 = vrot.slane %v424_v40, 7  ;;  %v263_v7 = vld [vmem:[%s2536_s25 + $0xd8] sm:$0xff] }
  0x47   : > { %752 = vrot.lane.b32.xlu2 %v2808_v30, %s2464_s28  ;;  %v503_v56 = vrot.slane %v425_v53, 7  ;;  %vm362_vm10 = vcmp.gt.f32.partialorder %v330_v41, 0.0  ;;  %vm363_vm11 = vcmp.gt.f32.partialorder %v331_v51, 0.0  ;;  %v394_v10 = vmul.f32 0.1, %v330_v41 }
  0x48   : > { %750 = vrot.lane.b32.xlu1 %v2811_v38, %s2464_s28  ;;  %v686_v37 = vrot.slane %v2823_v29, 1  ;;  %v2840_v4 = vsel %vm469_vm0, 0.0, %v502_v63  ;;  %v395_v24 = vmul.f32 0.1, %v331_v51  ;;  %v2852_v40 = vsel %vm635_vm1, %v687_v61, %v689_v42 }
  0x49   : > { %4847 = vst [vmem:[#allocation38_spill] sm:$0xff] %v2840_v4  ;;  %754 = vrot.lane.b32.xlu0 %v2820_v59, %s2464_s28  ;;  %v2847_v45 = vsel %vm469_vm0, %v502_v63, %v503_v56  ;;  %v691_v21 = vrot.slane %v2840_v4, 1  ;;  %v426_v46 = vsel %vm362_vm10, %v330_v41, %v394_v10  ;;  %v298_v32 = vmul.f32 %v2526_v5, %v261_v28 }
  0x4a   : > { %4848 = vst [vmem:[#allocation39_spill] sm:$0xff] %v2852_v40  ;;  %v692_v53 = vrot.slane %v2847_v45, 1  ;;  %v427_v38 = vsel %vm363_vm11, %v331_v51, %v395_v24  ;;  %v505_v30 = vrot.slane %v426_v46, 7  ;;  %v332_v59 = vadd.f32 %v2541_v8, %v297_v9 }
  0x4b   : > { %v506_v57 = vrot.slane %v427_v38, 7  ;;  %v299_v63 = vmul.f32 %v2526_v5, %v262_v26  ;;  %v2859_v60 = vsel %vm635_vm1, %v686_v37, %v687_v61  ;;  %v2865_v42 = vsel %vm469_vm0, %v503_v56, 0.0  ;;  %v264_v37 = vld [vmem:[%s2536_s25 + $0xe0] sm:$0xff] }
  0x4c   : > { %4849 = vst [vmem:[#allocation40_spill] sm:$0xff] %v2859_v60  ;;  %v2862_v41 = vsel %vm469_vm0, 0.0, %v505_v30  ;;  %v300_v10 = vmul.f32 %v2526_v5, %v263_v7  ;;  %v2869_v38 = vsel %vm635_vm1, %v691_v21, %v692_v53  ;;  %v333_v61 = vadd.f32 %v2541_v8, %v298_v32  ;;  %v265_v32 = vld [vmem:[%s2536_s25 + $0xe8] sm:$0xff] }
  0x4d   : > { %4850 = vst [vmem:[#allocation41_spill] sm:$0xff] %v2862_v41  ;;  %v2872_v51 = vsel %vm469_vm0, %v505_v30, %v506_v57  ;;  %v2875_v9 = vsel %vm469_vm0, %v506_v57, 0.0  ;;  %v696_v56 = vrot.slane %v2862_v41, 1  ;;  %vm364_vm12 = vcmp.gt.f32.partialorder %v332_v59, 0.0 }
  0x4e   : > { %4851 = vst [vmem:[#allocation42_spill] sm:$0xff] %v2869_v38  ;;  %v697_v24 = vrot.slane %v2872_v51, 1  ;;  %v396_v28 = vmul.f32 0.1, %v332_v59  ;;  %vm365_vm13 = vcmp.gt.f32.partialorder %v333_v61, 0.0  ;;  %v334_v57 = vadd.f32 %v2541_v8, %v299_v63 }
  0x4f   : > { %4852 = vst [vmem:[#allocation43_spill] sm:$0xff] %v2872_v51  ;;  %758 = vrot.lane.b32.xlu2 %v2852_v40, %s2464_s28  ;;  %v397_v30 = vmul.f32 0.1, %v333_v61  ;;  %v335_v26 = vadd.f32 %v2541_v8, %v300_v10  ;;  %v694_v21 = vrot.slane %v2865_v42, 1  ;;  %v699_v46 = vrot.slane %v2875_v9, 1 }
  0x50   : > { %4853 = vst [vmem:[#allocation44_spill] sm:$0xff] %v2875_v9  ;;  %756 = vrot.lane.b32.xlu1 %v2859_v60, %s2464_s28  ;;  %v428_v7 = vsel %vm364_vm12, %v332_v59, %v396_v28  ;;  %v301_v40 = vmul.f32 %v2526_v5, %v264_v37  ;;  %vm366_vm14 = vcmp.gt.f32.partialorder %v334_v57, 0.0  ;;  %v398_v12 = vmul.f32 0.1, %v334_v57 }
  0x51   : > { %760 = vrot.lane.b32.xlu0 %v2869_v38, %s2464_s28  ;;  %v429_v31 = vsel %vm365_vm13, %v333_v61, %v397_v30  ;;  %v508_v19 = vrot.slane %v428_v7, 7  ;;  %vm367_vm15 = vcmp.gt.f32.partialorder %v335_v26, 0.0  ;;  %v399_v63 = vmul.f32 0.1, %v335_v26 }
  0x52   : > { %v509_v60 = vrot.slane %v429_v31, 7  ;;  %v302_v10 = vmul.f32 %v2526_v5, %v265_v32  ;;  %v2895_v0 = vsel %vm635_vm1, %v696_v56, %v697_v24  ;;  %v336_v9 = vadd.f32 %v2541_v8, %v301_v40 }
  0x53   : > { %4854 = vst [vmem:[#allocation45_spill] sm:$0xff] %v2895_v0  ;;  %v2899_v59 = vsel %vm635_vm1, %v692_v53, %v694_v21  ;;  %v430_v28 = vsel %vm366_vm14, %v334_v57, %v398_v12  ;;  %v2908_v31 = vsel %vm635_vm1, %v697_v24, %v699_v46  ;;  %v2911_v5 = vsel %vm469_vm0, 0.0, %v508_v19 }
  0x54   : > { %4855 = vst [vmem:[#allocation46_spill] sm:$0xff] %v2899_v59  ;;  %v2902_v37 = vsel %vm469_vm0, %v508_v19, %v509_v60  ;;  %v2905_v61 = vsel %vm469_vm0, %v509_v60, 0.0  ;;  %v431_v56 = vsel %vm367_vm15, %v335_v26, %v399_v63  ;;  %v511_v30 = vrot.slane %v430_v28, 7 }
  0x55   : > { %4856 = vst [vmem:[#allocation47_spill] sm:$0xff] %v2902_v37  ;;  %v512_v40 = vrot.slane %v431_v56, 7  ;;  %v337_v53 = vadd.f32 %v2541_v8, %v302_v10  ;;  %vm368_vm2 = vcmp.gt.f32.partialorder %v336_v9, 0.0  ;;  %v400_v32 = vmul.f32 0.1, %v336_v9 }
  0x56   : > { %4857 = vst [vmem:[#allocation48_spill] sm:$0xff] %v2908_v31  ;;  %v702_v60 = vrot.slane %v2902_v37, 1  ;;  %v704_v12 = vrot.slane %v2905_v61, 1  ;;  %v2921_v19 = vsel %vm469_vm0, 0.0, %v511_v30  ;;  %v701_v24 = vrot.slane %v2911_v5, 1 }
  0x57   : > { %4858 = vst [vmem:[#allocation49_spill] sm:$0xff] %v2911_v5  ;;  %764 = vrot.lane.b32.xlu2 %v2895_v0, %s2464_s28  ;;  %v2925_v57 = vsel %vm469_vm0, %v511_v30, %v512_v40  ;;  %vm369_vm3 = vcmp.gt.f32.partialorder %v337_v53, 0.0  ;;  %v401_v26 = vmul.f32 0.1, %v337_v53  ;;  %v432_v8 = vsel %vm368_vm2, %v336_v9, %v400_v32 }
  0x58   : > { %762 = vrot.lane.b32.xlu1 %v2899_v59, %s2464_s28  ;;  %4859 = vst [vmem:[#allocation50_spill] sm:$0xff] %v2921_v19  ;;  %v706_v21 = vrot.slane %v2921_v19, 1  ;;  %v707_v46 = vrot.slane %v2925_v57, 1  ;;  %v514_v63 = vrot.slane %v432_v8, 7  ;;  %v2932_v10 = vsel %vm635_vm1, %v702_v60, %v704_v12 }
  0x59   : > { %4860 = vst [vmem:[#allocation51_spill] sm:$0xff] %v2925_v57  ;;  %766 = vrot.lane.b32.xlu0 %v2908_v31, %s2464_s28  ;;  %v433_v7 = vsel %vm369_vm3, %v337_v53, %v401_v26  ;;  %v2935_v56 = vsel %vm635_vm1, %v701_v24, %v702_v60  ;;  %v2944_v9 = vsel %vm469_vm0, %v512_v40, 0.0  ;;  %v816_v8 = vrot.slane %v2520_v3, 2 }
  0x5a   : > { %4861 = vst [vmem:[#allocation52_spill] sm:$0xff] %v2932_v10  ;;  %v515_v28 = vrot.slane %v433_v7, 7  ;;  %v2938_v30 = vsel %vm469_vm0, 0.0, %v514_v63  ;;  %v2949_v53 = vsel %vm635_vm1, %v706_v21, %v707_v46  ;;  %v709_v24 = vrot.slane %v2944_v9, 1 }
  0x5b   : > { %4862 = vst [vmem:[#allocation53_spill] sm:$0xff] %v2935_v56  ;;  %v711_v32 = vrot.slane %v2938_v30, 1  ;;  %v813_v7 = vrot.slane %v2516_v2, 2  ;;  %vm812_vm4 = vcmask 1045504   ;;  %v819_v3 = vrot.slane %v2587_v54, 2 }
  0x5c   : > { %4863 = vst [vmem:[#allocation54_spill] sm:$0xff] %v2938_v30  ;;  %v2941_v59 = vsel %vm469_vm0, %v514_v63, %v515_v28  ;;  %v2956_v12 = vsel %vm469_vm0, %v515_v28, 0.0  ;;  %v2967_v21 = vsel %vm635_vm1, %v707_v46, %v709_v24  ;;  %v814_v63 = vrot.slane %v2510_v1, 2 }
  0x5d   : > { %4864 = vst [vmem:[#allocation55_spill] sm:$0xff] %v2941_v59  ;;  %v712_v60 = vrot.slane %v2941_v59, 1  ;;  %v714_v40 = vrot.slane %v2956_v12, 1  ;;  %v821_v1 = vrot.slane %v2590_v55, 2  ;;  %v823_v55 = vrot.slane %v2581_v50, 2 }
  0x5e   : > { %4865 = vst [vmem:[#allocation56_spill] sm:$0xff] %v2949_v53  ;;  %v2981_v46 = vsel %vm812_vm4, %v813_v7, %v814_v63  ;;  %v2984_v24 = vsel %vm812_vm4, %v814_v63, %v816_v8  ;;  %v824_v8 = vrot.slane %v2575_v48, 2  ;;  %v826_v63 = vrot.slane %v2578_v49, 2 }
  0x5f   : > { %770 = vrot.lane.b32.xlu2 %v2932_v10, %s2464_s28  ;;  %v2963_v26 = vsel %vm635_vm1, %v711_v32, %v712_v60  ;;  %4867 = vst [vmem:[#allocation58_spill] sm:$0xff] %v2967_v21  ;;  %v2974_v28 = vsel %vm635_vm1, %v712_v60, %v714_v40  ;;  %v818_v32 = vrot.slane %v2595_v58, 2  ;;  %v2446_v40 = vpack.i.bf16 %v2984_v24, %v2981_v46 }
  0x60   : > { %768 = vrot.lane.b32.xlu1 %v2935_v56, %s2464_s28  ;;  %4866 = vst [vmem:[#allocation57_spill] sm:$0xff] %v2963_v26  ;;  %v2997_v7 = vsel %vm812_vm4, %v819_v3, %v821_v1  ;;  %v3011_v1 = vsel %vm812_vm4, %v823_v55, %v824_v8  ;;  %vm1610_vm7 = vcmask 130048   ;;  %vm1643_vm8 = vcmask 195584  }
  0x61   : > { %772 = vrot.lane.b32.xlu0 %v2949_v53, %s2464_s28  ;;  %4868 = vst [vmem:[#allocation59_spill] sm:$0xff] %v2974_v28  ;;  %v2990_v60 = vsel %vm812_vm4, %v818_v32, %v819_v3  ;;  %v828_v32 = vrot.slane %v2617_v13, 2  ;;  %v833_v3 = vrot.slane %v2651_v39, 2  ;;  %vm1676_vm9 = vcmask 261120  }
  0x62   : > { %4869 = vst [vmem:[#allocation60_spill] sm:$0xff] %v2981_v46  ;;  %v3008_v46 = vsel %vm812_vm4, %v824_v8, %v826_v63  ;;  %v831_v63 = vrot.slane %v2631_v20, 2  ;;  %v836_v8 = vrot.slane %v2662_v44, 2  ;;  %v839_v20 = vrot.slane %v2684_v22, 2 }
  0x63   : > { %4870 = vst [vmem:[#allocation61_spill] sm:$0xff] %v2984_v24  ;;  %v829_v24 = vrot.slane %v2624_v17, 2  ;;  %vm1709_vm10 = vcmask 326656   ;;  %vm1742_vm11 = vcmask 392192   ;;  %vm1775_vm12 = vcmask 457728  }
  0x64   : > { %4871 = vst [vmem:[#allocation62_spill] sm:$0xff] %v3008_v46  ;;  %vm1808_vm13 = vcmask 523264   ;;  %vm1850_vm14 = vcmask 588800   ;;  %vm2263_vm15 = vcmask 123904  }
  0x65   : > { %v3016_v49 = vsel %vm812_vm4, %v828_v32, %v829_v24  ;;  %v3032_v32 = vsel %vm812_vm4, %v829_v24, %v831_v63  ;;  %v843_v24 = vrot.slane %v2694_v27, 2  ;;  %v844_v63 = vrot.slane %v2702_v33, 2 }
  0x67   : > { %776 = vrot.lane.b32.xlu2 %v2963_v26, %s2464_s28 }
  0x68   : > { %774 = vrot.lane.b32.xlu1 %v2967_v21, %s2464_s28 }
  0x69   : > { %778 = vrot.lane.b32.xlu0 %v2974_v28, %s2464_s28 }
  0x6f   : > { %897 = vrot.lane.b32.xlu2 %v2990_v60, %s2465_s29 }
  0x70   : > { %2447 = vrot.lane.b32.xlu1 %v2446_v40, %s2465_s29  ;;  %v834_v40 = vrot.slane %v2659_v43, 2 }
  0x71   : > { %899 = vrot.lane.b32.xlu0 %v2997_v7, %s2465_s29 }
  0x72   : > { %v3029_v55 = vsel %vm812_vm4, %v833_v3, %v834_v40  ;;  %v838_v3 = vrot.slane %v2681_v15, 2 }
  0x73   : > { %4873 = vst [vmem:[#allocation64_spill] sm:$0xff] %v3029_v55 }
  0x77   : > { %903 = vrot.lane.b32.xlu2 %v3008_v46, %s2465_s29  ;;  %v3037_v46 = vsel %vm812_vm4, %v834_v40, %v836_v8  ;;  %v3054_v8 = vsel %vm812_vm4, %v838_v3, %v839_v20  ;;  %v851_v3 = vrot.slane %v2739_v16, 2 }
  0x78   : > { %901 = vrot.lane.b32.xlu1 %v3011_v1, %s2465_s29  ;;  %4874 = vst [vmem:[#allocation65_spill] sm:$0xff] %v3037_v46 }
  0x79   : > { %v3022_v2 = vpop.permute.xlu2 %726  ;;  %905 = vrot.lane.b32.xlu0 %v3016_v49, %s2465_s29  ;;  %4877 = vst [vmem:[#allocation68_spill] sm:$0xff] %v3054_v8 }
  0x7a   : > { %4872 = vst [vmem:[#allocation63_spill] sm:$0xff] %v3022_v2  ;;  %v841_v2 = vrot.slane %v2688_v25, 2  ;;  %v3059_v25 = vsel %vm812_vm4, %v843_v24, %v844_v63 }
  0x7c   : > { %v3051_v40 = vsel %vm812_vm4, %v839_v20, %v841_v2  ;;  %v846_v20 = vrot.slane %v2706_v35, 2  ;;  %v854_v35 = vrot.slane %v2769_v6, 2 }
  0x7d   : > { %4876 = vst [vmem:[#allocation67_spill] sm:$0xff] %v3051_v40 }
  0x7f   : > { %909 = vrot.lane.b32.xlu2 %v3029_v55, %s2465_s29 }
  0x80   : > { %907 = vrot.lane.b32.xlu1 %v3032_v32, %s2465_s29 }
  0x81   : > { %v3043_v44 = vpop.permute.xlu2 %728  ;;  %911 = vrot.lane.b32.xlu0 %v3037_v46, %s2465_s29  ;;  %v849_v46 = vrot.slane %v2736_v14, 2 }
  0x82   : > { %4875 = vst [vmem:[#allocation66_spill] sm:$0xff] %v3043_v44  ;;  %v848_v44 = vrot.slane %v2742_v18, 2 }
  0x84   : > { %v3074_v24 = vsel %vm812_vm4, %v848_v44, %v849_v46  ;;  %v853_v44 = vrot.slane %v2772_v62, 2 }
  0x85   : > { %4880 = vst [vmem:[#allocation71_spill] sm:$0xff] %v3074_v24 }
  0x86   : > { %v3065_v55 = vpop.permute.xlu0 %2442 }
  0x87   : > { %915 = vrot.lane.b32.xlu2 %v3051_v40, %s2465_s29  ;;  %4878 = vst [vmem:[#allocation69_spill] sm:$0xff] %v3065_v55  ;;  %v3077_v40 = vsel %vm812_vm4, %v844_v63, %v846_v20  ;;  %v3082_v55 = vsel %vm812_vm4, %v849_v46, %v851_v3  ;;  %v858_v46 = vrot.slane %v2780_v34, 2  ;;  %v859_v3 = vrot.slane %v2791_v47, 2 }
  0x88   : > { %913 = vrot.lane.b32.xlu1 %v3054_v8, %s2465_s29  ;;  %4881 = vst [vmem:[#allocation72_spill] sm:$0xff] %v3082_v55 }
  0x89   : > { %v3067_v2 = vpop.permute.xlu2 %734  ;;  %917 = vrot.lane.b32.xlu0 %v3059_v25, %s2465_s29 }
  0x8a   : > { %4879 = vst [vmem:[#allocation70_spill] sm:$0xff] %v3067_v2  ;;  %v856_v2 = vrot.slane %v2777_v23, 2  ;;  %v3103_v23 = vsel %vm812_vm4, %v853_v44, %v854_v35 }
  0x8b   : > { %4886 = vst [vmem:[#allocation77_spill] sm:$0xff] %v3103_v23 }
  0x8f   : > { %921 = vrot.lane.b32.xlu2 %v3074_v24, %s2465_s29  ;;  %v3100_v24 = vsel %vm812_vm4, %v854_v35, %v856_v2  ;;  %v861_v2 = vrot.slane %v2795_v52, 2 }
  0x90   : > { %919 = vrot.lane.b32.xlu1 %v3077_v40, %s2465_s29  ;;  %4885 = vst [vmem:[#allocation76_spill] sm:$0xff] %v3100_v24 }
  0x91   : > { %v3088_v16 = vpop.permute.xlu2 %740  ;;  %923 = vrot.lane.b32.xlu0 %v3082_v55, %s2465_s29 }
  0x92   : > { %4882 = vst [vmem:[#allocation73_spill] sm:$0xff] %v3088_v16  ;;  %v3093_v63 = vpop.permute.xlu1 %722  ;;  %v3095_v20 = vpop.permute.xlu0 %720  ;;  %v3108_v16 = vsel %vm812_vm4, %v858_v46, %v859_v3  ;;  %v866_v46 = vrot.slane %v2829_v11, 2 }
  0x93   : > { %4883 = vst [vmem:[#allocation74_spill] sm:$0xff] %v3093_v63  ;;  %v863_v63 = vrot.slane %v2823_v29, 2 }
  0x94   : > { %4884 = vst [vmem:[#allocation75_spill] sm:$0xff] %v3095_v20  ;;  %v864_v20 = vrot.slane %v2826_v36, 2 }
  0x95   : > { %4887 = vst [vmem:[#allocation78_spill] sm:$0xff] %v3108_v16 }
  0x96   : > { %v3133_v52 = vsel %vm812_vm4, %v864_v20, %v866_v46 }
  0x97   : > { %927 = vrot.lane.b32.xlu2 %v3100_v24, %s2465_s29  ;;  %v3125_v24 = vsel %vm812_vm4, %v863_v63, %v864_v20  ;;  %4893 = vst [vmem:[#allocation84_spill] sm:$0xff] %v3133_v52  ;;  %v868_v63 = vrot.slane %v2840_v4, 2  ;;  %v874_v20 = vrot.slane %v2872_v51, 2 }
  0x98   : > { %925 = vrot.lane.b32.xlu1 %v3103_v23, %s2465_s29  ;;  %4891 = vst [vmem:[#allocation82_spill] sm:$0xff] %v3125_v24  ;;  %v3128_v23 = vsel %vm812_vm4, %v859_v3, %v861_v2  ;;  %v873_v2 = vrot.slane %v2862_v41, 2 }
  0x99   : > { %v3114_v55 = vpop.permute.xlu2 %746  ;;  %929 = vrot.lane.b32.xlu0 %v3108_v16, %s2465_s29  ;;  %4892 = vst [vmem:[#allocation83_spill] sm:$0xff] %v3128_v23 }
  0x9a   : > { %4888 = vst [vmem:[#allocation79_spill] sm:$0xff] %v3114_v55  ;;  %v3119_v35 = vpop.permute.xlu1 %724  ;;  %v3121_v44 = vpop.permute.xlu0 %730 }
  0x9b   : > { %4889 = vst [vmem:[#allocation80_spill] sm:$0xff] %v3119_v35  ;;  %v869_v35 = vrot.slane %v2847_v45, 2 }
  0x9c   : > { %4890 = vst [vmem:[#allocation81_spill] sm:$0xff] %v3121_v44  ;;  %v871_v44 = vrot.slane %v2865_v42, 2 }
  0x9d   : > { %v3154_v42 = vsel %vm812_vm4, %v868_v63, %v869_v35  ;;  %v881_v63 = vrot.slane %v2905_v61, 2  ;;  %v886_v61 = vrot.slane %v2944_v9, 2 }
  0x9e   : > { %v3151_v55 = vsel %vm812_vm4, %v869_v35, %v871_v44  ;;  %4898 = vst [vmem:[#allocation89_spill] sm:$0xff] %v3154_v42  ;;  %v4901_v44 = vld [vmem:[#allocation44_spill] sm:$0xff] }
  0x9f   : > { %933 = vrot.lane.b32.xlu2 %v3125_v24, %s2465_s29  ;;  %4897 = vst [vmem:[#allocation88_spill] sm:$0xff] %v3151_v55  ;;  %v876_v24 = vrot.slane %v4901_v44, 2 }
  0xa0   : > { %931 = vrot.lane.b32.xlu1 %v3128_v23, %s2465_s29 }
  0xa1   : > { %v3139_v11 = vpop.permute.xlu2 %752  ;;  %935 = vrot.lane.b32.xlu0 %v3133_v52, %s2465_s29  ;;  %v879_v52 = vrot.slane %v2902_v37, 2 }
  0xa2   : > { %4894 = vst [vmem:[#allocation85_spill] sm:$0xff] %v3139_v11  ;;  %v3144_v3 = vpop.permute.xlu1 %732  ;;  %v3159_v11 = vsel %vm812_vm4, %v873_v2, %v874_v20 }
  0xa3   : > { %4895 = vst [vmem:[#allocation86_spill] sm:$0xff] %v3144_v3  ;;  %v3148_v46 = vpop.permute.xlu0 %736  ;;  %v878_v3 = vrot.slane %v2911_v5, 2  ;;  %v3184_v44 = vsel %vm812_vm4, %v879_v52, %v881_v63 }
  0xa4   : > { %4896 = vst [vmem:[#allocation87_spill] sm:$0xff] %v3148_v46 }
  0xa5   : > { %4899 = vst [vmem:[#allocation90_spill] sm:$0xff] %v3159_v11 }
  0xa6   : > { %4906 = vst [vmem:[#allocation95_spill] sm:$0xff] %v3184_v44 }
  0xa7   : > { %939 = vrot.lane.b32.xlu2 %v3151_v55, %s2465_s29  ;;  %v3176_v55 = vsel %vm812_vm4, %v878_v3, %v879_v52  ;;  %v883_v3 = vrot.slane %v2921_v19, 2  ;;  %v889_v52 = vrot.slane %v2941_v59, 2 }
  0xa8   : > { %937 = vrot.lane.b32.xlu1 %v3154_v42, %s2465_s29  ;;  %4904 = vst [vmem:[#allocation93_spill] sm:$0xff] %v3176_v55  ;;  %v3179_v42 = vsel %vm812_vm4, %v874_v20, %v876_v24  ;;  %v888_v20 = vrot.slane %v2938_v30, 2 }
  0xa9   : > { %v3165_v46 = vpop.permute.xlu2 %758  ;;  %941 = vrot.lane.b32.xlu0 %v3159_v11, %s2465_s29  ;;  %4905 = vst [vmem:[#allocation94_spill] sm:$0xff] %v3179_v42 }
  0xaa   : > { %4900 = vst [vmem:[#allocation91_spill] sm:$0xff] %v3165_v46  ;;  %v3170_v35 = vpop.permute.xlu1 %738 }
  0xab   : > { %4902 = vst [vmem:[#allocation44_spill] sm:$0xff] %v3170_v35  ;;  %v3173_v2 = vpop.permute.xlu0 %742  ;;  %v884_v35 = vrot.slane %v2925_v57, 2 }
  0xac   : > { %4903 = vst [vmem:[#allocation92_spill] sm:$0xff] %v3173_v2 }
  0xad   : > { %v3202_v2 = vsel %vm812_vm4, %v884_v35, %v886_v61  ;;  %v3205_v9 = vsel %vm812_vm4, %v883_v3, %v884_v35 }
  0xae   : > { %4910 = vst [vmem:[#allocation99_spill] sm:$0xff] %v3202_v2 }
  0xaf   : > { %945 = vrot.lane.b32.xlu2 %v3176_v55, %s2465_s29  ;;  %4911 = vst [vmem:[#allocation100_spill] sm:$0xff] %v3205_v9 }
  0xb0   : > { %943 = vrot.lane.b32.xlu1 %v3179_v42, %s2465_s29 }
  0xb1   : > { %v3190_v46 = vpop.permute.xlu2 %764  ;;  %947 = vrot.lane.b32.xlu0 %v3184_v44, %s2465_s29  ;;  %v891_v44 = vrot.slane %v2956_v12, 2 }
  0xb2   : > { %4907 = vst [vmem:[#allocation96_spill] sm:$0xff] %v3190_v46  ;;  %v3195_v24 = vpop.permute.xlu1 %744  ;;  %v3210_v46 = vsel %vm812_vm4, %v888_v20, %v889_v52 }
  0xb3   : > { %4908 = vst [vmem:[#allocation97_spill] sm:$0xff] %v3195_v24  ;;  %v3199_v63 = vpop.permute.xlu0 %748  ;;  %v3224_v3 = vsel %vm812_vm4, %v889_v52, %v891_v44 }
  0xb4   : > { %4909 = vst [vmem:[#allocation98_spill] sm:$0xff] %v3199_v63 }
  0xb5   : > { %4914 = vst [vmem:[#allocation103_spill] sm:$0xff] %v3224_v3 }
  0xb7   : > { %951 = vrot.lane.b32.xlu2 %v3202_v2, %s2465_s29 }
  0xb8   : > { %949 = vrot.lane.b32.xlu1 %v3205_v9, %s2465_s29 }
  0xb9   : > { %v3214_v24 = vpop.permute.xlu2 %770  ;;  %953 = vrot.lane.b32.xlu0 %v3210_v46, %s2465_s29 }
  0xba   : > { %4912 = vst [vmem:[#allocation101_spill] sm:$0xff] %v3214_v24  ;;  %v3219_v61 = vpop.permute.xlu1 %750 }
  0xbb   : > { %v3221_v35 = vpop.permute.xlu0 %754 }
  0xbc   : > { %4913 = vst [vmem:[#allocation102_spill] sm:$0xff] %v3221_v35  ;;  %v266_v35 = vld [vmem:[%s2536_s25 + $0xf0] sm:$0xff] }
  0xbf   : > { %990 = vrot.lane.b32.xlu2 %v2595_v58, %s2466_s30 }
  0xc0   : > { %955 = vrot.lane.b32.xlu1 %v3224_v3, %s2465_s29 }
  0xc1   : > { %v3230_v20 = vpop.permute.xlu2 %776  ;;  %992 = vrot.lane.b32.xlu0 %v2587_v54, %s2466_s30 }
  0xc2   : > { %4915 = vst [vmem:[#allocation104_spill] sm:$0xff] %v3230_v20  ;;  %v3234_v12 = vpop.permute.xlu1 %756 }
  0xc3   : > { %v3236_v24 = vpop.permute.xlu0 %760 }
  0xc4   : > { %4916 = vst [vmem:[#allocation105_spill] sm:$0xff] %v3236_v24 }
  0xc7   : > { %996 = vrot.lane.b32.xlu2 %v2575_v48, %s2466_s30 }
  0xc8   : > { %994 = vrot.lane.b32.xlu1 %v2581_v50, %s2466_s30 }
  0xc9   : > { %v3242_v44 = vpop.permute.xlu2 %897  ;;  %998 = vrot.lane.b32.xlu0 %v2617_v13, %s2466_s30 }
  0xca   : > { %4917 = vst [vmem:[#allocation106_spill] sm:$0xff] %v3242_v44  ;;  %v3246_v52 = vpop.permute.xlu1 %762 }
  0xcb   : > { %v3248_v58 = vpop.permute.xlu0 %766 }
  0xcc   : > { %4918 = vst [vmem:[#allocation107_spill] sm:$0xff] %v3248_v58 }
  0xcf   : > { %1002 = vrot.lane.b32.xlu2 %v2651_v39, %s2466_s30 }
  0xd0   : > { %1000 = vrot.lane.b32.xlu1 %v2624_v17, %s2466_s30 }
  0xd1   : > { %v3254_v54 = vpop.permute.xlu2 %903  ;;  %1004 = vrot.lane.b32.xlu0 %v2659_v43, %s2466_s30 }
  0xd2   : > { %4919 = vst [vmem:[#allocation108_spill] sm:$0xff] %v3254_v54  ;;  %v3258_v20 = vpop.permute.xlu1 %768 }
  0xd3   : > { %4920 = vst [vmem:[#allocation109_spill] sm:$0xff] %v3258_v20  ;;  %v3260_v44 = vpop.permute.xlu0 %772  ;;  %v4961_v20 = vld [vmem:[#allocation25_spill] sm:$0xff] }
  0xd4   : > { %4921 = vst [vmem:[#allocation110_spill] sm:$0xff] %v3260_v44 }
  0xd7   : > { %1008 = vrot.lane.b32.xlu2 %v2684_v22, %s2466_s30 }
  0xd8   : > { %1006 = vrot.lane.b32.xlu1 %v2681_v15, %s2466_s30 }
  0xd9   : > { %v3266_v58 = vpop.permute.xlu2 %909  ;;  %1010 = vrot.lane.b32.xlu0 %v2694_v27, %s2466_s30 }
  0xda   : > { %4922 = vst [vmem:[#allocation111_spill] sm:$0xff] %v3266_v58  ;;  %v3270_v24 = vpop.permute.xlu1 %774 }
  0xdb   : > { %4923 = vst [vmem:[#allocation112_spill] sm:$0xff] %v3270_v24  ;;  %v3272_v54 = vpop.permute.xlu0 %778  ;;  %v267_v24 = vld [vmem:[%s2536_s25 + $0xf8] sm:$0xff] }
  0xdc   : > { %4924 = vst [vmem:[#allocation113_spill] sm:$0xff] %v3272_v54 }
  0xdf   : > { %1014 = vrot.lane.b32.xlu2 %v2742_v18, %s2466_s30 }
  0xe0   : > { %1012 = vrot.lane.b32.xlu1 %v2702_v33, %s2466_s30 }
  0xe1   : > { %v3278_v44 = vpop.permute.xlu2 %915  ;;  %1016 = vrot.lane.b32.xlu0 %v2736_v14, %s2466_s30  ;;  %v4973_v14 = vld [vmem:[#allocation34_spill] sm:$0xff] }
  0xe2   : > { %4925 = vst [vmem:[#allocation114_spill] sm:$0xff] %v3278_v44  ;;  %v3282_v22 = vpop.permute.xlu1 %2447 }
  0xe3   : > { %4926 = vst [vmem:[#allocation115_spill] sm:$0xff] %v3282_v22  ;;  %v3284_v58 = vpop.permute.xlu0 %899 }
  0xe4   : > { %4927 = vst [vmem:[#allocation116_spill] sm:$0xff] %v3284_v58 }
  0xe7   : > { %1020 = vrot.lane.b32.xlu2 %v2769_v6, %s2466_s30 }
  0xe8   : > { %1018 = vrot.lane.b32.xlu1 %v2772_v62, %s2466_s30 }
  0xe9   : > { %v3290_v15 = vpop.permute.xlu2 %921  ;;  %1022 = vrot.lane.b32.xlu0 %v2780_v34, %s2466_s30 }
  0xea   : > { %v3294_v44 = vpop.permute.xlu1 %901 }
  0xeb   : > { %4928 = vst [vmem:[#allocation117_spill] sm:$0xff] %v3294_v44  ;;  %v3296_v54 = vpop.permute.xlu0 %905  ;;  %v2453_v44 = vld [vmem:[%s4664_s1] ss:$0 sm:$0xff] }
  0xec   : > { %4929 = vst [vmem:[#allocation118_spill] sm:$0xff] %v3296_v54  ;;  %v304_v34 = vmul.f32 %v2453_v44, %v267_v24 }
  0xef   : > { %1026 = vrot.lane.b32.xlu2 %v2823_v29, %s2466_s30 }
  0xf0   : > { %1024 = vrot.lane.b32.xlu1 %v2791_v47, %s2466_s30  ;;  %v303_v47 = vmul.f32 %v2453_v44, %v266_v35 }
  0xf1   : > { %v3302_v58 = vpop.permute.xlu2 %927  ;;  %1028 = vrot.lane.b32.xlu0 %v2826_v36, %s2466_s30 }
  0xf2   : > { %v3306_v22 = vpop.permute.xlu1 %907 }
  0xf3   : > { %4930 = vst [vmem:[#allocation119_spill] sm:$0xff] %v3306_v22  ;;  %v3308_v43 = vpop.permute.xlu0 %911 }
  0xf4   : > { %4931 = vst [vmem:[#allocation120_spill] sm:$0xff] %v3308_v43 }
  0xf7   : > { %1032 = vrot.lane.b32.xlu2 %v2847_v45, %s2466_s30 }
  0xf8   : > { %1030 = vrot.lane.b32.xlu1 %v2840_v4, %s2466_s30  ;;  %v2454_v4 = vld [vmem:[%s4665_s2] ss:$0 sm:$0xff] }
  0xf9   : > { %v3315_v54 = vpop.permute.xlu2 %933  ;;  %1034 = vrot.lane.b32.xlu0 %v2862_v41, %s2466_s30  ;;  %v338_v62 = vadd.f32 %v2454_v4, %v303_v47  ;;  %v339_v35 = vadd.f32 %v2454_v4, %v304_v34 }
  0xfa   : > { %v3323_v22 = vpop.permute.xlu1 %913 }
  0xfb   : > { %4932 = vst [vmem:[#allocation121_spill] sm:$0xff] %v3323_v22  ;;  %v3325_v43 = vpop.permute.xlu0 %917  ;;  %v402_v41 = vmul.f32 0.1, %v338_v62  ;;  %vm370_vm5 = vcmp.gt.f32.partialorder %v338_v62, 0.0  ;;  %v403_v44 = vmul.f32 0.1, %v339_v35 }
  0xfc   : > { %4933 = vst [vmem:[#allocation122_spill] sm:$0xff] %v3325_v43  ;;  %vm371_vm6 = vcmp.gt.f32.partialorder %v339_v35, 0.0 }
  0xfd   : > { %v434_v47 = vsel %vm370_vm5, %v338_v62, %v402_v41  ;;  %v3346_v4 = vsel %vm371_vm6, %v339_v35, %v403_v44 }
  0xfe   : > { %v517_v34 = vrot.slane %v434_v47, 7 }
  0xff   : > { %1038 = vrot.lane.b32.xlu2 %v2911_v5, %s2466_s30 }
 0x100   : > { %1036 = vrot.lane.b32.xlu1 %v2872_v51, %s2466_s30  ;;  %v4774_v51 = vrot.slane %v3346_v4, 7  ;;  %v3358_v41 = vsel %vm469_vm0, 0.0, %v517_v34 }
 0x101   : > { %v3334_v63 = vpop.permute.xlu2 %939  ;;  %1040 = vrot.lane.b32.xlu0 %v2902_v37, %s2466_s30  ;;  %4938 = vst [vmem:[#allocation127_spill] sm:$0xff] %v3358_v41 }
 0x102   : > { %v3338_v43 = vpop.permute.xlu1 %919  ;;  %v3365_v35 = vsel %vm469_vm0, %v517_v34, %v4774_v51  ;;  %v4946_v51 = vld [vmem:[#allocation14_spill] sm:$0xff] }
 0x103   : > { %v3340_v24 = vpop.permute.xlu0 %923  ;;  %4939 = vst [vmem:[#allocation128_spill] sm:$0xff] %v3365_v35 }
 0x104   : > { %4934 = vst [vmem:[#allocation123_spill] sm:$0xff] %v3340_v24  ;;  %v4970_v24 = vld [vmem:[#allocation32_spill] sm:$0xff] }
 0x107   : > { %1044 = vrot.lane.b32.xlu2 %v2925_v57, %s2466_s30  ;;  %v4944_v57 = vld [vmem:[#allocation11_spill] sm:$0xff] }
 0x108   : > { %1042 = vrot.lane.b32.xlu1 %v2921_v19, %s2466_s30  ;;  %v4943_v19 = vld [vmem:[#allocation10_spill] sm:$0xff] }
 0x109   : > { %v3348_v22 = vpop.permute.xlu2 %945  ;;  %1046 = vrot.lane.b32.xlu0 %v2938_v30, %s2466_s30 }
 0x10a   : > { %4935 = vst [vmem:[#allocation124_spill] sm:$0xff] %v3348_v22  ;;  %v3352_v37 = vpop.permute.xlu1 %925  ;;  %v4958_v22 = vld [vmem:[#allocation23_spill] sm:$0xff] }
 0x10b   : > { %4936 = vst [vmem:[#allocation125_spill] sm:$0xff] %v3352_v37  ;;  %v3355_v62 = vpop.permute.xlu0 %929  ;;  %v4955_v37 = vld [vmem:[#allocation18_spill] sm:$0xff] }
 0x10c   : > { %4937 = vst [vmem:[#allocation126_spill] sm:$0xff] %v3355_v62 }
 0x10f   : > { %1050 = vrot.lane.b32.xlu2 %v3358_v41, %s2466_s30 }
 0x110   : > { %1048 = vrot.lane.b32.xlu1 %v2941_v59, %s2466_s30 }
 0x111   : > { %v3369_v44 = vpop.permute.xlu2 %951  ;;  %1052 = vrot.lane.b32.xlu0 %v3365_v35, %s2466_s30 }
 0x112   : > { %4940 = vst [vmem:[#allocation129_spill] sm:$0xff] %v3369_v44  ;;  %v3373_v47 = vpop.permute.xlu1 %931 }
 0x113   : > { %4941 = vst [vmem:[#allocation130_spill] sm:$0xff] %v3373_v47  ;;  %v3375_v30 = vpop.permute.xlu0 %935  ;;  %v4949_v47 = vld [vmem:[#allocation15_spill] sm:$0xff] }
 0x114   : > { %4942 = vst [vmem:[#allocation131_spill] sm:$0xff] %v3375_v30  ;;  %v4950_v30 = vld [vmem:[#allocation9_spill] sm:$0xff] }
 0x117   : > { %1094 = vrot.lane.b32.xlu2 %v4943_v19, %s2467_s10  ;;  %v4952_v19 = vld [vmem:[#allocation16_spill] sm:$0xff] }
 0x118   : > { %1092 = vrot.lane.b32.xlu1 %v4944_v57, %s2467_s10 }
 0x119   : > { %v3381_v34 = vpop.permute.xlu2 %990  ;;  %1096 = vrot.lane.b32.xlu0 %v4946_v51, %s2467_s10 }
 0x11a   : > { %4945 = vst [vmem:[#allocation10_spill] sm:$0xff] %v3381_v34  ;;  %v3385_v59 = vpop.permute.xlu1 %937 }
 0x11b   : > { %4947 = vst [vmem:[#allocation11_spill] sm:$0xff] %v3385_v59  ;;  %v3387_v44 = vpop.permute.xlu0 %941 }
 0x11c   : > { %4948 = vst [vmem:[#allocation14_spill] sm:$0xff] %v3387_v44  ;;  %v4956_v44 = vld [vmem:[#allocation19_spill] sm:$0xff] }
 0x11f   : > { %1100 = vrot.lane.b32.xlu2 %v4949_v47, %s2467_s10 }
 0x120   : > { %1098 = vrot.lane.b32.xlu1 %v4950_v30, %s2467_s10 }
 0x121   : > { %v3393_v62 = vpop.permute.xlu2 %996  ;;  %1102 = vrot.lane.b32.xlu0 %v4952_v19, %s2467_s10 }
 0x122   : > { %4951 = vst [vmem:[#allocation15_spill] sm:$0xff] %v3393_v62  ;;  %v3397_v57 = vpop.permute.xlu1 %943 }
 0x123   : > { %4953 = vst [vmem:[#allocation9_spill] sm:$0xff] %v3397_v57  ;;  %v3399_v34 = vpop.permute.xlu0 %947 }
 0x124   : > { %4954 = vst [vmem:[#allocation16_spill] sm:$0xff] %v3399_v34  ;;  %v4962_v34 = vld [vmem:[#allocation24_spill] sm:$0xff] }
 0x127   : > { %1106 = vrot.lane.b32.xlu2 %v4955_v37, %s2467_s10  ;;  %v4964_v37 = vld [vmem:[#allocation26_spill] sm:$0xff] }
 0x128   : > { %1104 = vrot.lane.b32.xlu1 %v4956_v44, %s2467_s10 }
 0x129   : > { %v3405_v59 = vpop.permute.xlu2 %1002  ;;  %1108 = vrot.lane.b32.xlu0 %v4958_v22, %s2467_s10  ;;  %v4967_v22 = vld [vmem:[#allocation28_spill] sm:$0xff] }
 0x12a   : > { %4957 = vst [vmem:[#allocation132_spill] sm:$0xff] %v3405_v59  ;;  %v3409_v5 = vpop.permute.xlu1 %949 }
 0x12b   : > { %4959 = vst [vmem:[#allocation133_spill] sm:$0xff] %v3409_v5  ;;  %v3411_v62 = vpop.permute.xlu0 %953 }
 0x12c   : > { %4960 = vst [vmem:[#allocation134_spill] sm:$0xff] %v3411_v62  ;;  %v4968_v62 = vld [vmem:[#allocation29_spill] sm:$0xff] }
 0x12f   : > { %1112 = vrot.lane.b32.xlu2 %v4961_v20, %s2467_s10 }
 0x130   : > { %1110 = vrot.lane.b32.xlu1 %v4962_v34, %s2467_s10 }
 0x131   : > { %v3417_v57 = vpop.permute.xlu2 %1008  ;;  %1114 = vrot.lane.b32.xlu0 %v4964_v37, %s2467_s10 }
 0x132   : > { %4963 = vst [vmem:[#allocation25_spill] sm:$0xff] %v3417_v57  ;;  %v3421_v36 = vpop.permute.xlu1 %955 }
 0x133   : > { %4965 = vst [vmem:[#allocation26_spill] sm:$0xff] %v3421_v36  ;;  %v3423_v59 = vpop.permute.xlu0 %992 }
 0x134   : > { %4966 = vst [vmem:[#allocation135_spill] sm:$0xff] %v3423_v59  ;;  %v4974_v59 = vld [vmem:[#allocation35_spill] sm:$0xff] }
 0x137   : > { %1118 = vrot.lane.b32.xlu2 %v4967_v22, %s2467_s10  ;;  %v4975_v22 = vld [vmem:[#allocation36_spill] sm:$0xff] }
 0x138   : > { %1116 = vrot.lane.b32.xlu1 %v4968_v62, %s2467_s10 }
 0x139   : > { %v3429_v5 = vpop.permute.xlu2 %1014  ;;  %1120 = vrot.lane.b32.xlu0 %v4970_v24, %s2467_s10  ;;  %v4978_v24 = vld [vmem:[#allocation39_spill] sm:$0xff] }
 0x13a   : > { %4969 = vst [vmem:[#allocation29_spill] sm:$0xff] %v3429_v5  ;;  %v3433_v34 = vpop.permute.xlu1 %994 }
 0x13b   : > { %4971 = vst [vmem:[#allocation136_spill] sm:$0xff] %v3433_v34  ;;  %v3435_v57 = vpop.permute.xlu0 %998 }
 0x13c   : > { %4972 = vst [vmem:[#allocation137_spill] sm:$0xff] %v3435_v57  ;;  %v4979_v57 = vld [vmem:[#allocation40_spill] sm:$0xff] }
 0x13f   : > { %1124 = vrot.lane.b32.xlu2 %v4973_v14, %s2467_s10 }
 0x140   : > { %1122 = vrot.lane.b32.xlu1 %v4974_v59, %s2467_s10 }
 0x141   : > { %v3441_v36 = vpop.permute.xlu2 %1020  ;;  %1126 = vrot.lane.b32.xlu0 %v4975_v22, %s2467_s10 }
 0x142   : > { %v3445_v44 = vpop.permute.xlu1 %1000 }
 0x143   : > { %4976 = vst [vmem:[#allocation138_spill] sm:$0xff] %v3445_v44  ;;  %v3447_v5 = vpop.permute.xlu0 %1004 }
 0x144   : > { %4977 = vst [vmem:[#allocation139_spill] sm:$0xff] %v3447_v5  ;;  %v4983_v5 = vld [vmem:[#allocation46_spill] sm:$0xff] }
 0x147   : > { %1130 = vrot.lane.b32.xlu2 %v4978_v24, %s2467_s10 }
 0x148   : > { %1128 = vrot.lane.b32.xlu1 %v4979_v57, %s2467_s10 }
 0x149   : > { %v3453_v34 = vpop.permute.xlu2 %1026  ;;  %1132 = vrot.lane.b32.xlu0 %v2869_v38, %s2467_s10  ;;  %v1087_v38 = vrot.slane %v3358_v41, 1 }
 0x14a   : > { %4980 = vst [vmem:[#allocation40_spill] sm:$0xff] %v3453_v34  ;;  %v3457_v14 = vpop.permute.xlu1 %1006 }
 0x14b   : > { %4981 = vst [vmem:[#allocation140_spill] sm:$0xff] %v3457_v14  ;;  %v3459_v59 = vpop.permute.xlu0 %1010 }
 0x14c   : > { %4982 = vst [vmem:[#allocation141_spill] sm:$0xff] %v3459_v59 }
 0x14f   : > { %1136 = vrot.lane.b32.xlu2 %v2895_v0, %s2467_s10 }
 0x150   : > { %1134 = vrot.lane.b32.xlu1 %v4983_v5, %s2467_s10 }
 0x151   : > { %v3465_v22 = vpop.permute.xlu2 %1032  ;;  %1138 = vrot.lane.b32.xlu0 %v2908_v31, %s2467_s10  ;;  %v4987_v31 = vrot.slane %v3346_v4, 7 }
 0x152   : > { %4984 = vst [vmem:[#allocation142_spill] sm:$0xff] %v3465_v22  ;;  %v3469_v44 = vpop.permute.xlu1 %1012 }
 0x153   : > { %4985 = vst [vmem:[#allocation143_spill] sm:$0xff] %v3469_v44  ;;  %v3471_v34 = vpop.permute.xlu0 %1016  ;;  %v3488_v44 = vsel %vm469_vm0, %v4987_v31, 0.0 }
 0x157   : > { %1142 = vrot.lane.b32.xlu2 %v2932_v10, %s2467_s10  ;;  %v1088_v10 = vrot.slane %v3365_v35, 1 }
 0x158   : > { %1140 = vrot.lane.b32.xlu1 %v2935_v56, %s2467_s10  ;;  %v1090_v56 = vrot.slane %v3488_v44, 1 }
 0x159   : > { %v3477_v59 = vpop.permute.xlu2 %1038  ;;  %1144 = vrot.lane.b32.xlu0 %v2949_v53, %s2467_s10 }
 0x15a   : > { %4986 = vst [vmem:[#allocation144_spill] sm:$0xff] %v3477_v59  ;;  %v3481_v0 = vpop.permute.xlu1 %1018  ;;  %v5002_v59 = vld [vmem:[#allocation67_spill] sm:$0xff] }
 0x15b   : > { %v3483_v14 = vpop.permute.xlu0 %1022 }
 0x15f   : > { %1148 = vrot.lane.b32.xlu2 %v2963_v26, %s2467_s10  ;;  %v3506_v26 = vsel %vm635_vm1, %v1088_v10, %v1090_v56 }
 0x160   : > { %1146 = vrot.lane.b32.xlu1 %v2967_v21, %s2467_s10  ;;  %4990 = vst [vmem:[#allocation147_spill] sm:$0xff] %v3506_v26  ;;  %v3509_v21 = vsel %vm635_vm1, %v1087_v38, %v1088_v10  ;;  %v4995_v10 = vld [vmem:[#allocation62_spill] sm:$0xff]  ;;  %vm1577_vm1 = vcmask 64512  }
 0x161   : > { %v3496_v5 = vpop.permute.xlu2 %1044  ;;  %1150 = vrot.lane.b32.xlu0 %v2974_v28, %s2467_s10  ;;  %4991 = vst [vmem:[#allocation148_spill] sm:$0xff] %v3509_v21 }
 0x162   : > { %4988 = vst [vmem:[#allocation145_spill] sm:$0xff] %v3496_v5  ;;  %v3501_v4 = vpop.permute.xlu1 %1024 }
 0x163   : > { %v3503_v31 = vpop.permute.xlu0 %1028 }
 0x164   : > { %4989 = vst [vmem:[#allocation146_spill] sm:$0xff] %v3503_v31  ;;  %v5011_v31 = vld [vmem:[#allocation76_spill] sm:$0xff] }
 0x167   : > { %1154 = vrot.lane.b32.xlu2 %v3506_v26, %s2467_s10 }
 0x168   : > { %1152 = vrot.lane.b32.xlu1 %v3509_v21, %s2467_s10  ;;  %v4998_v21 = vld [vmem:[#allocation64_spill] sm:$0xff] }
 0x169   : > { %v3515_v53 = vpop.permute.xlu2 %1050  ;;  %1193 = vrot.lane.b32.xlu0 %v2990_v60, %s2468_s11 }
 0x16a   : > { %4992 = vst [vmem:[#allocation149_spill] sm:$0xff] %v3515_v53  ;;  %v3519_v28 = vpop.permute.xlu1 %1030  ;;  %v5000_v53 = vld [vmem:[#allocation65_spill] sm:$0xff] }
 0x16b   : > { %v3521_v5 = vpop.permute.xlu0 %1034 }
 0x16c   : > { %4993 = vst [vmem:[#allocation150_spill] sm:$0xff] %v3521_v5 }
 0x16f   : > { %1197 = vrot.lane.b32.xlu2 %v3011_v1, %s2468_s11 }
 0x170   : > { %1195 = vrot.lane.b32.xlu1 %v2997_v7, %s2468_s11 }
 0x171   : > { %v3527_v38 = vpop.permute.xlu2 %1094  ;;  %1199 = vrot.lane.b32.xlu0 %v4995_v10, %s2468_s11 }
 0x172   : > { %4994 = vst [vmem:[#allocation151_spill] sm:$0xff] %v3527_v38  ;;  %v3531_v56 = vpop.permute.xlu1 %1036 }
 0x173   : > { %v3533_v26 = vpop.permute.xlu0 %1040 }
 0x174   : > { %4996 = vst [vmem:[#allocation62_spill] sm:$0xff] %v3533_v26 }
 0x177   : > { %1203 = vrot.lane.b32.xlu2 %v3032_v32, %s2468_s11 }
 0x178   : > { %1201 = vrot.lane.b32.xlu1 %v3016_v49, %s2468_s11 }
 0x179   : > { %v3539_v60 = vpop.permute.xlu2 %1100  ;;  %1205 = vrot.lane.b32.xlu0 %v4998_v21, %s2468_s11 }
 0x17a   : > { %4997 = vst [vmem:[#allocation152_spill] sm:$0xff] %v3539_v60  ;;  %v3543_v7 = vpop.permute.xlu1 %1042 }
 0x17b   : > { %v3545_v38 = vpop.permute.xlu0 %1046 }
 0x17c   : > { %4999 = vst [vmem:[#allocation64_spill] sm:$0xff] %v3545_v38 }
 0x17f   : > { %1209 = vrot.lane.b32.xlu2 %v3054_v8, %s2468_s11  ;;  %v5006_v8 = vld [vmem:[#allocation71_spill] sm:$0xff] }
 0x180   : > { %1207 = vrot.lane.b32.xlu1 %v5000_v53, %s2468_s11 }
 0x181   : > { %v3551_v26 = vpop.permute.xlu2 %1106  ;;  %1211 = vrot.lane.b32.xlu0 %v5002_v59, %s2468_s11  ;;  %v5009_v59 = vld [vmem:[#allocation77_spill] sm:$0xff] }
 0x182   : > { %5001 = vst [vmem:[#allocation153_spill] sm:$0xff] %v3551_v26  ;;  %v3555_v5 = vpop.permute.xlu1 %1048 }
 0x183   : > { %5003 = vst [vmem:[#allocation154_spill] sm:$0xff] %v3555_v5  ;;  %v3557_v60 = vpop.permute.xlu0 %1052 }
 0x184   : > { %5004 = vst [vmem:[#allocation155_spill] sm:$0xff] %v3557_v60  ;;  %v5010_v60 = vld [vmem:[#allocation72_spill] sm:$0xff] }
 0x187   : > { %1215 = vrot.lane.b32.xlu2 %v3077_v40, %s2468_s11 }
 0x188   : > { %1213 = vrot.lane.b32.xlu1 %v3059_v25, %s2468_s11 }
 0x189   : > { %v3563_v38 = vpop.permute.xlu2 %1112  ;;  %1217 = vrot.lane.b32.xlu0 %v5006_v8, %s2468_s11 }
 0x18a   : > { %5005 = vst [vmem:[#allocation156_spill] sm:$0xff] %v3563_v38  ;;  %v3567_v53 = vpop.permute.xlu1 %1092 }
 0x18b   : > { %5007 = vst [vmem:[#allocation71_spill] sm:$0xff] %v3567_v53  ;;  %v3569_v26 = vpop.permute.xlu0 %1096 }
 0x18c   : > { %5008 = vst [vmem:[#allocation157_spill] sm:$0xff] %v3569_v26 }
 0x18f   : > { %1221 = vrot.lane.b32.xlu2 %v5009_v59, %s2468_s11  ;;  %v5014_v59 = vld [vmem:[#allocation82_spill] sm:$0xff] }
 0x190   : > { %1219 = vrot.lane.b32.xlu1 %v5010_v60, %s2468_s11 }
 0x191   : > { %v3575_v22 = vpop.permute.xlu2 %1118  ;;  %1223 = vrot.lane.b32.xlu0 %v5011_v31, %s2468_s11  ;;  %v5017_v31 = vld [vmem:[#allocation89_spill] sm:$0xff] }
 0x192   : > { %v3579_v5 = vpop.permute.xlu1 %1098 }
 0x193   : > { %5012 = vst [vmem:[#allocation158_spill] sm:$0xff] %v3579_v5  ;;  %v3581_v38 = vpop.permute.xlu0 %1102 }
 0x194   : > { %5013 = vst [vmem:[#allocation159_spill] sm:$0xff] %v3581_v38  ;;  %v5018_v38 = vld [vmem:[#allocation84_spill] sm:$0xff] }
 0x197   : > { %1227 = vrot.lane.b32.xlu2 %v3128_v23, %s2468_s11  ;;  %v5019_v23 = vld [vmem:[#allocation88_spill] sm:$0xff] }
 0x198   : > { %1225 = vrot.lane.b32.xlu1 %v3108_v16, %s2468_s11 }
 0x199   : > { %v3587_v26 = vpop.permute.xlu2 %1124  ;;  %1229 = vrot.lane.b32.xlu0 %v5014_v59, %s2468_s11 }
 0x19a   : > { %v3591_v53 = vpop.permute.xlu1 %1104 }
 0x19b   : > { %5015 = vst [vmem:[#allocation82_spill] sm:$0xff] %v3591_v53  ;;  %v3593_v60 = vpop.permute.xlu0 %1108 }
 0x19c   : > { %5016 = vst [vmem:[#allocation160_spill] sm:$0xff] %v3593_v60 }
 0x19f   : > { %1233 = vrot.lane.b32.xlu2 %v5017_v31, %s2468_s11 }
 0x1a0   : > { %1231 = vrot.lane.b32.xlu1 %v5018_v38, %s2468_s11 }
 0x1a1   : > { %v3599_v5 = vpop.permute.xlu2 %1130  ;;  %1235 = vrot.lane.b32.xlu0 %v5019_v23, %s2468_s11 }
 0x1a2   : > { %v3603_v16 = vpop.permute.xlu1 %1110 }
 0x1a3   : > { %5020 = vst [vmem:[#allocation84_spill] sm:$0xff] %v3603_v16  ;;  %v3605_v24 = vpop.permute.xlu0 %1114  ;;  %v5023_v16 = vld [vmem:[#allocation95_spill] sm:$0xff] }
 0x1a4   : > { %5021 = vst [vmem:[#allocation161_spill] sm:$0xff] %v3605_v24 }
 0x1a7   : > { %1239 = vrot.lane.b32.xlu2 %v3179_v42, %s2468_s11 }
 0x1a8   : > { %1237 = vrot.lane.b32.xlu1 %v3159_v11, %s2468_s11  ;;  %v1188_v11 = vrot.slane %v3358_v41, 2 }
 0x1a9   : > { %v3611_v53 = vpop.permute.xlu2 %1136  ;;  %1241 = vrot.lane.b32.xlu0 %v3176_v55, %s2468_s11  ;;  %v1189_v55 = vrot.slane %v3365_v35, 2 }
 0x1aa   : > { %v3615_v60 = vpop.permute.xlu1 %1116 }
 0x1ab   : > { %5022 = vst [vmem:[#allocation162_spill] sm:$0xff] %v3615_v60  ;;  %v1121_v31 = vpop.permute.xlu0 %1120  ;;  %v3634_v60 = vsel %vm812_vm4, %v1188_v11, %v1189_v55 }
 0x1ac   : > { %5024 = vst [vmem:[#allocation163_spill] sm:$0xff] %v3634_v60 }
 0x1af   : > { %1245 = vrot.lane.b32.xlu2 %v3205_v9, %s2468_s11 }
 0x1b0   : > { %1243 = vrot.lane.b32.xlu1 %v5023_v16, %s2468_s11 }
 0x1b1   : > { %v3621_v24 = vpop.permute.xlu2 %1142  ;;  %1247 = vrot.lane.b32.xlu0 %v3202_v2, %s2468_s11  ;;  %v1191_v2 = vrot.slane %v3488_v44, 2 }
 0x1b2   : > { %v3625_v42 = vpop.permute.xlu1 %1122 }
 0x1b3   : > { %v3629_v23 = vpop.permute.xlu0 %1126  ;;  %v3648_v9 = vsel %vm812_vm4, %v1189_v55, %v1191_v2 }
 0x1b4   : > { %5025 = vst [vmem:[#allocation164_spill] sm:$0xff] %v3648_v9 }
 0x1b7   : > { %1251 = vrot.lane.b32.xlu2 %v3224_v3, %s2468_s11 }
 0x1b8   : > { %1249 = vrot.lane.b32.xlu1 %v3210_v46, %s2468_s11 }
 0x1b9   : > { %v3638_v16 = vpop.permute.xlu2 %1148  ;;  %1253 = vrot.lane.b32.xlu0 %v3634_v60, %s2468_s11 }
 0x1ba   : > { %v3643_v41 = vpop.permute.xlu1 %1128 }
 0x1bb   : > { %v3645_v35 = vpop.permute.xlu0 %1132 }
 0x1bf   : > { %1289 = vrot.lane.b32.xlu2 %v2581_v50, %s2469_s12 }
 0x1c0   : > { %1255 = vrot.lane.b32.xlu1 %v3648_v9, %s2468_s11 }
 0x1c1   : > { %v3654_v11 = vpop.permute.xlu2 %1154  ;;  %1385 = vrot.lane.b32.xlu0 %v4946_v51, %s2470_s13 }
 0x1c2   : > { %v3658_v44 = vpop.permute.xlu1 %1134 }
 0x1c3   : > { %v3660_v60 = vpop.permute.xlu0 %1138 }
 0x1c7   : > { %1291 = vrot.lane.b32.xlu2 %v2575_v48, %s2469_s12 }
 0x1c8   : > { %1481 = vrot.lane.b32.xlu1 %v3011_v1, %s2471_s14 }
 0x1c9   : > { %v3666_v55 = vpop.permute.xlu2 %1197  ;;  %1387 = vrot.lane.b32.xlu0 %v4950_v30, %s2470_s13 }
 0x1ca   : > { %v3670_v2 = vpop.permute.xlu1 %1140 }
 0x1cb   : > { %v3672_v9 = vpop.permute.xlu0 %1144 }
 0x1cf   : > { %1293 = vrot.lane.b32.xlu2 %v2617_v13, %s2469_s12 }
 0x1d0   : > { %1483 = vrot.lane.b32.xlu1 %v4995_v10, %s2471_s14 }
 0x1d1   : > { %v3678_v51 = vpop.permute.xlu2 %1203  ;;  %1305 = vrot.lane.b32.xlu0 %v2694_v27, %s2469_s12 }
 0x1d2   : > { %5026 = vst [vmem:[#allocation165_spill] sm:$0xff] %v3678_v51  ;;  %v3682_v1 = vpop.permute.xlu1 %1146 }
 0x1d3   : > { %v3684_v3 = vpop.permute.xlu0 %1150 }
 0x1d7   : > { %1401 = vrot.lane.b32.xlu2 %v4961_v20, %s2470_s13 }
 0x1d8   : > { %1389 = vrot.lane.b32.xlu1 %v4949_v47, %s2470_s13 }
 0x1d9   : > { %v3690_v30 = vpop.permute.xlu2 %1209  ;;  %1485 = vrot.lane.b32.xlu0 %v3016_v49, %s2471_s14  ;;  %v5028_v49 = vld [vmem:[#allocation97_spill] sm:$0xff] }
 0x1da   : > { %v3694_v10 = vpop.permute.xlu1 %1152  ;;  %v1592_v51 = vsel %vm1577_vm1, %v2742_v18, %v5028_v49  ;;  %v5029_v49 = vld [vmem:[#allocation92_spill] sm:$0xff] }
 0x1db   : > { %v3696_v13 = vpop.permute.xlu0 %1193 }
 0x1df   : > { %1295 = vrot.lane.b32.xlu2 %v2624_v17, %s2469_s12  ;;  %v1625_v17 = vsel %vm1610_vm7, %v1592_v51, %v3290_v15 }
 0x1e0   : > { %1497 = vrot.lane.b32.xlu1 %v3059_v25, %s2471_s14  ;;  %v1658_v25 = vsel %vm1643_vm8, %v1625_v17, %v3481_v0  ;;  %v1595_v0 = vsel %vm1577_vm1, %v2769_v6, %v3219_v61 }
 0x1e1   : > { %v3702_v27 = vpop.permute.xlu2 %1215  ;;  %1307 = vrot.lane.b32.xlu0 %v2702_v33, %s2469_s12  ;;  %v1628_v17 = vsel %vm1610_vm7, %v1595_v0, %v3302_v58  ;;  %v5030_v0 = vld [vmem:[#allocation19_spill] sm:$0xff] }
 0x1e2   : > { %5027 = vst [vmem:[#allocation166_spill] sm:$0xff] %v3702_v27  ;;  %v3706_v20 = vpop.permute.xlu1 %1195  ;;  %v1691_v27 = vsel %vm1676_vm9, %v1658_v25, %v1121_v31 }
 0x1e3   : > { %v3708_v47 = vpop.permute.xlu0 %1199 }
 0x1e7   : > { %1403 = vrot.lane.b32.xlu2 %v4964_v37, %s2470_s13 }
 0x1e8   : > { %1391 = vrot.lane.b32.xlu1 %v4952_v19, %s2470_s13  ;;  %v1661_v19 = vsel %vm1643_vm8, %v1628_v17, %v3501_v4  ;;  %v5032_v17 = vld [vmem:[#allocation27_spill] sm:$0xff] }
 0x1e9   : > { %v1222_v48 = vpop.permute.xlu2 %1221  ;;  %1321 = vrot.lane.b32.xlu0 %v2823_v29, %s2469_s12 }
 0x1ea   : > { %v3725_v15 = vsel %vm1709_vm10, %v1691_v27, %v1222_v48  ;;  %v3727_v51 = vpop.permute.xlu1 %1201  ;;  %v1694_v48 = vsel %vm1676_vm9, %v1661_v19, %v3629_v23 }
 0x1eb   : > { %v3729_v37 = vpop.permute.xlu0 %1205 }
 0x1ef   : > { %1499 = vrot.lane.b32.xlu2 %v3077_v40, %s2471_s14  ;;  %v1598_v40 = vsel %vm1577_vm1, %v2823_v29, %v3234_v12 }
 0x1f0   : > { %1487 = vrot.lane.b32.xlu1 %v3032_v32, %s2471_s14  ;;  %v1631_v32 = vsel %vm1610_vm7, %v1598_v40, %v3315_v54 }
 0x1f1   : > { %v1228_v27 = vpop.permute.xlu2 %1227  ;;  %1417 = vrot.lane.b32.xlu0 %v4979_v57, %s2470_s13  ;;  %v1664_v23 = vsel %vm1643_vm8, %v1631_v32, %v3519_v28  ;;  %v1601_v28 = vsel %vm1577_vm1, %v2847_v45, %v3246_v52  ;;  %v5031_v52 = vld [vmem:[#allocation79_spill] sm:$0xff] }
 0x1f2   : > { %v3747_v61 = vsel %vm1709_vm10, %v1694_v48, %v1228_v27  ;;  %v3749_v58 = vpop.permute.xlu1 %1207  ;;  %v1697_v57 = vsel %vm1676_vm9, %v1664_v23, %v3645_v35  ;;  %v1634_v35 = vsel %vm1610_vm7, %v1601_v28, %v3334_v63  ;;  %v1593_v19 = vsel %vm1577_vm1, %v5032_v17, %v5031_v52  ;;  %v5033_v48 = vld [vmem:[#allocation123_spill] sm:$0xff]  ;;  %v5034_v27 = vld [vmem:[#allocation37_spill] sm:$0xff] }
 0x1f3   : > { %v3751_v31 = vpop.permute.xlu0 %1211  ;;  %v1667_v25 = vsel %vm1643_vm8, %v1634_v35, %v3531_v56  ;;  %v5036_v28 = vld [vmem:[#allocation49_spill] sm:$0xff]  ;;  %v5038_v35 = vld [vmem:[#allocation30_spill] sm:$0xff] }
 0x1f4   : > { %v1700_v63 = vsel %vm1676_vm9, %v1667_v25, %v3660_v60  ;;  %v5039_v25 = vld [vmem:[#allocation124_spill] sm:$0xff] }
 0x1f7   : > { %1297 = vrot.lane.b32.xlu2 %v2651_v39, %s2469_s12 }
 0x1f8   : > { %1513 = vrot.lane.b32.xlu1 %v5014_v59, %s2471_s14  ;;  %v1591_v59 = vsel %vm1577_vm1, %v2702_v33, %v5029_v49 }
 0x1f9   : > { %v1234_v4 = vpop.permute.xlu2 %1233  ;;  %1309 = vrot.lane.b32.xlu0 %v2742_v18, %s2469_s12  ;;  %v1624_v18 = vsel %vm1610_vm7, %v1591_v59, %v3338_v43  ;;  %v1626_v43 = vsel %vm1610_vm7, %v1593_v19, %v5033_v48  ;;  %v5037_v59 = vld [vmem:[#allocation98_spill] sm:$0xff]  ;;  %v5041_v19 = vld [vmem:[#allocation85_spill] sm:$0xff] }
 0x1fa   : > { %v3769_v29 = vsel %vm1709_vm10, %v1697_v57, %v1234_v4  ;;  %v3771_v54 = vpop.permute.xlu1 %1213  ;;  %v1657_v33 = vsel %vm1643_vm8, %v1624_v18, %v3471_v34  ;;  %v1659_v34 = vsel %vm1643_vm8, %v1626_v43, %v3441_v36  ;;  %v1594_v18 = vsel %vm1577_vm1, %v5038_v35, %v5037_v59  ;;  %v5043_v43 = vld [vmem:[#allocation126_spill] sm:$0xff]  ;;  %v1848_v59 = vld [vmem:[%s4666_s3 + $0x38] sm:$0xff] }
 0x1fb   : > { %v3773_v12 = vpop.permute.xlu0 %1217  ;;  %v1690_v56 = vsel %vm1676_vm9, %v1657_v33, %v3575_v22  ;;  %v1692_v60 = vsel %vm1676_vm9, %v1659_v34, %v3625_v42  ;;  %v5035_v22 = vld [vmem:[#allocation109_spill] sm:$0xff]  ;;  %v5042_v33 = vld [vmem:[#allocation31_spill] sm:$0xff] }
 0x1fc   : > { %v1604_v49 = vsel %vm1577_vm1, %v5036_v28, %v5035_v22 }
 0x1fd   : > { %v1637_v36 = vsel %vm1610_vm7, %v1604_v49, %v5039_v25  ;;  %v5047_v25 = vld [vmem:[#allocation51_spill] sm:$0xff] }
 0x1fe   : > { %v1670_v52 = vsel %vm1643_vm8, %v1637_v36, %v3543_v7 }
 0x1ff   : > { %1405 = vrot.lane.b32.xlu2 %v4968_v62, %s2470_s13  ;;  %v1703_v48 = vsel %vm1676_vm9, %v1670_v52, %v3672_v9 }
 0x200   : > { %1393 = vrot.lane.b32.xlu1 %v5030_v0, %s2470_s13  ;;  %v5040_v0 = vld [vmem:[#allocation125_spill] sm:$0xff] }
 0x201   : > { %v1240_v62 = vpop.permute.xlu2 %1239  ;;  %1323 = vrot.lane.b32.xlu0 %v5034_v27, %s2469_s12  ;;  %v1627_v42 = vsel %vm1610_vm7, %v1594_v18, %v5040_v0  ;;  %v5046_v18 = vld [vmem:[#allocation112_spill] sm:$0xff]  ;;  %v5048_v0 = vld [vmem:[#allocation102_spill] sm:$0xff] }
 0x202   : > { %v3805_v40 = vsel %vm1709_vm10, %v1700_v63, %v1240_v62  ;;  %v1220_v32 = vpop.permute.xlu1 %1219  ;;  %v1596_v63 = vsel %vm1577_vm1, %v5042_v33, %v5041_v19  ;;  %v1660_v62 = vsel %vm1643_vm8, %v1627_v42, %v3483_v14  ;;  %v1607_v36 = vsel %vm1577_vm1, %v5047_v25, %v5046_v18  ;;  %v5049_v42 = vld [vmem:[#allocation33_spill] sm:$0xff] }
 0x203   : > { %v3810_v23 = vsel %vm1709_vm10, %v1690_v56, %v1220_v32  ;;  %v1224_v57 = vpop.permute.xlu0 %1223  ;;  %v1629_v56 = vsel %vm1610_vm7, %v1596_v63, %v5043_v43  ;;  %v1693_v7 = vsel %vm1676_vm9, %v1660_v62, %v3587_v26  ;;  %v5044_v32 = vld [vmem:[#allocation39_spill] sm:$0xff]  ;;  %v1849_v26 = vld [vmem:[%s4666_s3 + $0x40] sm:$0xff]  ;;  %v1597_v52 = vsel %vm1577_vm1, %v5049_v42, %v5048_v0  ;;  %v5050_v19 = vld [vmem:[#allocation129_spill] sm:$0xff] }
 0x204   : > { %v3815_v4 = vsel %vm1709_vm10, %v1692_v60, %v1224_v57  ;;  %v5045_v60 = vld [vmem:[#allocation40_spill] sm:$0xff]  ;;  %1954 = vmatpush.msra.mxu0 %v1849_v26  ;;  %2397 = vmatpush.msra.mxu1 %v1849_v26  ;;  %v1640_v63 = vsel %vm1610_vm7, %v1607_v36, %v5050_v19  ;;  %v5051_v62 = vld [vmem:[#allocation17_spill] sm:$0xff]  ;;  %v5053_v43 = vld [vmem:[#allocation154_spill] sm:$0xff] }
 0x205   : > { %v1662_v14 = vsel %vm1643_vm8, %v1629_v56, %v5045_v60  ;;  %2398 = vmatpush.msra.mxu2 %v1849_v26  ;;  %2399 = vmatpush.msra.mxu3 %v1849_v26  ;;  %v1673_v56 = vsel %vm1643_vm8, %v1640_v63, %v5053_v43  ;;  %v5058_v36 = vld [vmem:[#allocation142_spill] sm:$0xff] }
 0x206   : > { %v1695_v9 = vsel %vm1676_vm9, %v1662_v14, %v3643_v41  ;;  %v1847_v41 = vld [vmem:[%s4666_s3 + $0x30] sm:$0xff]  ;;  %1955 = vmatpush.msra.mxu0 %v1848_v59  ;;  %2400 = vmatpush.msra.mxu1 %v1848_v59  ;;  %v1706_v14 = vsel %vm1676_vm9, %v1673_v56, %v3684_v3  ;;  %v1846_v3 = vld [vmem:[%s4666_s3 + $0x28] sm:$0xff]  ;;  %v1845_v19 = vld [vmem:[%s4666_s3 + $0x20] sm:$0xff] }
 0x207   : > { %1501 = vrot.lane.b32.xlu2 %v5006_v8, %s2471_s14  ;;  %2401 = vmatpush.msra.mxu2 %v1848_v59  ;;  %v5060_v43 = vld [vmem:[#allocation38_spill] sm:$0xff] }
 0x208   : > { %1489 = vrot.lane.b32.xlu1 %v4998_v21, %s2471_s14  ;;  %1956 = vmatpush.msra.mxu0 %v1847_v41 }
 0x209   : > { %v1246_v8 = vpop.permute.xlu2 %1245  ;;  %1419 = vrot.lane.b32.xlu0 %v5044_v32, %s2470_s13  ;;  %2403 = vmatpush.msra.mxu1 %v1847_v41 }
 0x20a   : > { %v3847_v21 = vsel %vm1709_vm10, %v1703_v48, %v1246_v8  ;;  %v1226_v34 = vpop.permute.xlu1 %1225  ;;  %v5052_v48 = vld [vmem:[#allocation130_spill] sm:$0xff]  ;;  %1957 = vmatpush.msra.mxu0 %v1846_v3  ;;  %2404 = vmatpush.msra.mxu2 %v1847_v41 }
 0x20b   : > { %v3852_v57 = vsel %vm1709_vm10, %v1693_v7, %v1226_v34  ;;  %v1230_v22 = vpop.permute.xlu0 %1229  ;;  %v1630_v8 = vsel %vm1610_vm7, %v1597_v52, %v5052_v48  ;;  %v5054_v7 = vld [vmem:[#allocation91_spill] sm:$0xff]  ;;  %v5055_v34 = vld [vmem:[#allocation146_spill] sm:$0xff]  ;;  %2406 = vmatpush.msra.mxu1 %v1846_v3  ;;  %2402 = vmatpush.msra.mxu3 %v1848_v59  ;;  %v1844_v48 = vld [vmem:[%s4666_s3 + $0x18] sm:$0xff] }
 0x20c   : > { %v3860_v49 = vsel %vm1709_vm10, %v1695_v9, %v1230_v22  ;;  %v1599_v32 = vsel %vm1577_vm1, %v5034_v27, %v5054_v7  ;;  %v1663_v60 = vsel %vm1643_vm8, %v1630_v8, %v5055_v34  ;;  %v5056_v22 = vld [vmem:[#allocation131_spill] sm:$0xff]  ;;  %1958 = vmatpush.msra.mxu0 %v1845_v19  ;;  %2407 = vmatpush.msra.mxu2 %v1846_v3  ;;  %v5059_v8 = vld [vmem:[#allocation105_spill] sm:$0xff]  ;;  %v5061_v59 = vld [vmem:[#allocation28_spill] sm:$0xff] }
 0x20d   : > { %v1632_v26 = vsel %vm1610_vm7, %v1599_v32, %v5056_v22  ;;  %2409 = vmatpush.msra.mxu1 %v1845_v19  ;;  %2405 = vmatpush.msra.mxu3 %v1847_v41  ;;  %v1600_v56 = vsel %vm1577_vm1, %v5060_v43, %v5059_v8  ;;  %v5062_v7 = vld [vmem:[#allocation11_spill] sm:$0xff]  ;;  %v5063_v34 = vld [vmem:[#allocation18_spill] sm:$0xff] }
 0x20e   : > { %v1665_v0 = vsel %vm1643_vm8, %v1632_v26, %v5058_v36  ;;  %1959 = vmatpush.msra.mxu0 %v1844_v48  ;;  %v1633_v32 = vsel %vm1610_vm7, %v1600_v56, %v5062_v7  ;;  %v5066_v41 = vld [vmem:[#allocation150_spill] sm:$0xff]  ;;  %2410 = vmatpush.msra.mxu2 %v1845_v19 }
 0x20f   : > { %1299 = vrot.lane.b32.xlu2 %v5051_v62, %s2469_s12  ;;  %2412 = vmatpush.msra.mxu1 %v1844_v48  ;;  %v1666_v22 = vsel %vm1643_vm8, %v1633_v32, %v5066_v41  ;;  %v5069_v32 = vld [vmem:[#allocation107_spill] sm:$0xff] }
 0x210   : > { %1515 = vrot.lane.b32.xlu1 %v5018_v38, %s2471_s14  ;;  %v1696_v38 = vsel %vm1676_vm9, %v1663_v60, %v3599_v5  ;;  %v1698_v5 = vsel %vm1676_vm9, %v1665_v0, %v3658_v44  ;;  %v1843_v44 = vld [vmem:[%s4666_s3 + $0x10] sm:$0xff]  ;;  %v1699_v36 = vsel %vm1676_vm9, %v1666_v22, %v3611_v53  ;;  %2413 = vmatpush.msra.mxu2 %v1844_v48  ;;  %v5074_v22 = vld [vmem:[#allocation101_spill] sm:$0xff] }
 0x211   : > { %v1252_v9 = vpop.permute.xlu2 %1251  ;;  %1311 = vrot.lane.b32.xlu0 %v5032_v17, %s2469_s12  ;;  %v5064_v60 = vld [vmem:[#allocation96_spill] sm:$0xff]  ;;  %1960 = vmatpush.msra.mxu0 %v1843_v44 }
 0x212   : > { %v3898_v27 = vsel %vm1709_vm10, %v1706_v14, %v1252_v9  ;;  %v1232_v18 = vpop.permute.xlu1 %1231  ;;  %v5065_v14 = vld [vmem:[#allocation41_spill] sm:$0xff]  ;;  %2415 = vmatpush.msra.mxu1 %v1843_v44  ;;  %2408 = vmatpush.msra.mxu3 %v1846_v3  ;;  %v5073_v3 = vld [vmem:[#allocation50_spill] sm:$0xff] }
 0x213   : > { %5057 = vst [vmem:[#allocation97_spill] sm:$0xff] %v3898_v27  ;;  %v3906_v52 = vsel %vm1709_vm10, %v1696_v38, %v1232_v18  ;;  %v1236_v17 = vpop.permute.xlu0 %1235  ;;  %v1602_v9 = vsel %vm1577_vm1, %v5065_v14, %v5064_v60  ;;  %v5067_v38 = vld [vmem:[#allocation14_spill] sm:$0xff]  ;;  %2416 = vmatpush.msra.mxu2 %v1843_v44 }
 0x214   : > { %v3914_v63 = vsel %vm1709_vm10, %v1698_v5, %v1236_v17  ;;  %v1635_v18 = vsel %vm1610_vm7, %v1602_v9, %v5067_v38  ;;  %v1842_v5 = vld [vmem:[%s4666_s3 + $0x8] sm:$0xff]  ;;  %v5068_v17 = vld [vmem:[#allocation144_spill] sm:$0xff]  ;;  %2411 = vmatpush.msra.mxu3 %v1845_v19  ;;  %v5072_v9 = vld [vmem:[#allocation9_spill] sm:$0xff] }
 0x215   : > { %v1668_v8 = vsel %vm1643_vm8, %v1635_v18, %v5068_v17  ;;  %1961 = vmatpush.msra.mxu0 %v1842_v5  ;;  %2418 = vmatpush.msra.mxu1 %v1842_v5  ;;  %v5075_v38 = vld [vmem:[#allocation47_spill] sm:$0xff]  ;;  %v5076_v19 = vld [vmem:[#allocation62_spill] sm:$0xff]  ;;  %v5077_v17 = vld [vmem:[#allocation16_spill] sm:$0xff] }
 0x216   : > { %v1701_v53 = vsel %vm1676_vm9, %v1668_v8, %v3670_v2  ;;  %v5071_v2 = vld [vmem:[#allocation65_spill] sm:$0xff]  ;;  %2419 = vmatpush.msra.mxu2 %v1842_v5  ;;  %2414 = vmatpush.msra.mxu3 %v1844_v48  ;;  %v1605_v18 = vsel %vm1577_vm1, %v5075_v38, %v5074_v22  ;;  %v5100_v27 = vld [vmem:[#allocation10_spill] sm:$0xff] }
 0x217   : > { %1407 = vrot.lane.b32.xlu2 %v5061_v59, %s2470_s13  ;;  %v1638_v8 = vsel %vm1610_vm7, %v1605_v18, %v5077_v17  ;;  %v5083_v17 = vld [vmem:[#allocation42_spill] sm:$0xff] }
 0x218   : > { %1395 = vrot.lane.b32.xlu1 %v5063_v34, %s2470_s13  ;;  %v5070_v34 = vld [vmem:[#allocation43_spill] sm:$0xff]  ;;  %2417 = vmatpush.msra.mxu3 %v1843_v44  ;;  %v5081_v44 = vld [vmem:[#allocation56_spill] sm:$0xff] }
 0x219   : > { %v3936_v26 = vpop.permute.xlu2 %1289  ;;  %1325 = vrot.lane.b32.xlu0 %v5060_v43, %s2469_s12  ;;  %v1841_v43 = vld [vmem:[%s4666_s3] sm:$0xff]  ;;  %v1603_v60 = vsel %vm1577_vm1, %v5070_v34, %v5069_v32  ;;  %v5079_v32 = vld [vmem:[#allocation145_spill] sm:$0xff] }
 0x21a   : > { %v1238_v0 = vpop.permute.xlu1 %1237  ;;  %1962 = vmatpush.msra.mxu0 %v1841_v43  ;;  %2421 = vmatpush.msra.mxu1 %v1841_v43  ;;  %v1636_v41 = vsel %vm1610_vm7, %v1603_v60, %v5072_v9  ;;  %v1671_v60 = vsel %vm1643_vm8, %v1638_v8, %v5079_v32  ;;  %v5085_v8 = vld [vmem:[#allocation54_spill] sm:$0xff] }
 0x21b   : > { %v3950_v56 = vsel %vm1709_vm10, %v1699_v36, %v1238_v0  ;;  %v1242_v59 = vpop.permute.xlu0 %1241  ;;  %v1669_v36 = vsel %vm1643_vm8, %v1636_v41, %v5076_v19  ;;  %2422 = vmatpush.msra.mxu2 %v1841_v43  ;;  %v1704_v9 = vsel %vm1676_vm9, %v1671_v60, %v3682_v1  ;;  %2420 = vmatpush.msra.mxu3 %v1842_v5  ;;  %v5082_v19 = vld [vmem:[#allocation133_spill] sm:$0xff]  ;;  %v5084_v1 = vld [vmem:[#allocation104_spill] sm:$0xff] }
 0x21c   : > { %v3958_v7 = vsel %vm1709_vm10, %v1701_v53, %v1242_v59  ;;  %v1702_v53 = vsel %vm1676_vm9, %v1669_v36, %v3621_v24  ;;  %v5078_v59 = vld [vmem:[#allocation72_spill] sm:$0xff]  ;;  %v5080_v24 = vld [vmem:[#allocation110_spill] sm:$0xff]  ;;  %v1608_v5 = vsel %vm1577_vm1, %v5085_v8, %v5084_v1  ;;  %v5088_v60 = vld [vmem:[#allocation89_spill] sm:$0xff] }
 0x21d   : > { %2423 = vmatpush.msra.mxu3 %v1841_v43  ;;  %v1606_v18 = vsel %vm1577_vm1, %v5073_v3, %v5080_v24  ;;  %v5092_v1 = vld [vmem:[#allocation55_spill] sm:$0xff] }
 0x21e   : > { %v1639_v36 = vsel %vm1610_vm7, %v1606_v18, %v5082_v19 }
 0x21f   : > { %1491 = vrot.lane.b32.xlu2 %v5071_v2, %s2471_s14 }
 0x220   : > { %1337 = vrot.lane.b32.xlu1 %v5073_v3, %s2469_s12 }
 0x221   : > { %v3974_v0 = vpop.permute.xlu2 %1291  ;;  %1503 = vrot.lane.b32.xlu0 %v5078_v59, %s2471_s14 }
 0x222   : > { %v1244_v48 = vpop.permute.xlu1 %1243 }
 0x223   : > { %v3985_v2 = vsel %vm1709_vm10, %v1702_v53, %v1244_v48  ;;  %v1248_v41 = vpop.permute.xlu0 %1247  ;;  %v5086_v53 = vld [vmem:[#allocation64_spill] sm:$0xff]  ;;  %v5087_v48 = vld [vmem:[#allocation134_spill] sm:$0xff] }
 0x224   : > { %v3990_v22 = vsel %vm1709_vm10, %v1704_v9, %v1248_v41  ;;  %v1672_v43 = vsel %vm1643_vm8, %v1639_v36, %v5086_v53  ;;  %v1641_v3 = vsel %vm1610_vm7, %v1608_v5, %v5087_v48  ;;  %v5089_v41 = vld [vmem:[#allocation149_spill] sm:$0xff]  ;;  %v5093_v5 = vld [vmem:[#allocation20_spill] sm:$0xff]  ;;  %v5095_v48 = vld [vmem:[#allocation26_spill] sm:$0xff] }
 0x225   : > { %v1705_v32 = vsel %vm1676_vm9, %v1672_v43, %v3638_v16  ;;  %v1674_v24 = vsel %vm1643_vm8, %v1641_v3, %v5089_v41  ;;  %v5094_v53 = vld [vmem:[#allocation69_spill] sm:$0xff] }
 0x226   : > { %v2444_v43 = vunpack.i.l.bf16 %v5094_v53 }
 0x227   : > { %1433 = vrot.lane.b32.xlu2 %v5081_v44, %s2470_s13  ;;  %v1707_v44 = vsel %vm1676_vm9, %v1674_v24, %v3694_v10  ;;  %v5097_v10 = vld [vmem:[#allocation115_spill] sm:$0xff] }
 0x228   : > { %1421 = vrot.lane.b32.xlu1 %v5083_v17, %s2470_s13  ;;  %v5091_v17 = vld [vmem:[#allocation113_spill] sm:$0xff] }
 0x229   : > { %v4006_v59 = vpop.permute.xlu2 %1293  ;;  %1517 = vrot.lane.b32.xlu0 %v5088_v60, %s2471_s14  ;;  %v1609_v16 = vsel %vm1577_vm1, %v5092_v1, %v5091_v17  ;;  %v2449_v60 = vunpack.i.l.bf16 %v5097_v10 }
 0x22a   : > { %v1250_v9 = vpop.permute.xlu1 %1249  ;;  %v1642_v3 = vsel %vm1610_vm7, %v1609_v16, %v5095_v48  ;;  %v5099_v16 = vld [vmem:[#allocation3_spill] sm:$0xff] }
 0x22b   : > { %v4017_v18 = vsel %vm1709_vm10, %v1705_v32, %v1250_v9  ;;  %v1254_v19 = vpop.permute.xlu0 %1253  ;;  %v5096_v32 = vld [vmem:[#allocation100_spill] sm:$0xff]  ;;  %v5098_v9 = vld [vmem:[#allocation155_spill] sm:$0xff]  ;;  %v1578_v48 = vsel %vm1577_vm1, %v5099_v16, %v2444_v43 }
 0x22c   : > { %v4022_v36 = vsel %vm1709_vm10, %v1707_v44, %v1254_v19  ;;  %v1675_v41 = vsel %vm1643_vm8, %v1642_v3, %v5098_v9  ;;  %v5101_v9 = vld [vmem:[#allocation71_spill] sm:$0xff] }
 0x22d   : > { %5090 = vst [vmem:[#allocation92_spill] sm:$0xff] %v4022_v36  ;;  %v1708_v44 = vsel %vm1676_vm9, %v1675_v41, %v3654_v11  ;;  %v1611_v36 = vsel %vm1610_vm7, %v1578_v48, %v2449_v60  ;;  %v2445_v41 = vunpack.i.h.bf16 %v5094_v53  ;;  %v5103_v43 = vld [vmem:[#allocation23_spill] sm:$0xff]  ;;  %v2450_v60 = vunpack.i.h.bf16 %v5097_v10  ;;  %v5104_v48 = vld [vmem:[#allocation2_spill] sm:$0xff] }
 0x22e   : > { %v1644_v3 = vsel %vm1643_vm8, %v1611_v36, %v5100_v27 }
 0x22f   : > { %1301 = vrot.lane.b32.xlu2 %v5093_v5, %s2469_s12  ;;  %v1677_v11 = vsel %vm1676_vm9, %v1644_v3, %v5101_v9  ;;  %v1579_v3 = vsel %vm1577_vm1, %v5104_v48, %v2445_v41 }
 0x230   : > { %1529 = vrot.lane.b32.xlu1 %v5096_v32, %s2471_s14  ;;  %v1612_v10 = vsel %vm1610_vm7, %v1579_v3, %v2450_v60  ;;  %v5109_v3 = vld [vmem:[#allocation75_spill] sm:$0xff] }
 0x231   : > { %v4037_v24 = vpop.permute.xlu2 %1401  ;;  %1313 = vrot.lane.b32.xlu0 %v5038_v35, %s2469_s12  ;;  %v5102_v35 = vld [vmem:[#allocation32_spill] sm:$0xff] }
 0x232   : > { %v1256_v19 = vpop.permute.xlu1 %1255 }
 0x233   : > { %v4044_v17 = vsel %vm1709_vm10, %v1708_v44, %v1256_v19  ;;  %v1386_v32 = vpop.permute.xlu0 %1385  ;;  %v1710_v44 = vsel %vm1709_vm10, %v1677_v11, %v3696_v13 }
 0x234   : > { %v1743_v27 = vsel %vm1742_vm11, %v1710_v44, %v3936_v26  ;;  %v5105_v26 = vld [vmem:[#allocation135_spill] sm:$0xff]  ;;  %v5107_v44 = vld [vmem:[#allocation68_spill] sm:$0xff] }
 0x235   : > { %v1776_v19 = vsel %vm1775_vm12, %v1743_v27, %v1386_v32  ;;  %v1645_v11 = vsel %vm1643_vm8, %v1612_v10, %v5105_v26  ;;  %v5108_v27 = vld [vmem:[#allocation77_spill] sm:$0xff] }
 0x237   : > { %1409 = vrot.lane.b32.xlu2 %v5102_v35, %s2470_s13  ;;  %v5106_v35 = vld [vmem:[#allocation151_spill] sm:$0xff] }
 0x238   : > { %1397 = vrot.lane.b32.xlu1 %v5103_v43, %s2470_s13  ;;  %v1678_v32 = vsel %vm1676_vm9, %v1645_v11, %v5106_v35  ;;  %v5114_v35 = vld [vmem:[#allocation157_spill] sm:$0xff] }
 0x239   : > { %v4063_v36 = vpop.permute.xlu2 %1295  ;;  %1327 = vrot.lane.b32.xlu0 %v2847_v45, %s2469_s12  ;;  %v1711_v45 = vsel %vm1709_vm10, %v1678_v32, %v3706_v20  ;;  %v5110_v20 = vld [vmem:[#allocation8_spill] sm:$0xff] }
 0x23a   : > { %v1482_v53 = vpop.permute.xlu1 %1481  ;;  %v1744_v41 = vsel %vm1742_vm11, %v1711_v45, %v3974_v0  ;;  %v1580_v10 = vsel %vm1577_vm1, %v5110_v20, %v5109_v3  ;;  %v5112_v0 = vld [vmem:[#allocation136_spill] sm:$0xff]  ;;  %v5118_v20 = vld [vmem:[#allocation111_spill] sm:$0xff] }
 0x23b   : > { %v1809_v13 = vsel %vm1808_vm13, %v1776_v19, %v1482_v53  ;;  %v1388_v9 = vpop.permute.xlu0 %1387 }
 0x23c   : > { %2361 = vmatmul.msk.f32.vlgmr.msra.gmra.mxu0 %vm1850_vm14, %v1809_v13  ;;  %v1777_v60 = vsel %vm1775_vm12, %v1744_v41, %v1388_v9  ;;  %v5113_v9 = vld [vmem:[#allocation58_spill] sm:$0xff] }
 0x23f   : > { %1493 = vrot.lane.b32.xlu2 %v5107_v44, %s2471_s14  ;;  %v5115_v44 = vld [vmem:[#allocation46_spill] sm:$0xff] }
 0x240   : > { %1339 = vrot.lane.b32.xlu1 %v5047_v25, %s2469_s12  ;;  %v5111_v25 = vld [vmem:[#allocation106_spill] sm:$0xff] }
 0x241   : > { %v1404_v43 = vpop.permute.xlu2 %1403  ;;  %1505 = vrot.lane.b32.xlu0 %v5108_v27, %s2471_s14  ;;  %v1613_v26 = vsel %vm1610_vm7, %v1580_v10, %v5111_v25 }
 0x242   : > { %v1484_v19 = vpop.permute.xlu1 %1483  ;;  %v1646_v11 = vsel %vm1643_vm8, %v1613_v26, %v5112_v0  ;;  %v5119_v26 = vld [vmem:[#allocation140_spill] sm:$0xff] }
 0x243   : > { %v1810_v53 = vsel %vm1808_vm13, %v1777_v60, %v1484_v19  ;;  %v1306_v13 = vpop.permute.xlu0 %1305  ;;  %v1679_v32 = vsel %vm1676_vm9, %v1646_v11, %v5114_v35  ;;  %v5116_v60 = vld [vmem:[#allocation86_spill] sm:$0xff]  ;;  %v5120_v11 = vld [vmem:[#allocation160_spill] sm:$0xff] }
 0x244   : > { %2362 = vmatmul.msk.f32.gmra.mxu0 %vm1850_vm14, %v1810_v53  ;;  %v1712_v45 = vsel %vm1709_vm10, %v1679_v32, %v3666_v55  ;;  %v1586_v27 = vsel %vm1577_vm1, %v2651_v39, %v5116_v60  ;;  %v5117_v53 = vld [vmem:[#allocation88_spill] sm:$0xff]  ;;  %v5121_v32 = vld [vmem:[#allocation21_spill] sm:$0xff]  ;;  %v5123_v60 = vld [vmem:[#allocation99_spill] sm:$0xff] }
 0x245   : > { %v1745_v19 = vsel %vm1742_vm11, %v1712_v45, %v4006_v59  ;;  %v1619_v10 = vsel %vm1610_vm7, %v1586_v27, %v5118_v20  ;;  %v5124_v27 = vld [vmem:[#allocation120_spill] sm:$0xff] }
 0x246   : > { %v1652_v55 = vsel %vm1643_vm8, %v1619_v10, %v5119_v26  ;;  %v5126_v10 = vld [vmem:[#allocation84_spill] sm:$0xff] }
 0x247   : > { %1435 = vrot.lane.b32.xlu2 %v5113_v9, %s2470_s13  ;;  %v1685_v9 = vsel %vm1676_vm9, %v1652_v55, %v5120_v11  ;;  %v5127_v11 = vld [vmem:[#allocation35_spill] sm:$0xff] }
 0x248   : > { %1423 = vrot.lane.b32.xlu1 %v5115_v44, %s2470_s13  ;;  %v1718_v59 = vsel %vm1709_vm10, %v1685_v9, %v3690_v30  ;;  %v5122_v44 = vld [vmem:[#allocation70_spill] sm:$0xff]  ;;  %v5125_v30 = vld [vmem:[#allocation25_spill] sm:$0xff] }
 0x249   : > { %v1500_v41 = vpop.permute.xlu2 %1499  ;;  %1519 = vrot.lane.b32.xlu0 %v5117_v53, %s2471_s14  ;;  %v1751_v35 = vsel %vm1742_vm11, %v1718_v59, %v1306_v13  ;;  %v1587_v45 = vsel %vm1577_vm1, %v5051_v62, %v5122_v44  ;;  %v5129_v59 = vld [vmem:[#allocation74_spill] sm:$0xff] }
 0x24a   : > { %v1390_v3 = vpop.permute.xlu1 %1389  ;;  %v1784_v20 = vsel %vm1775_vm12, %v1751_v35, %v4037_v24  ;;  %v5130_v35 = vld [vmem:[#allocation7_spill] sm:$0xff] }
 0x24b   : > { %v1778_v25 = vsel %vm1775_vm12, %v1745_v19, %v1390_v3  ;;  %v1486_v0 = vpop.permute.xlu0 %1485  ;;  %v1620_v19 = vsel %vm1610_vm7, %v1587_v45, %v5124_v27  ;;  %v1581_v44 = vsel %vm1577_vm1, %v5130_v35, %v5129_v59 }
 0x24c   : > { %v1811_v39 = vsel %vm1808_vm13, %v1778_v25, %v1486_v0  ;;  %v1653_v3 = vsel %vm1643_vm8, %v1620_v19, %v5125_v30  ;;  %v5132_v19 = vld [vmem:[#allocation15_spill] sm:$0xff]  ;;  %v5133_v30 = vld [vmem:[#allocation158_spill] sm:$0xff] }
 0x24d   : > { %2363 = vmatmul.msk.f32.gmra.mxu0 %vm1850_vm14, %v1811_v39  ;;  %v1686_v62 = vsel %vm1676_vm9, %v1653_v3, %v5126_v10 }
 0x24e   : > { %v1719_v26 = vsel %vm1709_vm10, %v1686_v62, %v3751_v31  ;;  %v5135_v62 = vld [vmem:[#allocation76_spill] sm:$0xff] }
 0x24f   : > { %1303 = vrot.lane.b32.xlu2 %v5121_v32, %s2469_s12 }
 0x250   : > { %1531 = vrot.lane.b32.xlu1 %v5123_v60, %s2471_s14  ;;  %v5131_v60 = vld [vmem:[#allocation116_spill] sm:$0xff] }
 0x251   : > { %v4133_v53 = vpop.permute.xlu2 %1297  ;;  %1315 = vrot.lane.b32.xlu0 %v2769_v6, %s2469_s12  ;;  %v5128_v6 = vld [vmem:[#allocation24_spill] sm:$0xff]  ;;  %v1614_v27 = vsel %vm1610_vm7, %v1581_v44, %v5131_v60  ;;  %v5141_v44 = vld [vmem:[#allocation90_spill] sm:$0xff] }
 0x252   : > { %v1498_v13 = vpop.permute.xlu1 %1497 }
 0x253   : > { %v1817_v25 = vsel %vm1808_vm13, %v1784_v20, %v1498_v13  ;;  %v1308_v55 = vpop.permute.xlu0 %1307 }
 0x254   : > { %2369 = vmatmul.msk.f32.vlgmr.msra.gmra.mxu1 %vm1850_vm14, %v1817_v25  ;;  %v1752_v0 = vsel %vm1742_vm11, %v1719_v26, %v1308_v55 }
 0x255   : > { %v1785_v24 = vsel %vm1775_vm12, %v1752_v0, %v1404_v43  ;;  %v1647_v43 = vsel %vm1643_vm8, %v1614_v27, %v5132_v19  ;;  %v5137_v0 = vld [vmem:[#allocation87_spill] sm:$0xff] }
 0x256   : > { %v1818_v31 = vsel %vm1808_vm13, %v1785_v24, %v1500_v41  ;;  %v1680_v3 = vsel %vm1676_vm9, %v1647_v43, %v5133_v30 }
 0x257   : > { %1411 = vrot.lane.b32.xlu2 %v5127_v11, %s2470_s13  ;;  %v1713_v41 = vsel %vm1709_vm10, %v1680_v3, %v3708_v47  ;;  %v5136_v47 = vld [vmem:[#allocation57_spill] sm:$0xff] }
 0x258   : > { %1399 = vrot.lane.b32.xlu1 %v5128_v6, %s2470_s13  ;;  %v1746_v13 = vsel %vm1742_vm11, %v1713_v41, %v4063_v36  ;;  %v5138_v36 = vld [vmem:[#allocation45_spill] sm:$0xff] }
 0x259   : > { %v1406_v9 = vpop.permute.xlu2 %1405  ;;  %1329 = vrot.lane.b32.xlu0 %v5065_v14, %s2469_s12  ;;  %v5134_v14 = vld [vmem:[#allocation67_spill] sm:$0xff]  ;;  %v5139_v11 = vld [vmem:[#allocation121_spill] sm:$0xff] }
 0x25a   : > { %v1392_v39 = vpop.permute.xlu1 %1391 }
 0x25b   : > { %v1322_v45 = vpop.permute.xlu0 %1321  ;;  %v1779_v10 = vsel %vm1775_vm12, %v1746_v13, %v1392_v39  ;;  %v5144_v13 = vld [vmem:[#allocation80_spill] sm:$0xff] }
 0x25c   : > { %2370 = vmatmul.msk.f32.gmra.mxu1 %vm1850_vm14, %v1818_v31  ;;  %v1759_v24 = vsel %vm1742_vm11, %v3852_v57, %v1322_v45  ;;  %v5140_v31 = vld [vmem:[#allocation141_spill] sm:$0xff] }
 0x25f   : > { %1495 = vrot.lane.b32.xlu2 %v5134_v14, %s2471_s14 }
 0x260   : > { %1341 = vrot.lane.b32.xlu1 %v5085_v8, %s2469_s12  ;;  %v1588_v8 = vsel %vm1577_vm1, %v5093_v5, %v5137_v0  ;;  %v5142_v5 = vld [vmem:[#allocation156_spill] sm:$0xff] }
 0x261   : > { %v1502_v20 = vpop.permute.xlu2 %1501  ;;  %1507 = vrot.lane.b32.xlu0 %v5135_v62, %s2471_s14  ;;  %v1621_v6 = vsel %vm1610_vm7, %v1588_v8, %v5139_v11  ;;  %v5145_v62 = vld [vmem:[#allocation117_spill] sm:$0xff]  ;;  %v5148_v8 = vld [vmem:[#allocation78_spill] sm:$0xff] }
 0x262   : > { %v1488_v25 = vpop.permute.xlu1 %1487  ;;  %v1654_v59 = vsel %vm1643_vm8, %v1621_v6, %v5140_v31  ;;  %v5151_v31 = vld [vmem:[#allocation94_spill] sm:$0xff] }
 0x263   : > { %v1812_v26 = vsel %vm1808_vm13, %v1779_v10, %v1488_v25  ;;  %v1418_v55 = vpop.permute.xlu0 %1417  ;;  %v1687_v27 = vsel %vm1676_vm9, %v1654_v59, %v5142_v5  ;;  %v1582_v10 = vsel %vm1577_vm1, %v2581_v50, %v5144_v13  ;;  %v5146_v25 = vld [vmem:[#allocation137_spill] sm:$0xff]  ;;  %v5153_v5 = vld [vmem:[#allocation6_spill] sm:$0xff] }
 0x264   : > { %2364 = vmatmul.msk.f32.gmra.mxu0 %vm1850_vm14, %v1812_v26  ;;  %v1792_v35 = vsel %vm1775_vm12, %v1759_v24, %v1418_v55  ;;  %v1720_v43 = vsel %vm1709_vm10, %v1687_v27, %v3771_v54  ;;  %v5143_v54 = vld [vmem:[#allocation34_spill] sm:$0xff]  ;;  %v5147_v26 = vld [vmem:[#allocation152_spill] sm:$0xff] }
 0x267   : > { %1437 = vrot.lane.b32.xlu2 %v5136_v47, %s2470_s13 }
 0x268   : > { %1425 = vrot.lane.b32.xlu1 %v5138_v36, %s2470_s13 }
 0x269   : > { %v1300_v39 = vpop.permute.xlu2 %1299  ;;  %1521 = vrot.lane.b32.xlu0 %v5141_v44, %s2471_s14 }
 0x26a   : > { %v1514_v60 = vpop.permute.xlu1 %1513 }
 0x26b   : > { %v1825_v19 = vsel %vm1808_vm13, %v1792_v35, %v1514_v60  ;;  %v1310_v30 = vpop.permute.xlu0 %1309  ;;  %v5152_v60 = vld [vmem:[#allocation63_spill] sm:$0xff] }
 0x26c   : > { %2377 = vmatmul.msk.f32.vlgmr.msra.gmra.mxu2 %vm1850_vm14, %v1825_v19  ;;  %v1753_v57 = vsel %vm1742_vm11, %v1720_v43, %v1310_v30  ;;  %v1583_v27 = vsel %vm1577_vm1, %v5153_v5, %v5152_v60  ;;  %v5154_v19 = vld [vmem:[#allocation108_spill] sm:$0xff]  ;;  %v5169_v60 = vld [vmem:[#allocation93_spill] sm:$0xff] }
 0x26d   : > { %v1786_v45 = vsel %vm1775_vm12, %v1753_v57, %v1406_v9  ;;  %v1616_v43 = vsel %vm1610_vm7, %v1583_v27, %v5154_v19  ;;  %v5156_v57 = vld [vmem:[#allocation159_spill] sm:$0xff] }
 0x26e   : > { %v1819_v3 = vsel %vm1808_vm13, %v1786_v45, %v1502_v20  ;;  %v1615_v20 = vsel %vm1610_vm7, %v1582_v10, %v5145_v62 }
 0x26f   : > { %1317 = vrot.lane.b32.xlu2 %v5042_v33, %s2469_s12  ;;  %2371 = vmatmul.msk.f32.gmra.mxu1 %vm1850_vm14, %v1819_v3  ;;  %v1648_v33 = vsel %vm1643_vm8, %v1615_v20, %v5146_v25  ;;  %v5157_v3 = vld [vmem:[#allocation103_spill] sm:$0xff]  ;;  %v5160_v25 = vld [vmem:[#allocation44_spill] sm:$0xff] }
 0x270   : > { %1533 = vrot.lane.b32.xlu1 %v3210_v46, %s2471_s14  ;;  %v1681_v55 = vsel %vm1676_vm9, %v1648_v33, %v5147_v26 }
 0x271   : > { %v1408_v14 = vpop.permute.xlu2 %1407  ;;  %1413 = vrot.lane.b32.xlu0 %v5143_v54, %s2470_s13  ;;  %v1714_v46 = vsel %vm1709_vm10, %v1681_v55, %v3727_v51  ;;  %v5149_v51 = vld [vmem:[#allocation59_spill] sm:$0xff]  ;;  %v5158_v54 = vld [vmem:[#allocation165_spill] sm:$0xff]  ;;  %v5161_v55 = vld [vmem:[#allocation114_spill] sm:$0xff] }
 0x272   : > { %v1394_v41 = vpop.permute.xlu1 %1393  ;;  %v1747_v50 = vsel %vm1742_vm11, %v1714_v46, %v4133_v53 }
 0x273   : > { %v1324_v9 = vpop.permute.xlu0 %1323  ;;  %v1780_v0 = vsel %vm1775_vm12, %v1747_v50, %v1394_v41  ;;  %v5162_v50 = vld [vmem:[#allocation143_spill] sm:$0xff] }
 0x277   : > { %1343 = vrot.lane.b32.xlu2 %v5092_v1, %s2469_s12  ;;  %v1760_v1 = vsel %vm1742_vm11, %v3747_v61, %v1324_v9  ;;  %v5155_v61 = vld [vmem:[#allocation138_spill] sm:$0xff]  ;;  %v5159_v9 = vld [vmem:[#allocation36_spill] sm:$0xff] }
 0x278   : > { %1331 = vrot.lane.b32.xlu1 %v5070_v34, %s2469_s12  ;;  %v5150_v34 = vld [vmem:[#allocation48_spill] sm:$0xff]  ;;  %v1649_v30 = vsel %vm1643_vm8, %v1616_v43, %v5155_v61  ;;  %v5170_v61 = vld [vmem:[#allocation163_spill] sm:$0xff] }
 0x279   : > { %v1492_v47 = vpop.permute.xlu2 %1491  ;;  %1509 = vrot.lane.b32.xlu0 %v5148_v8, %s2471_s14  ;;  %v1682_v45 = vsel %vm1676_vm9, %v1649_v30, %v5156_v57 }
 0x27a   : > { %v1490_v36 = vpop.permute.xlu1 %1489  ;;  %v1715_v41 = vsel %vm1709_vm10, %v1682_v45, %v5158_v54 }
 0x27b   : > { %v1813_v11 = vsel %vm1808_vm13, %v1780_v0, %v1490_v36  ;;  %v1420_v6 = vpop.permute.xlu0 %1419  ;;  %v1748_v10 = vsel %vm1742_vm11, %v1715_v41, %v1300_v39  ;;  %v5163_v0 = vld [vmem:[#allocation161_spill] sm:$0xff]  ;;  %v5164_v36 = vld [vmem:[#allocation127_spill] sm:$0xff]  ;;  %v5172_v41 = vld [vmem:[#allocation66_spill] sm:$0xff] }
 0x27c   : > { %2365 = vmatmul.msk.f32.gmra.mxu0 %vm1850_vm14, %v1813_v11  ;;  %v1793_v24 = vsel %vm1775_vm12, %v1760_v1, %v1420_v6  ;;  %v5165_v11 = vld [vmem:[#allocation166_spill] sm:$0xff] }
 0x27f   : > { %1439 = vrot.lane.b32.xlu2 %v5149_v51, %s2470_s13  ;;  %v5166_v51 = vld [vmem:[#allocation83_spill] sm:$0xff] }
 0x280   : > { %1427 = vrot.lane.b32.xlu1 %v5150_v34, %s2470_s13 }
 0x281   : > { %v1434_v53 = vpop.permute.xlu2 %1433  ;;  %1523 = vrot.lane.b32.xlu0 %v5151_v31, %s2471_s14 }
 0x282   : > { %v1516_v59 = vpop.permute.xlu1 %1515 }
 0x283   : > { %v1826_v35 = vsel %vm1808_vm13, %v1793_v24, %v1516_v59  ;;  %v1312_v44 = vpop.permute.xlu0 %1311  ;;  %v5167_v59 = vld [vmem:[#allocation148_spill] sm:$0xff] }
 0x284   : > { %2378 = vmatmul.msk.f32.gmra.mxu2 %vm1850_vm14, %v1826_v35  ;;  %v5168_v35 = vld [vmem:[#allocation53_spill] sm:$0xff] }
 0x287   : > { %1319 = vrot.lane.b32.xlu2 %v5049_v42, %s2469_s12  ;;  %v1589_v42 = vsel %vm1577_vm1, %v5121_v32, %v5160_v25  ;;  %v5176_v25 = vld [vmem:[#allocation147_spill] sm:$0xff] }
 0x288   : > { %1535 = vrot.lane.b32.xlu1 %v5157_v3, %s2471_s14  ;;  %v1622_v46 = vsel %vm1610_vm7, %v1589_v42, %v5161_v55  ;;  %v5177_v42 = vld [vmem:[#allocation82_spill] sm:$0xff] }
 0x289   : > { %v1302_v13 = vpop.permute.xlu2 %1301  ;;  %1415 = vrot.lane.b32.xlu0 %v5159_v9, %s2470_s13  ;;  %v1655_v39 = vsel %vm1643_vm8, %v1622_v46, %v5162_v50  ;;  %v5179_v46 = vld [vmem:[#allocation95_spill] sm:$0xff] }
 0x28a   : > { %v1396_v62 = vpop.permute.xlu1 %1395  ;;  %v1688_v8 = vsel %vm1676_vm9, %v1655_v39, %v5163_v0  ;;  %v5180_v0 = vld [vmem:[#allocation73_spill] sm:$0xff] }
 0x28b   : > { %v1781_v20 = vsel %vm1775_vm12, %v1748_v10, %v1396_v62  ;;  %v1326_v33 = vpop.permute.xlu0 %1325  ;;  %v1721_v32 = vsel %vm1709_vm10, %v1688_v8, %v5165_v11  ;;  %v5175_v62 = vld [vmem:[#allocation132_spill] sm:$0xff]  ;;  %v5181_v8 = vld [vmem:[#allocation22_spill] sm:$0xff] }
 0x28c   : > { %v1814_v26 = vsel %vm1808_vm13, %v1781_v20, %v1492_v47  ;;  %v1754_v47 = vsel %vm1742_vm11, %v1721_v32, %v1312_v44  ;;  %v1761_v44 = vsel %vm1742_vm11, %v3860_v49, %v1326_v33  ;;  %v5171_v49 = vld [vmem:[#allocation128_spill] sm:$0xff] }
 0x28d   : > { %2366 = vmatmul.msk.f32.gmra.mxu0 %vm1850_vm14, %v1814_v26  ;;  %v1787_v24 = vsel %vm1775_vm12, %v1754_v47, %v1408_v14  ;;  %v5178_v33 = vld [vmem:[#allocation52_spill] sm:$0xff] }
 0x28f   : > { %1345 = vrot.lane.b32.xlu2 %v5164_v36, %s2469_s12  ;;  %v1590_v36 = vsel %vm1577_vm1, %v5181_v8, %v5180_v0  ;;  %v5194_v0 = vld [vmem:[#allocation153_spill] sm:$0xff] }
 0x290   : > { %1333 = vrot.lane.b32.xlu1 %v5036_v28, %s2469_s12 }
 0x291   : > { %v1410_v6 = vpop.permute.xlu2 %1409  ;;  %1511 = vrot.lane.b32.xlu0 %v5166_v51, %s2471_s14  ;;  %v5182_v51 = vld [vmem:[#allocation122_spill] sm:$0xff] }
 0x292   : > { %v1338_v34 = vpop.permute.xlu1 %1337 }
 0x293   : > { %v1504_v1 = vpop.permute.xlu0 %1503  ;;  %v1767_v43 = vsel %vm1742_vm11, %v3958_v7, %v1338_v34  ;;  %v5173_v7 = vld [vmem:[#allocation12_spill] sm:$0xff]  ;;  %v1623_v34 = vsel %vm1610_vm7, %v1590_v36, %v5182_v51 }
 0x294   : > { %v1820_v31 = vsel %vm1808_vm13, %v1787_v24, %v1504_v1  ;;  %v1800_v45 = vsel %vm1775_vm12, %v1767_v43, %v1434_v53  ;;  %v1584_v10 = vsel %vm1577_vm1, %v5173_v7, %v5172_v41  ;;  %v5184_v1 = vld [vmem:[#allocation162_spill] sm:$0xff] }
 0x295   : > { %2372 = vmatmul.msk.f32.gmra.mxu1 %vm1850_vm14, %v1820_v31 }
 0x297   : > { %1441 = vrot.lane.b32.xlu2 %v5167_v59, %s2470_s13  ;;  %v5185_v59 = vld [vmem:[#allocation164_spill] sm:$0xff] }
 0x298   : > { %1429 = vrot.lane.b32.xlu1 %v5168_v35, %s2470_s13 }
 0x299   : > { %v1494_v28 = vpop.permute.xlu2 %1493  ;;  %1525 = vrot.lane.b32.xlu0 %v5169_v60, %s2471_s14 }
 0x29a   : > { %v1422_v5 = vpop.permute.xlu1 %1421 }
 0x29b   : > { %v1794_v14 = vsel %vm1775_vm12, %v1761_v44, %v1422_v5  ;;  %v1518_v27 = vpop.permute.xlu0 %1517 }
 0x29c   : > { %v1827_v19 = vsel %vm1808_vm13, %v1794_v14, %v1518_v27 }
 0x29d   : > { %2379 = vmatmul.msk.f32.gmra.mxu2 %vm1850_vm14, %v1827_v19  ;;  %v5188_v19 = vld [vmem:[#allocation5_spill] sm:$0xff] }
 0x29f   : > { %1335 = vrot.lane.b32.xlu2 %v5075_v38, %s2469_s12  ;;  %v5174_v38 = vld [vmem:[#allocation118_spill] sm:$0xff] }
 0x2a0   : > { %1537 = vrot.lane.b32.xlu1 %v5170_v61, %s2471_s14  ;;  %v1617_v9 = vsel %vm1610_vm7, %v1584_v10, %v5174_v38 }
 0x2a1   : > { %1347 = vrot.lane.b32.xlu0 %v5171_v49, %s2469_s12  ;;  %v1436_v30 = vpop.permute.xlu2 %1435  ;;  %v1650_v20 = vsel %vm1643_vm8, %v1617_v9, %v5175_v62 }
 0x2a2   : > { %v1530_v57 = vpop.permute.xlu1 %1529  ;;  %v1683_v53 = vsel %vm1676_vm9, %v1650_v20, %v5177_v42 }
 0x2a3   : > { %v1833_v3 = vsel %vm1808_vm13, %v1800_v45, %v1530_v57  ;;  %v1314_v54 = vpop.permute.xlu0 %1313  ;;  %v1716_v26 = vsel %vm1709_vm10, %v1683_v53, %v3729_v37  ;;  %v5183_v37 = vld [vmem:[#allocation29_spill] sm:$0xff] }
 0x2a4   : > { %2385 = vmatmul.msk.f32.vlgmr.msra.gmra.mxu3 %vm1850_vm14, %v1833_v3  ;;  %v1749_v55 = vsel %vm1742_vm11, %v1716_v26, %v1302_v13  ;;  %v1656_v13 = vsel %vm1643_vm8, %v1623_v34, %v5183_v37  ;;  %v5190_v53 = vld [vmem:[#allocation81_spill] sm:$0xff] }
 0x2a5   : > { %v1689_v24 = vsel %vm1676_vm9, %v1656_v13, %v5184_v1 }
 0x2a6   : > { %v1722_v31 = vsel %vm1709_vm10, %v1689_v24, %v3773_v12  ;;  %v5187_v12 = vld [vmem:[#allocation60_spill] sm:$0xff] }
 0x2a7   : > { %1443 = vrot.lane.b32.xlu2 %v5176_v25, %s2470_s13  ;;  %v1755_v35 = vsel %vm1742_vm11, %v1722_v31, %v1314_v54 }
 0x2a8   : > { %1431 = vrot.lane.b32.xlu1 %v5178_v33, %s2470_s13  ;;  %v1788_v5 = vsel %vm1775_vm12, %v1755_v35, %v1410_v6  ;;  %v5191_v33 = vld [vmem:[#allocation13_spill] sm:$0xff] }
 0x2a9   : > { %1527 = vrot.lane.b32.xlu0 %v5179_v46, %s2471_s14  ;;  %v1304_v11 = vpop.permute.xlu2 %1303  ;;  %v1585_v26 = vsel %vm1577_vm1, %v5191_v33, %v5190_v53  ;;  %v5192_v46 = vld [vmem:[#allocation119_spill] sm:$0xff] }
 0x2aa   : > { %v1398_v50 = vpop.permute.xlu1 %1397 }
 0x2ab   : > { %v1782_v39 = vsel %vm1775_vm12, %v1749_v55, %v1398_v50  ;;  %v1328_v32 = vpop.permute.xlu0 %1327  ;;  %v1618_v50 = vsel %vm1610_vm7, %v1585_v26, %v5192_v46 }
 0x2ac   : > { %v1815_v47 = vsel %vm1808_vm13, %v1782_v39, %v1494_v28  ;;  %v5186_v28 = vld [vmem:[#allocation4_spill] sm:$0xff]  ;;  %v1762_v6 = vsel %vm1742_vm11, %v3906_v52, %v1328_v32  ;;  %v5189_v52 = vld [vmem:[#allocation61_spill] sm:$0xff] }
 0x2ad   : > { %2367 = vmatmul.msk.f32.gmra.mxu0 %vm1850_vm14, %v1815_v47 }
 0x2af   : > { %1349 = vrot.lane.b32.xlu2 %v5099_v16, %s2469_s12 }
 0x2b0   : > { %1539 = vrot.lane.b32.xlu1 %v5185_v59, %s2471_s14 }
 0x2b1   : > { %1445 = vrot.lane.b32.xlu0 %v5186_v28, %s2470_s13  ;;  %v1412_v27 = vpop.permute.xlu2 %1411 }
 0x2b2   : > { %v1340_v44 = vpop.permute.xlu1 %1339 }
 0x2b3   : > { %v1506_v60 = vpop.permute.xlu0 %1505  ;;  %v1768_v57 = vsel %vm1742_vm11, %v3985_v2, %v1340_v44 }
 0x2b4   : > { %v1821_v14 = vsel %vm1808_vm13, %v1788_v5, %v1506_v60  ;;  %v1801_v9 = vsel %vm1775_vm12, %v1768_v57, %v1436_v30  ;;  %v5193_v30 = vld [vmem:[#allocation139_spill] sm:$0xff] }
 0x2b5   : > { %2373 = vmatmul.msk.f32.gmra.mxu1 %vm1850_vm14, %v1821_v14  ;;  %v1651_v39 = vsel %vm1643_vm8, %v1618_v50, %v5193_v30 }
 0x2b6   : > { %v1684_v8 = vsel %vm1676_vm9, %v1651_v39, %v5194_v0 }
 0x2b7   : > { %1351 = vrot.lane.b32.xlu2 %v5104_v48, %s2469_s12  ;;  %v1717_v36 = vsel %vm1709_vm10, %v1684_v8, %v3749_v58 }
 0x2b8   : > { %1541 = vrot.lane.b32.xlu1 %v5187_v12, %s2471_s14  ;;  %v1750_v32 = vsel %vm1742_vm11, %v1717_v36, %v1304_v11 }
 0x2b9   : > { %v1964_v16 = vpop.f32.mrf.mxu0  ;;  %1447 = vrot.lane.b32.xlu0 %v5188_v19, %s2470_s13  ;;  %v1496_v3 = vpop.permute.xlu2 %1495 }
 0x2ba   : > { %2060 = vst.msk [vmem:[%s4357_s16] sm:$0xff] %vm1610_vm7, %v1964_v16  ;;  %v1424_v48 = vpop.permute.xlu1 %1423  ;;  %v2161_v45 = vmul.f32 %v1964_v16, %v1964_v16  ;;  %v2092_v41 = vsel %vm1610_vm7, %v1964_v16, 0.0 }
 0x2bb   : > { %v1795_v43 = vsel %vm1775_vm12, %v1762_v6, %v1424_v48  ;;  %v1520_v61 = vpop.permute.xlu0 %1519 }
 0x2bc   : > { %v1828_v49 = vsel %vm1808_vm13, %v1795_v43, %v1520_v61  ;;  %v2193_v2 = vsel %vm1610_vm7, %v2161_v45, 0.0 }
 0x2bd   : > { %2380 = vmatmul.msk.f32.gmra.mxu2 %vm1850_vm14, %v1828_v49 }
 0x2c0   : > { %1543 = vrot.lane.b32.xlu1 %v5189_v52, %s2471_s14  ;;  %s235_s14 = scalar_lea.vmem %s4668_s5, %s2360_s22 }
 0x2c1   : > { %v1967_v54 = vpop.f32.mrf.mxu0  ;;  %v1438_v47 = vpop.permute.xlu2 %1437 }
 0x2c2   : > { %2061 = vst.msk [vmem:[%s4357_s16 + $0x8] sm:$0xff] %vm1610_vm7, %v1967_v54  ;;  %v2093_v7 = vsel %vm1610_vm7, %v1967_v54, 0.0  ;;  %v2162_v10 = vmul.f32 %v1967_v54, %v1967_v54  ;;  %v1532_v38 = vpop.permute.xlu1 %1531 }
 0x2c3   : > { %v2094_v62 = vadd.f32 %v2093_v7, %v2092_v41  ;;  %v1834_v20 = vsel %vm1808_vm13, %v1801_v9, %v1532_v38  ;;  %v1316_v42 = vpop.permute.xlu0 %1315 }
 0x2c4   : > { %v2194_v25 = vsel %vm1610_vm7, %v2162_v10, 0.0  ;;  %2386 = vmatmul.msk.f32.gmra.mxu3 %vm1850_vm14, %v1834_v20  ;;  %v1756_v35 = vsel %vm1742_vm11, %v3810_v23, %v1316_v42 }
 0x2c5   : > { %v2195_v55 = vadd.f32 %v2194_v25, %v2193_v2  ;;  %v1789_v14 = vsel %vm1775_vm12, %v1756_v35, %v1412_v27 }
 0x2c9   : > { %v1318_v60 = vpop.permute.xlu2 %1317 }
 0x2ca   : > { %v1400_v51 = vpop.permute.xlu1 %1399  ;;  %v1970_v37 = vpop.f32.mrf.mxu0  ;;  %v1757_v9 = vsel %vm1742_vm11, %v3725_v15, %v1318_v60 }
 0x2cb   : > { %v1783_v34 = vsel %vm1775_vm12, %v1750_v32, %v1400_v51  ;;  %2062 = vst.msk [vmem:[%s4357_s16 + $0x10] sm:$0xff] %vm1610_vm7, %v1970_v37  ;;  %v2095_v13 = vsel %vm1610_vm7, %v1970_v37, 0.0  ;;  %v2163_v1 = vmul.f32 %v1970_v37, %v1970_v37  ;;  %v1330_v24 = vpop.permute.xlu0 %1329 }
 0x2cc   : > { %v1816_v31 = vsel %vm1808_vm13, %v1783_v34, %v1496_v3  ;;  %v2096_v59 = vadd.f32 %v2095_v13, %v2094_v62  ;;  %v1763_v23 = vsel %vm1742_vm11, %v3769_v29, %v1330_v24 }
 0x2cd   : > { %2368 = vmatmul.msk.f32.gmra.mxu0 %vm1850_vm14, %v1816_v31  ;;  %v2196_v58 = vsel %vm1610_vm7, %v2163_v1, 0.0 }
 0x2ce   : > { %v2197_v11 = vadd.f32 %v2196_v58, %v2195_v55 }
 0x2d1   : > { %v4404_v28 = vpop.f32.mrf.mxu1  ;;  %v1344_v61 = vpop.permute.xlu2 %1343 }
 0x2d2   : > { %2068 = vst.msk [vmem:[%s4357_s16 + $0x40] sm:$0xff] %vm1610_vm7, %v4404_v28  ;;  %v1342_v44 = vpop.permute.xlu1 %1341  ;;  %v1770_v50 = vsel %vm1742_vm11, %v3990_v22, %v1344_v61 }
 0x2d3   : > { %v1508_v5 = vpop.permute.xlu0 %1507  ;;  %v1769_v27 = vsel %vm1742_vm11, %v3847_v21, %v1342_v44 }
 0x2d4   : > { %v1822_v12 = vsel %vm1808_vm13, %v1789_v14, %v1508_v5  ;;  %v1802_v3 = vsel %vm1775_vm12, %v1769_v27, %v1438_v47 }
 0x2d5   : > { %2374 = vmatmul.msk.f32.gmra.mxu1 %vm1850_vm14, %v1822_v12 }
 0x2d9   : > { %v4412_v16 = vpop.f32.mrf.mxu1  ;;  %v1440_v10 = vpop.permute.xlu2 %1439 }
 0x2da   : > { %2069 = vst.msk [vmem:[%s4357_s16 + $0x48] sm:$0xff] %vm1610_vm7, %v4412_v16  ;;  %v1426_v6 = vpop.permute.xlu1 %1425  ;;  %v1803_v39 = vsel %vm1775_vm12, %v1770_v50, %v1440_v10 }
 0x2db   : > { %v1796_v19 = vsel %vm1775_vm12, %v1763_v23, %v1426_v6  ;;  %v1522_v48 = vpop.permute.xlu0 %1521 }
 0x2dc   : > { %v1829_v43 = vsel %vm1808_vm13, %v1796_v19, %v1522_v48 }
 0x2dd   : > { %2381 = vmatmul.msk.f32.gmra.mxu2 %vm1850_vm14, %v1829_v43 }
 0x2e1   : > { %v1973_v49 = vpop.f32.mrf.mxu0  ;;  %v1320_v53 = vpop.permute.xlu2 %1319 }
 0x2e2   : > { %2063 = vst.msk [vmem:[%s4357_s16 + $0x18] sm:$0xff] %vm1610_vm7, %v1973_v49  ;;  %v2097_v29 = vsel %vm1610_vm7, %v1973_v49, 0.0  ;;  %v2164_v57 = vmul.f32 %v1973_v49, %v1973_v49  ;;  %v1534_v45 = vpop.permute.xlu1 %1533  ;;  %v1758_v13 = vsel %vm1742_vm11, %v3815_v4, %v1320_v53 }
 0x2e3   : > { %v2098_v52 = vadd.f32 %v2097_v29, %v2096_v59  ;;  %v1835_v54 = vsel %vm1808_vm13, %v1802_v3, %v1534_v45  ;;  %v1414_v7 = vpop.permute.xlu0 %1413 }
 0x2e4   : > { %v2198_v41 = vsel %vm1610_vm7, %v2164_v57, 0.0  ;;  %2387 = vmatmul.msk.f32.gmra.mxu3 %vm1850_vm14, %v1835_v54  ;;  %v1790_v62 = vsel %vm1775_vm12, %v1757_v9, %v1414_v7 }
 0x2e5   : > { %v2199_v21 = vadd.f32 %v2198_v41, %v2197_v11  ;;  %v5195_v41 = vld [vmem:[#allocation97_spill] sm:$0xff] }
 0x2e9   : > { %v1346_v47 = vpop.permute.xlu2 %1345 }
 0x2ea   : > { %v1332_v38 = vpop.permute.xlu1 %1331  ;;  %v1771_v48 = vsel %vm1742_vm11, %v4017_v18, %v1346_v47 }
 0x2eb   : > { %v1510_v20 = vpop.permute.xlu0 %1509  ;;  %v1764_v15 = vsel %vm1742_vm11, %v3914_v63, %v1332_v38 }
 0x2ec   : > { %v4434_v2 = vpop.f32.mrf.mxu1  ;;  %v1823_v25 = vsel %vm1808_vm13, %v1790_v62, %v1510_v20 }
 0x2ed   : > { %2070 = vst.msk [vmem:[%s4357_s16 + $0x50] sm:$0xff] %vm1610_vm7, %v4434_v2  ;;  %2375 = vmatmul.msk.f32.gmra.mxu1 %vm1850_vm14, %v1823_v25  ;;  %v5196_v25 = vld [vmem:[#allocation92_spill] sm:$0xff] }
 0x2ef   : > { %v4441_v42 = vpop.f32.mrf.mxu2 }
 0x2f0   : > { %2076 = vst.msk [vmem:[%s4357_s16 + $0x80] sm:$0xff] %vm1610_vm7, %v4441_v42 }
 0x2f1   : > { %v1442_v59 = vpop.permute.xlu2 %1441 }
 0x2f2   : > { %v1428_v33 = vpop.permute.xlu1 %1427  ;;  %v1804_v43 = vsel %vm1775_vm12, %v1771_v48, %v1442_v59  ;;  %v2107_v59 = vsel %vm1610_vm7, %v4404_v28, 0.0 }
 0x2f3   : > { %v1797_v26 = vsel %vm1775_vm12, %v1764_v15, %v1428_v33  ;;  %v1524_v55 = vpop.permute.xlu0 %1523 }
 0x2f4   : > { %v1830_v46 = vsel %vm1808_vm13, %v1797_v26, %v1524_v55 }
 0x2f5   : > { %2382 = vmatmul.msk.f32.gmra.mxu2 %vm1850_vm14, %v1830_v46 }
 0x2f9   : > { %v1976_v30 = vpop.f32.mrf.mxu0 }
 0x2fa   : > { %2064 = vst.msk [vmem:[%s4357_s16 + $0x20] sm:$0xff] %vm1610_vm7, %v1976_v30  ;;  %v2099_v0 = vsel %vm1610_vm7, %v1976_v30, 0.0  ;;  %v2165_v8 = vmul.f32 %v1976_v30, %v1976_v30  ;;  %v1536_v63 = vpop.permute.xlu1 %1535 }
 0x2fb   : > { %v2100_v36 = vadd.f32 %v2099_v0, %v2098_v52  ;;  %v1836_v32 = vsel %vm1808_vm13, %v1803_v39, %v1536_v63  ;;  %v1416_v34 = vpop.permute.xlu0 %1415 }
 0x2fc   : > { %v2200_v51 = vsel %vm1610_vm7, %v2165_v8, 0.0  ;;  %2388 = vmatmul.msk.f32.gmra.mxu3 %vm1850_vm14, %v1836_v32  ;;  %v1791_v1 = vsel %vm1775_vm12, %v1758_v13, %v1416_v34  ;;  %v2169_v13 = vmul.f32 %v4404_v28, %v4404_v28 }
 0x2fd   : > { %v2201_v22 = vadd.f32 %v2200_v51, %v2199_v21 }
 0x302   : > { %v1334_v37 = vpop.permute.xlu1 %1333 }
 0x303   : > { %v1512_v24 = vpop.permute.xlu0 %1511  ;;  %v1765_v11 = vsel %vm1742_vm11, %v3950_v56, %v1334_v37  ;;  %v1336_v56 = vpop.permute.xlu2 %1335 }
 0x304   : > { %v1824_v31 = vsel %vm1808_vm13, %v1791_v1, %v1512_v24  ;;  %v1766_v57 = vsel %vm1742_vm11, %v3805_v40, %v1336_v56 }
 0x305   : > { %2376 = vmatmul.msk.f32.gmra.mxu1 %vm1850_vm14, %v1824_v31 }
 0x307   : > { %v4465_v58 = vpop.f32.mrf.mxu2 }
 0x308   : > { %2077 = vst.msk [vmem:[%s4357_s16 + $0x88] sm:$0xff] %vm1610_vm7, %v4465_v58 }
 0x30a   : > { %v1430_v35 = vpop.permute.xlu1 %1429  ;;  %v1979_v44 = vpop.f32.mrf.mxu0 }
 0x30b   : > { %v1798_v4 = vsel %vm1775_vm12, %v1765_v11, %v1430_v35  ;;  %2065 = vst.msk [vmem:[%s4357_s16 + $0x28] sm:$0xff] %vm1610_vm7, %v1979_v44  ;;  %v2101_v60 = vsel %vm1610_vm7, %v1979_v44, 0.0  ;;  %v2166_v5 = vmul.f32 %v1979_v44, %v1979_v44  ;;  %v1526_v12 = vpop.permute.xlu0 %1525  ;;  %v1444_v45 = vpop.permute.xlu2 %1443  ;;  %v2170_v11 = vmul.f32 %v4412_v16, %v4412_v16 }
 0x30c   : > { %v2102_v14 = vadd.f32 %v2101_v60, %v2100_v36  ;;  %v1831_v6 = vsel %vm1808_vm13, %v1798_v4, %v1526_v12  ;;  %v2208_v60 = vsel %vm1610_vm7, %v2169_v13, 0.0 }
 0x30d   : > { %v2202_v23 = vsel %vm1610_vm7, %v2166_v5, 0.0  ;;  %2383 = vmatmul.msk.f32.gmra.mxu2 %vm1850_vm14, %v1831_v6  ;;  %v2109_v5 = vsel %vm1610_vm7, %v4412_v16, 0.0  ;;  %v2210_v28 = vsel %vm1610_vm7, %v2170_v11, 0.0  ;;  %v2111_v6 = vsel %vm1610_vm7, %v4434_v2, 0.0 }
 0x30e   : > { %v2203_v19 = vadd.f32 %v2202_v23, %v2201_v22 }
 0x312   : > { %v1538_v61 = vpop.permute.xlu1 %1537  ;;  %v4482_v27 = vpop.f32.mrf.mxu1 }
 0x313   : > { %v1837_v49 = vsel %vm1808_vm13, %v1804_v43, %v1538_v61  ;;  %2071 = vst.msk [vmem:[%s4357_s16 + $0x58] sm:$0xff] %vm1610_vm7, %v4482_v27  ;;  %v1348_v29 = vpop.permute.xlu0 %1347  ;;  %v1350_v9 = vpop.permute.xlu2 %1349  ;;  %v2113_v16 = vsel %vm1610_vm7, %v4482_v27, 0.0 }
 0x314   : > { %2389 = vmatmul.msk.f32.gmra.mxu3 %vm1850_vm14, %v1837_v49  ;;  %v1772_v7 = vsel %vm1742_vm11, %v5195_v41, %v1348_v29  ;;  %v1773_v53 = vsel %vm1742_vm11, %v5196_v25, %v1350_v9 }
 0x315   : > { %v1805_v10 = vsel %vm1775_vm12, %v1772_v7, %v1444_v45 }
 0x31a   : > { %v1432_v18 = vpop.permute.xlu1 %1431 }
 0x31b   : > { %v1799_v3 = vsel %vm1775_vm12, %v1766_v57, %v1432_v18  ;;  %v1528_v52 = vpop.permute.xlu0 %1527  ;;  %v1352_v0 = vpop.permute.xlu2 %1351 }
 0x31c   : > { %v1832_v54 = vsel %vm1808_vm13, %v1799_v3, %v1528_v52  ;;  %v1774_v36 = vsel %vm1742_vm11, %v4044_v17, %v1352_v0 }
 0x31d   : > { %2384 = vmatmul.msk.f32.gmra.mxu2 %vm1850_vm14, %v1832_v54 }
 0x320   : > { %v4496_v21 = vpop.f32.mrf.mxu2 }
 0x321   : > { %2078 = vst.msk [vmem:[%s4357_s16 + $0x90] sm:$0xff] %vm1610_vm7, %v4496_v21  ;;  %v2179_v13 = vmul.f32 %v4496_v21, %v4496_v21 }
 0x322   : > { %v1540_v40 = vpop.permute.xlu1 %1539 }
 0x323   : > { %v1838_v38 = vsel %vm1808_vm13, %v1805_v10, %v1540_v40  ;;  %v1446_v62 = vpop.permute.xlu0 %1445 }
 0x324   : > { %2390 = vmatmul.msk.f32.gmra.mxu3 %vm1850_vm14, %v1838_v38  ;;  %v1806_v15 = vsel %vm1775_vm12, %v1773_v53, %v1446_v62 }
 0x327   : > { %v4504_v20 = vpop.f32.mrf.mxu3 }
 0x328   : > { %2084 = vst.msk [vmem:[%s4357_s16 + $0xc0] sm:$0xff] %vm1610_vm7, %v4504_v20 }
 0x32a   : > { %v1542_v33 = vpop.permute.xlu1 %1541  ;;  %v1982_v26 = vpop.f32.mrf.mxu0 }
 0x32b   : > { %2066 = vst.msk [vmem:[%s4357_s16 + $0x30] sm:$0xff] %vm1610_vm7, %v1982_v26  ;;  %v2103_v55 = vsel %vm1610_vm7, %v1982_v26, 0.0  ;;  %v2167_v46 = vmul.f32 %v1982_v26, %v1982_v26  ;;  %v1839_v50 = vsel %vm1808_vm13, %v1806_v15, %v1542_v33  ;;  %v1448_v63 = vpop.permute.xlu0 %1447 }
 0x32c   : > { %v2104_v30 = vadd.f32 %v2103_v55, %v2102_v14  ;;  %2391 = vmatmul.msk.f32.gmra.mxu3 %vm1850_vm14, %v1839_v50  ;;  %v1807_v32 = vsel %vm1775_vm12, %v1774_v36, %v1448_v63  ;;  %v2171_v14 = vmul.f32 %v4434_v2, %v4434_v2  ;;  %v2177_v50 = vmul.f32 %v4441_v42, %v4441_v42 }
 0x32d   : > { %v2204_v39 = vsel %vm1610_vm7, %v2167_v46, 0.0  ;;  %v2123_v63 = vsel %vm1610_vm7, %v4441_v42, 0.0  ;;  %v2178_v36 = vmul.f32 %v4465_v58, %v4465_v58  ;;  %v2127_v42 = vsel %vm1610_vm7, %v4496_v21, 0.0 }
 0x32e   : > { %v2205_v8 = vadd.f32 %v2204_v39, %v2203_v19  ;;  %v2172_v19 = vmul.f32 %v4482_v27, %v4482_v27  ;;  %v2212_v43 = vsel %vm1610_vm7, %v2171_v14, 0.0 }
 0x330   : > { %v2214_v2 = vsel %vm1610_vm7, %v2172_v19, 0.0 }
 0x332   : > { %v1544_v47 = vpop.permute.xlu1 %1543  ;;  %v2000_v51 = vpop.f32.mrf.mxu1 }
 0x333   : > { %v1840_v34 = vsel %vm1808_vm13, %v1807_v32, %v1544_v47  ;;  %2072 = vst.msk [vmem:[%s4357_s16 + $0x60] sm:$0xff] %vm1610_vm7, %v2000_v51  ;;  %v2173_v61 = vmul.f32 %v2000_v51, %v2000_v51  ;;  %v2115_v45 = vsel %vm1610_vm7, %v2000_v51, 0.0 }
 0x334   : > { %2392 = vmatmul.msk.f32.gmra.mxu3 %vm1850_vm14, %v1840_v34  ;;  %v2224_v34 = vsel %vm1610_vm7, %v2177_v50, 0.0 }
 0x335   : > { %v2216_v54 = vsel %vm1610_vm7, %v2173_v61, 0.0 }
 0x340   : > { %v4525_v22 = vpop.f32.mrf.mxu2 }
 0x341   : > { %2079 = vst.msk [vmem:[%s4357_s16 + $0x98] sm:$0xff] %vm1610_vm7, %v4525_v22 }
 0x347   : > { %v4530_v37 = vpop.f32.mrf.mxu3 }
 0x348   : > { %2085 = vst.msk [vmem:[%s4357_s16 + $0xc8] sm:$0xff] %vm1610_vm7, %v4530_v37 }
 0x34a   : > { %v1985_v17 = vpop.f32.mrf.mxu0 }
 0x34b   : > { %2067 = vst.msk [vmem:[%s4357_s16 + $0x38] sm:$0xff] %vm1610_vm7, %v1985_v17  ;;  %v2105_v1 = vsel %vm1610_vm7, %v1985_v17, 0.0  ;;  %v2168_v24 = vmul.f32 %v1985_v17, %v1985_v17  ;;  %v2125_v17 = vsel %vm1610_vm7, %v4465_v58, 0.0  ;;  %v2129_v58 = vsel %vm1610_vm7, %v4525_v22, 0.0 }
 0x34c   : > { %v2106_v31 = vadd.f32 %v2105_v1, %v2104_v30 }
 0x34d   : > { %v2206_v35 = vsel %vm1610_vm7, %v2168_v24, 0.0 }
 0x34e   : > { %v2108_v44 = vadd.f32 %v2107_v59, %v2106_v31  ;;  %v2207_v4 = vadd.f32 %v2206_v35, %v2205_v8  ;;  %v2226_v31 = vsel %vm1610_vm7, %v2178_v36, 0.0  ;;  %v2180_v59 = vmul.f32 %v4525_v22, %v4525_v22 }
 0x350   : > { %v2110_v12 = vadd.f32 %v2109_v5, %v2108_v44  ;;  %v2209_v23 = vadd.f32 %v2208_v60, %v2207_v4  ;;  %v2228_v44 = vsel %vm1610_vm7, %v2179_v13, 0.0  ;;  %v2230_v14 = vsel %vm1610_vm7, %v2180_v59, 0.0 }
 0x352   : > { %v2112_v56 = vadd.f32 %v2111_v6, %v2110_v12  ;;  %v2211_v48 = vadd.f32 %v2210_v28, %v2209_v23  ;;  %v2003_v49 = vpop.f32.mrf.mxu1 }
 0x353   : > { %2073 = vst.msk [vmem:[%s4357_s16 + $0x68] sm:$0xff] %vm1610_vm7, %v2003_v49  ;;  %v2174_v18 = vmul.f32 %v2003_v49, %v2003_v49  ;;  %v2117_v27 = vsel %vm1610_vm7, %v2003_v49, 0.0 }
 0x354   : > { %v2213_v29 = vadd.f32 %v2212_v43, %v2211_v48  ;;  %v2114_v57 = vadd.f32 %v2113_v16, %v2112_v56 }
 0x355   : > { %v2218_v40 = vsel %vm1610_vm7, %v2174_v18, 0.0  ;;  %v2185_v18 = vmul.f32 %v4504_v20, %v4504_v20 }
 0x356   : > { %v2116_v3 = vadd.f32 %v2115_v45, %v2114_v57  ;;  %v2215_v52 = vadd.f32 %v2214_v2, %v2213_v29 }
 0x358   : > { %v2118_v41 = vadd.f32 %v2117_v27, %v2116_v3  ;;  %v2217_v7 = vadd.f32 %v2216_v54, %v2215_v52 }
 0x35a   : > { %v2219_v10 = vadd.f32 %v2218_v40, %v2217_v7  ;;  %v2186_v7 = vmul.f32 %v4530_v37, %v4530_v37 }
 0x360   : > { %v2024_v38 = vpop.f32.mrf.mxu2 }
 0x361   : > { %2080 = vst.msk [vmem:[%s4357_s16 + $0xa0] sm:$0xff] %vm1610_vm7, %v2024_v38  ;;  %v2181_v4 = vmul.f32 %v2024_v38, %v2024_v38  ;;  %v2131_v12 = vsel %vm1610_vm7, %v2024_v38, 0.0 }
 0x363   : > { %v2232_v28 = vsel %vm1610_vm7, %v2181_v4, 0.0 }
 0x367   : > { %v4567_v9 = vpop.f32.mrf.mxu3 }
 0x368   : > { %2086 = vst.msk [vmem:[%s4357_s16 + $0xd0] sm:$0xff] %vm1610_vm7, %v4567_v9 }
 0x36a   : > { %v2006_v62 = vpop.f32.mrf.mxu1 }
 0x36b   : > { %2074 = vst.msk [vmem:[%s4357_s16 + $0x70] sm:$0xff] %vm1610_vm7, %v2006_v62  ;;  %v2175_v53 = vmul.f32 %v2006_v62, %v2006_v62  ;;  %v2119_v33 = vsel %vm1610_vm7, %v2006_v62, 0.0  ;;  %v2240_v62 = vsel %vm1610_vm7, %v2185_v18, 0.0 }
 0x36c   : > { %v2120_v55 = vadd.f32 %v2119_v33, %v2118_v41  ;;  %v2139_v41 = vsel %vm1610_vm7, %v4504_v20, 0.0  ;;  %v2242_v20 = vsel %vm1610_vm7, %v2186_v7, 0.0 }
 0x36d   : > { %v2220_v26 = vsel %vm1610_vm7, %v2175_v53, 0.0  ;;  %v2187_v53 = vmul.f32 %v4567_v9, %v4567_v9 }
 0x36e   : > { %v2221_v0 = vadd.f32 %v2220_v26, %v2219_v10 }
 0x378   : > { %v2027_v25 = vpop.f32.mrf.mxu2 }
 0x379   : > { %2081 = vst.msk [vmem:[%s4357_s16 + $0xa8] sm:$0xff] %vm1610_vm7, %v2027_v25  ;;  %v2182_v22 = vmul.f32 %v2027_v25, %v2027_v25  ;;  %v2133_v48 = vsel %vm1610_vm7, %v2027_v25, 0.0  ;;  %v2141_v25 = vsel %vm1610_vm7, %v4530_v37, 0.0  ;;  %v2244_v37 = vsel %vm1610_vm7, %v2187_v53, 0.0 }
 0x37b   : > { %v2234_v61 = vsel %vm1610_vm7, %v2182_v22, 0.0 }
 0x37f   : > { %v4576_v15 = vpop.f32.mrf.mxu3 }
 0x380   : > { %2087 = vst.msk [vmem:[%s4357_s16 + $0xd8] sm:$0xff] %vm1610_vm7, %v4576_v15  ;;  %v2188_v50 = vmul.f32 %v4576_v15, %v4576_v15 }
 0x382   : > { %v2009_v46 = vpop.f32.mrf.mxu1  ;;  %v2246_v36 = vsel %vm1610_vm7, %v2188_v50, 0.0 }
 0x383   : > { %2075 = vst.msk [vmem:[%s4357_s16 + $0x78] sm:$0xff] %vm1610_vm7, %v2009_v46  ;;  %v2121_v30 = vsel %vm1610_vm7, %v2009_v46, 0.0  ;;  %v2176_v39 = vmul.f32 %v2009_v46, %v2009_v46  ;;  %v2143_v46 = vsel %vm1610_vm7, %v4567_v9, 0.0 }
 0x384   : > { %v2122_v8 = vadd.f32 %v2121_v30, %v2120_v55 }
 0x385   : > { %v2222_v32 = vsel %vm1610_vm7, %v2176_v39, 0.0 }
 0x386   : > { %v2124_v47 = vadd.f32 %v2123_v63, %v2122_v8  ;;  %v2223_v51 = vadd.f32 %v2222_v32, %v2221_v0  ;;  %v2145_v0 = vsel %vm1610_vm7, %v4576_v15, 0.0 }
 0x388   : > { %v2126_v1 = vadd.f32 %v2125_v17, %v2124_v47  ;;  %v2225_v24 = vadd.f32 %v2224_v34, %v2223_v51 }
 0x38a   : > { %v2128_v11 = vadd.f32 %v2127_v42, %v2126_v1  ;;  %v2227_v35 = vadd.f32 %v2226_v31, %v2225_v24 }
 0x38c   : > { %v2229_v60 = vadd.f32 %v2228_v44, %v2227_v35  ;;  %v2130_v5 = vadd.f32 %v2129_v58, %v2128_v11 }
 0x38e   : > { %v2132_v21 = vadd.f32 %v2131_v12, %v2130_v5  ;;  %v2231_v23 = vadd.f32 %v2230_v14, %v2229_v60 }
 0x390   : > { %v2030_v6 = vpop.f32.mrf.mxu2  ;;  %v2233_v19 = vadd.f32 %v2232_v28, %v2231_v23  ;;  %v2134_v16 = vadd.f32 %v2133_v48, %v2132_v21 }
 0x391   : > { %2082 = vst.msk [vmem:[%s4357_s16 + $0xb0] sm:$0xff] %vm1610_vm7, %v2030_v6  ;;  %v2183_v43 = vmul.f32 %v2030_v6, %v2030_v6  ;;  %v2135_v49 = vsel %vm1610_vm7, %v2030_v6, 0.0 }
 0x392   : > { %v2235_v29 = vadd.f32 %v2234_v61, %v2233_v19  ;;  %v2136_v2 = vadd.f32 %v2135_v49, %v2134_v16 }
 0x393   : > { %v2236_v57 = vsel %vm1610_vm7, %v2183_v43, 0.0 }
 0x394   : > { %v2237_v54 = vadd.f32 %v2236_v57, %v2235_v29 }
 0x397   : > { %v2048_v56 = vpop.f32.mrf.mxu3 }
 0x398   : > { %2088 = vst.msk [vmem:[%s4357_s16 + $0xe0] sm:$0xff] %vm1610_vm7, %v2048_v56  ;;  %v2189_v32 = vmul.f32 %v2048_v56, %v2048_v56  ;;  %v2147_v9 = vsel %vm1610_vm7, %v2048_v56, 0.0 }
 0x39a   : > { %v2248_v17 = vsel %vm1610_vm7, %v2189_v32, 0.0 }
 0x3a0   : > { %v2033_v45 = vpop.f32.mrf.mxu2 }
 0x3a1   : > { %2083 = vst.msk [vmem:[%s4357_s16 + $0xb8] sm:$0xff] %vm1610_vm7, %v2033_v45  ;;  %v2137_v3 = vsel %vm1610_vm7, %v2033_v45, 0.0  ;;  %v2184_v52 = vmul.f32 %v2033_v45, %v2033_v45 }
 0x3a2   : > { %v2138_v27 = vadd.f32 %v2137_v3, %v2136_v2 }
 0x3a3   : > { %v2238_v40 = vsel %vm1610_vm7, %v2184_v52, 0.0 }
 0x3a4   : > { %v2140_v10 = vadd.f32 %v2139_v41, %v2138_v27  ;;  %v2239_v38 = vadd.f32 %v2238_v40, %v2237_v54 }
 0x3a6   : > { %v2142_v33 = vadd.f32 %v2141_v25, %v2140_v10  ;;  %v2241_v26 = vadd.f32 %v2240_v62, %v2239_v38 }
 0x3a7   : > { %v2051_v55 = vpop.f32.mrf.mxu3 }
 0x3a8   : > { %2089 = vst.msk [vmem:[%s4357_s16 + $0xe8] sm:$0xff] %vm1610_vm7, %v2051_v55  ;;  %v2144_v30 = vadd.f32 %v2143_v46, %v2142_v33  ;;  %v2243_v39 = vadd.f32 %v2242_v20, %v2241_v26  ;;  %v2190_v13 = vmul.f32 %v2051_v55, %v2051_v55  ;;  %v2149_v24 = vsel %vm1610_vm7, %v2051_v55, 0.0 }
 0x3aa   : > { %v2245_v8 = vadd.f32 %v2244_v37, %v2243_v39  ;;  %v2146_v63 = vadd.f32 %v2145_v0, %v2144_v30  ;;  %v2250_v42 = vsel %vm1610_vm7, %v2190_v13, 0.0 }
 0x3ac   : > { %v2247_v47 = vadd.f32 %v2246_v36, %v2245_v8  ;;  %v2148_v51 = vadd.f32 %v2147_v9, %v2146_v63 }
 0x3ae   : > { %v2249_v1 = vadd.f32 %v2248_v17, %v2247_v47  ;;  %v2150_v31 = vadd.f32 %v2149_v24, %v2148_v51 }
 0x3af   : > { %v2054_v34 = vpop.f32.mrf.mxu3 }
 0x3b0   : > { %2090 = vst.msk [vmem:[%s4357_s16 + $0xf0] sm:$0xff] %vm1610_vm7, %v2054_v34  ;;  %v2191_v15 = vmul.f32 %v2054_v34, %v2054_v34  ;;  %v2151_v59 = vsel %vm1610_vm7, %v2054_v34, 0.0  ;;  %v2251_v11 = vadd.f32 %v2250_v42, %v2249_v1 }
 0x3b1   : > { %v2152_v44 = vadd.f32 %v2151_v59, %v2150_v31 }
 0x3b2   : > { %v2252_v35 = vsel %vm1610_vm7, %v2191_v15, 0.0 }
 0x3b3   : > { %v2253_v5 = vadd.f32 %v2252_v35, %v2251_v11 }
 0x3b7   : > { %v2057_v58 = vpop.f32.mrf.mxu3 }
 0x3b8   : > { %2091 = vst.msk [vmem:[%s4357_s16 + $0xf8] sm:$0xff] %vm1610_vm7, %v2057_v58  ;;  %v2153_v4 = vsel %vm1610_vm7, %v2057_v58, 0.0  ;;  %v2192_v60 = vmul.f32 %v2057_v58, %v2057_v58 }
 0x3b9   : > { %v2154_v14 = vadd.f32 %v2153_v4, %v2152_v44 }
 0x3ba   : > { %v2254_v12 = vsel %vm1610_vm7, %v2192_v60, 0.0 }
 0x3bb   : > { %v2155_v21 = vrot.slane %v2154_v14, 4  ;;  %v2255_v23 = vadd.f32 %v2254_v12, %v2253_v5 }
 0x3bd   : > { %v2156_v28 = vadd.f32 %v2155_v21, %v2154_v14  ;;  %v2256_v6 = vrot.slane %v2255_v23, 4 }
 0x3bf   : > { %v2157_v19 = vrot.slane %v2156_v28, 2  ;;  %v2257_v56 = vadd.f32 %v2256_v6, %v2255_v23 }
 0x3c1   : > { %v2158_v22 = vadd.f32 %v2157_v19, %v2156_v28  ;;  %v2258_v48 = vrot.slane %v2257_v56, 2 }
 0x3c3   : > { %v2159_v43 = vrot.slane %v2158_v22, 1  ;;  %v2259_v16 = vadd.f32 %v2258_v48, %v2257_v56 }
 0x3c5   : > { %v2260_v61 = vrot.slane %v2259_v16, 1  ;;  %v2160_v49 = vadd.f32 %v2159_v43, %v2158_v22 }
 0x3c7   : > { %v2261_v29 = vadd.f32 %v2260_v61, %v2259_v16 }
 0x3c9   : > { %v2262_v57 = vsel %vm469_vm0, %v2160_v49, %v2261_v29 }
 0x3ca   : > { %2264 = vst.msk [vmem:[%s235_s14] sm:$0x3] %vm2263_vm15, %v2262_v57 }
 0x3cb PF: > { %s16_s18 = sadd.s32 1, %s2461_s18  }
 0x3cc   : > { %p13_p4 = scmp.ge.s32.totalorder %s16_s18, 4  }
 0x3ce   :  { %15 = sbr.rel (!%p13_p4) target bundleno = 1 (0x1), region = 78 }

</bundles_post_ra>
